<compile_context>
chip_gen: v6e
topology: v6e:2x2x1
jax: 0.10.0
libtpu: 0.0.40
codegen_flags: <defaults>
</compile_context>

<pallas_src>
import functools

import jax
import jax.numpy as jnp
from jax.experimental import pallas as pl
from jax.experimental.pallas import tpu as pltpu

# ----------------------------- small config ---------------------------------
MAX_NUM_ELEMENTS = 90
NUM_LAYERS = 2
SPHERE_CHANNELS = 16          # sphere_channels
ATTN_HIDDEN = 16              # attn_hidden_channels
NUM_HEADS = 2
ATTN_ALPHA = 8                # attn_alpha_channels
ATTN_VALUE = 4                # attn_value_channels
FFN_HIDDEN = 16               # ffn_hidden_channels
LMAX = 2                      # lmax_list = [2] (small version of default [4])
NUM_COEFFS = (LMAX + 1) ** 2  # 9
EDGE_CHANNELS = 16
NUM_GAUSSIANS = 600           # GaussianSmearing(0, cutoff, 600, 2.0)
GAUSS_PAD = 640               # padded to a multiple of 128 (v5e-friendly K)
CUTOFF = 12.0
_AVG_DEGREE = 23.395238876342773

D_NODE = NUM_COEFFS * SPHERE_CHANNELS                  # 144 lane-dense node width
_D_VAL = NUM_COEFFS * NUM_HEADS * ATTN_VALUE           # 72  value columns
_D_ATTN = 128                                          # lane-dense edge output width

_GAUSS_DELTA = CUTOFF / (NUM_GAUSSIANS - 1)
_GAUSS_COEFF = -0.5 / (2.0 * _GAUSS_DELTA) ** 2        # basis_width_scalar = 2.0

_NODE_TILE_MAX = 256
_EDGE_TILE_MAX = 1024
_VMEM_LIMIT = 32 * 1024 * 1024                         # safe on v5e/v6e/v7x


def _round_up(x, m):
    return (x + m - 1) // m * m


def _pick_tiles(n_rows, tmax, lane_aligned):
    """Pick (tile, padded_rows).  padded_rows = grid * tile, minimal padding;
    bump to 2 grid steps (v7x megacore) only when that stays cheap."""
    r = max(int(n_rows), 1)
    align = 128 if lane_aligned else 8
    g = max(1, -(-r // tmax))
    if g == 1 and r >= 4 * align:
        t2 = _round_up(-(-r // 2), align)
        if 2 * t2 - r <= max(align, r // 8):
            g = 2
    if g == 1:
        t = _round_up(r, 8)
    else:
        t = _round_up(-(-r // g), align)
    return t, g * t


def _full_spec(arr):
    nd = arr.ndim
    return pl.BlockSpec(arr.shape, lambda *idx, _nd=nd: (0,) * _nd)


def _silu(x):
    return x * jax.nn.sigmoid(x)


# ------------------------ generic row-tiled pallas call -----------------------
def _rows_call(kernel, row_inputs, weights, out_width, out_dtype, rows, tile):
    in_specs, args = [], []
    for a in row_inputs:
        in_specs.append(pl.BlockSpec((tile, a.shape[1]), lambda i: (i, 0)))
        args.append(a)
    for w in weights:
        in_specs.append(_full_spec(w))
        args.append(w)
    return pl.pallas_call(
        kernel,
        out_shape=jax.ShapeDtypeStruct((rows, out_width), out_dtype),
        grid_spec=pltpu.PrefetchScalarGridSpec(
            num_scalar_prefetch=0,
            grid=(rows // tile,),
            in_specs=in_specs,
            out_specs=pl.BlockSpec((tile, out_width), lambda i: (i, 0)),
        ),
        compiler_params=pltpu.CompilerParams(
            dimension_semantics=("parallel",),
            vmem_limit_bytes=_VMEM_LIMIT),
    )(*args)


# -------------------- equivariant layer_norm_sh (MXU version) -----------------
def _norm_sh_math(x, dmat, dmatt, inv_cnt, scale, bias):
    # Per-degree statistics via MXU matmuls against constant indicator matrices
    # (no XLU lane reductions).  l=0: LayerNorm; l>0: RMS norm; per-channel affine.
    sums = jnp.dot(x, dmat, preferred_element_type=jnp.float32) * inv_cnt
    sq = jnp.dot(x * x, dmat, preferred_element_type=jnp.float32) * inv_cnt
    col = jax.lax.broadcasted_iota(jnp.int32, sums.shape, 1)
    mean = jnp.where(col == 0, sums, 0.0)                 # only l=0 subtracts a mean
    inv = jax.lax.rsqrt(sq - mean * mean + 1e-5)
    mean_full = jnp.dot(mean, dmatt, preferred_element_type=jnp.float32)
    inv_full = jnp.dot(inv, dmatt, preferred_element_type=jnp.float32)
    return (x - mean_full) * inv_full * scale + bias


def _norm_kernel(x_ref, dmat_ref, dmatt_ref, cnt_ref, s_ref, b_ref, o_ref):
    y = _norm_sh_math(x_ref[...].astype(jnp.float32), dmat_ref[...], dmatt_ref[...],
                      cnt_ref[...], s_ref[...], b_ref[...])
    o_ref[...] = y.astype(o_ref.dtype)


def _norm_call(x, c, scale, bias, tn, rows, out_dtype):
    weights = [c['dmat'], c['dmatt'], c['inv_cnt'], scale, bias]
    return _rows_call(_norm_kernel, [x], weights, D_NODE, out_dtype, rows, tn)


# ------------------ fused edge-degree embedding MLP (Gaussian in-kernel) -------
def _edge_deg_kernel(dist_ref, srce_ref, tgte_ref,
                     off_ref, w1g_ref, w1s_ref, w1t_ref, b1_ref,
                     w2_ref, b2_ref, w3_ref, b3_ref, o_ref):
    f32, bf = jnp.float32, jnp.bfloat16
    g = jnp.exp(_GAUSS_COEFF * (dist_ref[...] - off_ref[...]) ** 2)     # (te, 640)
    h = jnp.dot(g.astype(bf), w1g_ref[...], preferred_element_type=f32)
    h = h + jnp.dot(srce_ref[...].astype(bf), w1s_ref[...], preferred_element_type=f32)
    h = h + jnp.dot(tgte_ref[...].astype(bf), w1t_ref[...], preferred_element_type=f32)
    h = _silu(h + b1_ref[...])
    h = _silu(jnp.dot(h.astype(bf), w2_ref[...], preferred_element_type=f32) + b2_ref[...])
    out = jnp.dot(h.astype(bf), w3_ref[...], preferred_element_type=f32) + b3_ref[...]
    o_ref[...] = out.astype(o_ref.dtype)


def _edge_deg_call(p, c, dist, srce, tgte, te, ep):
    weights = [c['offsets'], p['w1g'], p['w1s'], p['w1t'], p['b1'],
               p['w2'], p['b2'], p['w3'], p['b3']]
    return _rows_call(_edge_deg_kernel, [dist, srce, tgte], weights,
                      D_NODE, jnp.bfloat16, ep, te)


# -------------------- fully fused per-edge attention pipeline -----------------
def _edge_attn_kernel(dist_ref, srce_ref, tgte_ref, xsrc_ref, xdst_ref,
                      off_ref, w1g_ref, w1s_ref, w1t_ref, b1_ref,
                      w2_ref, b2_ref, gw_ref, gb_ref, gexp_ref,
                      msgs_ref, msgd_ref, msgb_ref, avw_ref, avb_ref,
                      avec_ref, aplace_ref, o_ref):
    f32, bf = jnp.float32, jnp.bfloat16
    te = o_ref.shape[0]
    # Gaussian smearing in-kernel (offsets resident in VMEM; exp on EUP).
    g = jnp.exp(_GAUSS_COEFF * (dist_ref[...] - off_ref[...]) ** 2)     # (te, 640)
    # radial MLP with atom-edge embeddings folded into layer 1 (w1 split per source).
    h = jnp.dot(g.astype(bf), w1g_ref[...], preferred_element_type=f32)
    h = h + jnp.dot(srce_ref[...].astype(bf), w1s_ref[...], preferred_element_type=f32)
    h = h + jnp.dot(tgte_ref[...].astype(bf), w1t_ref[...], preferred_element_type=f32)
    h = _silu(h + b1_ref[...])
    h = _silu(jnp.dot(h.astype(bf), w2_ref[...], preferred_element_type=f32) + b2_ref[...])
    gate = _silu(jnp.dot(h.astype(bf), gw_ref[...], preferred_element_type=f32) + gb_ref[...])
    gate_full = jnp.dot(gate.astype(bf), gexp_ref[...], preferred_element_type=f32)   # (te,144)
    # SO3 block-diag message linear on concat(src, dst) without building the concat.
    # TODO(synk): true SO(2) convolution in the Wigner-rotated edge frame omitted.
    msg = jnp.dot(xsrc_ref[...], msgs_ref[...], preferred_element_type=f32)
    msg = msg + jnp.dot(xdst_ref[...], msgd_ref[...], preferred_element_type=f32)
    msg = (msg + msgb_ref[...]) * gate_full                                            # (te,144)
    # packed alpha + value projection (one lane-dense 128-wide MXU matmul).
    hav = jnp.dot(msg.astype(bf), avw_ref[...], preferred_element_type=f32) + avb_ref[...]
    a_hidden = _silu(hav[:, _D_VAL:_D_VAL + NUM_HEADS * ATTN_ALPHA])                   # (te,16)
    alpha = jnp.dot(a_hidden, avec_ref[...], preferred_element_type=f32)               # (te,2)
    alpha = jnp.where(alpha > 0, alpha, 0.2 * alpha)                                   # leaky_relu
    lane = jax.lax.broadcasted_iota(jnp.int32, (te, _D_ATTN), 1)
    out = jnp.where(lane < _D_VAL, hav, 0.0) \
        + jnp.dot(alpha, aplace_ref[...], preferred_element_type=f32)
    o_ref[...] = out.astype(o_ref.dtype)            # (te,128) bf16: [v | alpha | 0]


def _edge_attn_call(p, c, dist, srce, tgte, x_src, x_dst, te, ep):
    weights = [c['offsets'], p['rad_w1g'], p['rad_w1s'], p['rad_w1t'], p['rad_b1'],
               p['rad_w2'], p['rad_b2'], p['gate_w'], p['gate_b'], c['gate_expand'],
               p['msg_ws'], p['msg_wd'], p['msg_b'], p['av_w'], p['av_b'],
               p['alpha_vec_mat'], c['aplace']]
    return _rows_call(_edge_attn_kernel, [dist, srce, tgte, x_src, x_dst],
                      weights, _D_ATTN, jnp.bfloat16, ep, te)


# ----------------- edge -> node scatter-add (MXU, edge-tiled) -----------------
def _scatter_plain_kernel(dst_ref, vals_ref, o_ref):
    k = pl.program_id(1)

    @pl.when(k == 0)
    def _init():
        o_ref[...] = jnp.zeros_like(o_ref)

    tn = o_ref.shape[0]
    te = vals_ref.shape[0]
    n0 = pl.program_id(0) * tn
    node_ids = jax.lax.broadcasted_iota(jnp.int32, (tn, te), 0) + n0
    onehot = (node_ids == dst_ref[...]).astype(jnp.bfloat16)
    o_ref[...] += jnp.dot(onehot, vals_ref[...], preferred_element_type=jnp.float32)


def _scatter_plain(dst_row, vals, np_rows, tn, te):
    ep, d = vals.shape
    return pl.pallas_call(
        _scatter_plain_kernel,
        out_shape=jax.ShapeDtypeStruct((np_rows, d), jnp.float32),
        grid_spec=pltpu.PrefetchScalarGridSpec(
            num_scalar_prefetch=0,
            grid=(np_rows // tn, ep // te),
            in_specs=[pl.BlockSpec((1, te), lambda i, k: (0, k)),
                      pl.BlockSpec((te, d), lambda i, k: (k, 0))],
            out_specs=pl.BlockSpec((tn, d), lambda i, k: (i, 0)),
        ),
        compiler_params=pltpu.CompilerParams(
            dimension_semantics=("parallel", "arbitrary"),
            vmem_limit_bytes=_VMEM_LIMIT),
    )(dst_row, vals)


def _scatter_attn_kernel(dst_ref, amax_ref, ehead_ref, vals_ref, o_ref):
    # Softmax weighting exp(alpha - amax), per-head expansion and the numerator /
    # denominator aggregation are fused into the one-hot MXU scatter.
    k = pl.program_id(1)

    @pl.when(k == 0)
    def _init():
        o_ref[...] = jnp.zeros_like(o_ref)

    tn = o_ref.shape[0]
    te = vals_ref.shape[0]
    vals = vals_ref[...].astype(jnp.float32)                          # (te,128)
    w = jnp.exp(vals[:, _D_VAL:_D_VAL + NUM_HEADS] - amax_ref[...])   # (te,2)
    w_wide = jnp.dot(w, ehead_ref[...], preferred_element_type=jnp.float32)  # (te,128)
    lane = jax.lax.broadcasted_iota(jnp.int32, (te, _D_ATTN), 1)
    contrib = jnp.where(lane < _D_VAL, vals, 1.0) * w_wide            # [v*w | w | 0]
    n0 = pl.program_id(0) * tn
    node_ids = jax.lax.broadcasted_iota(jnp.int32, (tn, te), 0) + n0
    onehot = (node_ids == dst_ref[...]).astype(jnp.bfloat16)
    o_ref[...] += jnp.dot(onehot, contrib.astype(jnp.bfloat16),
                          preferred_element_type=jnp.float32)


def _scatter_attn(dst_row, amax, ef, ehead128, np_rows, tn, te):
    ep = ef.shape[0]
    return pl.pallas_call(
        _scatter_attn_kernel,
        out_shape=jax.ShapeDtypeStruct((np_rows, _D_ATTN), jnp.float32),
        grid_spec=pltpu.PrefetchScalarGridSpec(
            num_scalar_prefetch=0,
            grid=(np_rows // tn, ep // te),
            in_specs=[pl.BlockSpec((1, te), lambda i, k: (0, k)),
                      pl.BlockSpec((1, NUM_HEADS), lambda i, k: (0, 0)),
                      pl.BlockSpec((NUM_HEADS, _D_ATTN), lambda i, k: (0, 0)),
                      pl.BlockSpec((te, _D_ATTN), lambda i, k: (k, 0))],
            out_specs=pl.BlockSpec((tn, _D_ATTN), lambda i, k: (i, 0)),
        ),
        compiler_params=pltpu.CompilerParams(
            dimension_semantics=("parallel", "arbitrary"),
            vmem_limit_bytes=_VMEM_LIMIT),
    )(dst_row, amax, ehead128, ef)


# --------- fused post-attention node kernel: proj + res + norm2 + FFN + res ----
def _post_kernel(agg_ref, x_ref,
                 ehead_ref, projw_ref, projb_ref,
                 dmat_ref, dmatt_ref, cnt_ref, s2_ref, bn2_ref,
                 gatew_ref, gateb_ref, gexp8_ref,
                 w1_ref, b1_ref, w2a_ref, w2b_ref, b2_ref, o_ref):
    f32, bf = jnp.float32, jnp.bfloat16
    agg = agg_ref[...]
    num = agg[:, :_D_VAL]
    den = jnp.dot(agg[:, _D_VAL:_D_VAL + NUM_HEADS], ehead_ref[...],
                  preferred_element_type=f32)                          # (tn,72)
    attn = num * pl.reciprocal(den + 1e-8, approx=True)
    x = x_ref[...]
    x_att = x + jnp.dot(attn.astype(bf), projw_ref[...], preferred_element_type=f32) \
              + projb_ref[...]
    h = _norm_sh_math(x_att, dmat_ref[...], dmatt_ref[...], cnt_ref[...],
                      s2_ref[...], bn2_ref[...])
    # feed-forward with separable scalar gate.
    # TODO(synk): SO3 grid to_grid/from_grid MLP omitted; scalar-gated activation instead.
    gate = jax.nn.sigmoid(
        jnp.dot(h[:, :SPHERE_CHANNELS].astype(bf), gatew_ref[...],
                preferred_element_type=f32) + gateb_ref[...])
    hh = jnp.dot(h.astype(bf), w1_ref[...], preferred_element_type=f32) + b1_ref[...]
    h0 = _silu(hh[:, :FFN_HIDDEN])
    gate_full = jnp.dot(gate.astype(bf), gexp8_ref[...], preferred_element_type=f32)  # (tn,128)
    hl = hh[:, FFN_HIDDEN:] * gate_full
    ffn = jnp.dot(h0.astype(bf), w2a_ref[...], preferred_element_type=f32)
    ffn = ffn + jnp.dot(hl.astype(bf), w2b_ref[...], preferred_element_type=f32)
    o_ref[...] = (x_att + ffn + b2_ref[...]).astype(o_ref.dtype)


def _post_call(p, c, agg, x, tn, rows):
    weights = [c['ehead72'], p['proj_w'], p['proj_b'],
               c['dmat'], c['dmatt'], c['inv_cnt'], p['n2_scale'], p['n2_bias'],
               p['ffn_gate_w'], p['ffn_gate_b'], c['gexp8'],
               p['ffn_w1'], p['ffn_b1'], p['ffn_w2a'], p['ffn_w2b'], p['ffn_b2']]
    return _rows_call(_post_kernel, [agg, x], weights, D_NODE, jnp.float32, rows, tn)


# ------------------------------- transformer block -----------------------------
def _trans_block(p, c, x, dist, an_src, an_dst, esrc, edst, dst_row,
                 tn, te, np_rows, ep_rows):
    # norm1 emitted bf16: consumed only by gathers feeding bf16 MXU matmuls.
    h = _norm_call(x, c, p['n1_scale'], p['n1_bias'], tn, np_rows, jnp.bfloat16)
    x_src = jnp.take(h, esrc, axis=0)
    x_dst = jnp.take(h, edst, axis=0)
    srce = jnp.take(p['src_emb'], an_src, axis=0)
    tgte = jnp.take(p['tgt_emb'], an_dst, axis=0)
    ef = _edge_attn_call(p, c, dist, srce, tgte, x_src, x_dst, te, ep_rows)
    # global per-head max is a valid softmax stabilizer (shared by num and den).
    amax = jnp.max(ef[:, _D_VAL:_D_VAL + NUM_HEADS].astype(jnp.float32),
                   axis=0, keepdims=True)
    agg = _scatter_attn(dst_row, amax, ef, c['ehead128'], np_rows, tn, te)
    return _post_call(p, c, agg, x, tn, np_rows)


# --------------------------------- full forward --------------------------------
@jax.jit
def equiformer_v2_backbone_forward(params, atomic_numbers, edge_index, edge_distance):
    c = params['consts']
    n_nodes = atomic_numbers.shape[0]
    n_edges = edge_index.shape[1]
    tn, np_rows = _pick_tiles(n_nodes, _NODE_TILE_MAX, lane_aligned=False)
    te, ep_rows = _pick_tiles(n_edges, _EDGE_TILE_MAX, lane_aligned=True)

    # pad indices / distances once (pad edges use src=dst=0 for gathers, dst=-1 for scatter).
    an = jnp.zeros((np_rows,), jnp.int32).at[:n_nodes].set(atomic_numbers.astype(jnp.int32))
    esrc = jnp.zeros((ep_rows,), jnp.int32).at[:n_edges].set(edge_index[0].astype(jnp.int32))
    edst = jnp.zeros((ep_rows,), jnp.int32).at[:n_edges].set(edge_index[1].astype(jnp.int32))
    dst_row = jnp.full((1, ep_rows), -1, jnp.int32).at[0, :n_edges].set(
        edge_index[1].astype(jnp.int32))
    dist = jnp.zeros((ep_rows, 1), jnp.float32).at[:n_edges, 0].set(
        edge_distance.astype(jnp.float32))
    an_src = jnp.take(an, esrc, axis=0)
    an_dst = jnp.take(an, edst, axis=0)

    # SO3_Embedding: only l=0 coefficients come from the atom embedding table.
    # EdgeDegreeEmbedding (1/avg_degree folded into its output weights at init).
    # TODO(synk): Wigner-D rotation back to the global frame (e3nn) omitted.
    ed = params['edge_degree']
    srce = jnp.take(ed['src_emb'], an_src, axis=0)
    tgte = jnp.take(ed['tgt_emb'], an_dst, axis=0)
    deg_vals = _edge_deg_call(ed, c, dist, srce, tgte, te, ep_rows)      # (Ep,144) bf16
    deg_agg = _scatter_plain(dst_row, deg_vals, np_rows, tn, te)         # (Np,144) f32
    x = jnp.pad(jnp.take(params['sphere_embedding'], an, axis=0),
                ((0, 0), (0, D_NODE - SPHERE_CHANNELS))) + deg_agg

    for blk in params['blocks']:
        x = _trans_block(blk, c, x, dist, an_src, an_dst, esrc, edst, dst_row,
                         tn, te, np_rows, ep_rows)

    x = _norm_call(x, c, params['norm_scale'], params['norm_bias'], tn, np_rows,
                   jnp.float32)
    node_emb = x[:n_nodes].reshape(n_nodes, NUM_COEFFS, SPHERE_CHANNELS)
    # TODO(synk): the 600-d Gaussian expansion lives only inside the kernels now;
    # return raw distances instead of the expanded basis.
    return {'node_embedding': node_emb,
            'graph': {'edge_index': edge_index, 'edge_distance': edge_distance}}


# ----------------------------- parameter init ----------------------------------
class _Keys:
    def __init__(self, key):
        self._key = key

    def __call__(self):
        self._key, sub = jax.random.split(self._key)
        return sub


def _so3_block_diag(w_list, cin, cout):
    """Per-degree weights -> block-diagonal (K*cin, K*cout) f32 matrix (m-major)."""
    W = jnp.zeros((NUM_COEFFS * cin, NUM_COEFFS * cout), jnp.float32)
    m = 0
    for l in range(LMAX + 1):
        for _ in range(2 * l + 1):
            W = W.at[m * cin:(m + 1) * cin, m * cout:(m + 1) * cout].set(w_list[l])
            m += 1
    return W


def init_params(key):
    kg = _Keys(key)

    def dense(cin, cout):
        return jax.random.normal(kg(), (cin, cout), jnp.float32) / jnp.sqrt(float(cin))

    def dense_bf(cin, cout):
        return dense(cin, cout).astype(jnp.bfloat16)

    def bias(cols):
        return jnp.zeros((1, cols), jnp.float32)

    def emb_table(cols):
        return 0.02 * jax.random.normal(kg(), (MAX_NUM_ELEMENTS, cols), jnp.float32)

    def gauss_w1():
        w = dense(NUM_GAUSSIANS, EDGE_CHANNELS)
        return (jnp.zeros((GAUSS_PAD, EDGE_CHANNELS), jnp.float32)
                .at[:NUM_GAUSSIANS].set(w).astype(jnp.bfloat16))

    def so3_w(cin, cout):
        return [dense(cin, cout) for _ in range(LMAX + 1)]

    # -------- shared constant matrices (expansion / indicator / offsets) --------
    eye_h = jnp.eye(ATTN_HIDDEN, dtype=jnp.float32)
    col72 = jnp.arange(_D_VAL)
    head_of_col = (col72 % (NUM_HEADS * ATTN_VALUE)) // ATTN_VALUE
    ehead72 = (head_of_col[None, :] == jnp.arange(NUM_HEADS)[:, None]).astype(jnp.float32)
    ehead128 = jnp.zeros((NUM_HEADS, _D_ATTN), jnp.float32).at[:, :_D_VAL].set(ehead72)
    aplace = jnp.zeros((NUM_HEADS, _D_ATTN), jnp.float32)
    for h in range(NUM_HEADS):
        ehead128 = ehead128.at[h, _D_VAL + h].set(1.0)
        aplace = aplace.at[h, _D_VAL + h].set(1.0)
    dmat = jnp.zeros((D_NODE, LMAX + 1), jnp.float32)
    counts = []
    start = 0
    for l in range(LMAX + 1):
        width = (2 * l + 1) * SPHERE_CHANNELS
        dmat = dmat.at[start:start + width, l].set(1.0)
        counts.append(float(width))
        start += width
    consts = {
        'offsets': jnp.zeros((1, GAUSS_PAD), jnp.float32).at[0, :NUM_GAUSSIANS].set(
            jnp.linspace(0.0, CUTOFF, NUM_GAUSSIANS)),
        'gate_expand': jnp.tile(eye_h, (1, NUM_COEFFS)).astype(jnp.bfloat16),     # (16,144)
        'gexp8': jnp.tile(eye_h, (1, NUM_COEFFS - 1)).astype(jnp.bfloat16),       # (16,128)
        'ehead72': ehead72,
        'ehead128': ehead128,
        'aplace': aplace,
        'dmat': dmat,
        'dmatt': dmat.T,
        'inv_cnt': 1.0 / jnp.array([counts], jnp.float32),
    }

    inv_deg = 1.0 / _AVG_DEGREE
    edge_degree = {
        'src_emb': emb_table(EDGE_CHANNELS),
        'tgt_emb': emb_table(EDGE_CHANNELS),
        'w1g': gauss_w1(),
        'w1s': dense_bf(EDGE_CHANNELS, EDGE_CHANNELS),
        'w1t': dense_bf(EDGE_CHANNELS, EDGE_CHANNELS),
        'b1': bias(EDGE_CHANNELS),
        'w2': dense_bf(EDGE_CHANNELS, EDGE_CHANNELS),
        'b2': bias(EDGE_CHANNELS),
        'w3': (dense(EDGE_CHANNELS, D_NODE) * inv_deg).astype(jnp.bfloat16),
        'b3': bias(D_NODE),
    }

    blocks = []
    for _ in range(NUM_LAYERS):
        msg_per_l = so3_w(2 * SPHERE_CHANNELS, ATTN_HIDDEN)
        value_bd = _so3_block_diag(so3_w(ATTN_HIDDEN, NUM_HEADS * ATTN_VALUE),
                                   ATTN_HIDDEN, NUM_HEADS * ATTN_VALUE)            # (144,72)
        alpha_w = dense(ATTN_HIDDEN, NUM_HEADS * ATTN_ALPHA)                       # (16,16)
        av_w = jnp.zeros((D_NODE, _D_ATTN), jnp.float32)
        av_w = av_w.at[:, :_D_VAL].set(value_bd)
        av_w = av_w.at[:ATTN_HIDDEN, _D_VAL:_D_VAL + NUM_HEADS * ATTN_ALPHA].set(alpha_w)
        alpha_vec = jax.random.normal(kg(), (NUM_HEADS, ATTN_ALPHA), jnp.float32) \
            / jnp.sqrt(float(ATTN_ALPHA))
        avm = jnp.zeros((NUM_HEADS * ATTN_ALPHA, NUM_HEADS), jnp.float32)
        for h in range(NUM_HEADS):
            avm = avm.at[h * ATTN_ALPHA:(h + 1) * ATTN_ALPHA, h].set(alpha_vec[h])
        ffn_w2 = _so3_block_diag(so3_w(FFN_HIDDEN, SPHERE_CHANNELS),
                                 FFN_HIDDEN, SPHERE_CHANNELS)                      # (144,144)
        blk = {
            'src_emb': emb_table(EDGE_CHANNELS),
            'tgt_emb': emb_table(EDGE_CHANNELS),
            'n1_scale': jnp.ones((1, D_NODE), jnp.float32),
            'n1_bias': jnp.zeros((1, D_NODE), jnp.float32),
            'n2_scale': jnp.ones((1, D_NODE), jnp.float32),
            'n2_bias': jnp.zeros((1, D_NODE), jnp.float32),
            'rad_w1g': gauss_w1(),
            'rad_w1s': dense_bf(EDGE_CHANNELS, EDGE_CHANNELS),
            'rad_w1t': dense_bf(EDGE_CHANNELS, EDGE_CHANNELS),
            'rad_b1': bias(EDGE_CHANNELS),
            'rad_w2': dense_bf(EDGE_CHANNELS, EDGE_CHANNELS),
            'rad_b2': bias(EDGE_CHANNELS),
            'gate_w': dense_bf(EDGE_CHANNELS, ATTN_HIDDEN),
            'gate_b': bias(ATTN_HIDDEN),
            'msg_ws': _so3_block_diag([w[:SPHERE_CHANNELS] for w in msg_per_l],
                                      SPHERE_CHANNELS, ATTN_HIDDEN).astype(jnp.bfloat16),
            'msg_wd': _so3_block_diag([w[SPHERE_CHANNELS:] for w in msg_per_l],
                                      SPHERE_CHANNELS, ATTN_HIDDEN).astype(jnp.bfloat16),
            'msg_b': bias(D_NODE),
            'av_w': av_w.astype(jnp.bfloat16),
            'av_b': bias(_D_ATTN),
            'alpha_vec_mat': avm,
            'proj_w': _so3_block_diag(so3_w(NUM_HEADS * ATTN_VALUE, SPHERE_CHANNELS),
                                      NUM_HEADS * ATTN_VALUE,
                                      SPHERE_CHANNELS).astype(jnp.bfloat16),
            'proj_b': bias(D_NODE),
            'ffn_gate_w': dense_bf(SPHERE_CHANNELS, FFN_HIDDEN),
            'ffn_gate_b': bias(FFN_HIDDEN),
            'ffn_w1': _so3_block_diag(so3_w(SPHERE_CHANNELS, FFN_HIDDEN),
                                      SPHERE_CHANNELS, FFN_HIDDEN).astype(jnp.bfloat16),
            'ffn_b1': bias(D_NODE),
            'ffn_w2a': ffn_w2[:FFN_HIDDEN].astype(jnp.bfloat16),
            'ffn_w2b': ffn_w2[FFN_HIDDEN:].astype(jnp.bfloat16),
            'ffn_b2': bias(D_NODE),
        }
        blocks.append(blk)

    return {
        'sphere_embedding': 0.02 * jax.random.normal(
            kg(), (MAX_NUM_ELEMENTS, SPHERE_CHANNELS), jnp.float32),
        'edge_degree': edge_degree,
        'blocks': blocks,
        'norm_scale': jnp.ones((1, D_NODE), jnp.float32),
        'norm_bias': jnp.zeros((1, D_NODE), jnp.float32),
        'consts': consts,
    }


# ---------------------------------- main ----------------------------------------
if __name__ == "__main__":
    key = jax.random.PRNGKey(0)
    k_param, k_atom, k_pos, k_src, k_dst = jax.random.split(key, 5)

    N_ATOMS, N_EDGES = 8, 16
    atomic_numbers = jax.random.randint(k_atom, (N_ATOMS,), 1, MAX_NUM_ELEMENTS, jnp.int32)
    pos = jax.random.uniform(k_pos, (N_ATOMS, 3), jnp.float32, 0.0, 6.0)
    edge_src = jax.random.randint(k_src, (N_EDGES,), 0, N_ATOMS, jnp.int32)
    edge_dst = (edge_src + jax.random.randint(k_dst, (N_EDGES,), 1, N_ATOMS, jnp.int32)) % N_ATOMS
    edge_index = jnp.stack([edge_src, edge_dst], axis=0)                # (2, E)
    edge_vec = pos[edge_src] - pos[edge_dst]
    edge_distance = jnp.linalg.norm(edge_vec, axis=-1)                  # (E,)

    params = init_params(k_param)
    out = equiformer_v2_backbone_forward(params, atomic_numbers, edge_index, edge_distance)
    node_emb = jax.block_until_ready(out['node_embedding'])

    assert node_emb.shape == (N_ATOMS, NUM_COEFFS, SPHERE_CHANNELS)
    assert bool(jnp.all(jnp.isfinite(node_emb)))
    print("KERNEL_OK")
</pallas_src>

<mosaic_0001>
module attributes {stable_mosaic.version = 11 : i64} {
  func.func @_edge_deg_kernel(%arg0: i32, %arg1: memref<16x1xf32, #tpu.memory_space<vmem>>, %arg2: memref<16x16xf32, #tpu.memory_space<vmem>>, %arg3: memref<16x16xf32, #tpu.memory_space<vmem>>, %arg4: memref<1x640xf32, #tpu.memory_space<vmem>>, %arg5: memref<640x16xbf16, #tpu.memory_space<vmem>>, %arg6: memref<16x16xbf16, #tpu.memory_space<vmem>>, %arg7: memref<16x16xbf16, #tpu.memory_space<vmem>>, %arg8: memref<1x16xf32, #tpu.memory_space<vmem>>, %arg9: memref<16x16xbf16, #tpu.memory_space<vmem>>, %arg10: memref<1x16xf32, #tpu.memory_space<vmem>>, %arg11: memref<16x144xbf16, #tpu.memory_space<vmem>>, %arg12: memref<1x144xf32, #tpu.memory_space<vmem>>, %arg13: memref<16x144xbf16, #tpu.memory_space<vmem>>) attributes {dimension_semantics = [#tpu.dimension_semantics<parallel>], iteration_bounds = array<i64: 1>, scalar_prefetch = 0 : i64, scratch_operands = 0 : i64, tpu.core_type = #tpu.core_type<tc>, window_params = [{transform_indices = @transform_0, window_bounds = array<i64: 16, 1>}, {transform_indices = @transform_1, window_bounds = array<i64: 16, 16>}, {transform_indices = @transform_2, window_bounds = array<i64: 16, 16>}, {pipeline_mode = #tpu.pipeline_mode<synchronous>, transform_indices = @transform_3, window_bounds = array<i64: 1, 640>}, {pipeline_mode = #tpu.pipeline_mode<synchronous>, transform_indices = @transform_4, window_bounds = array<i64: 640, 16>}, {pipeline_mode = #tpu.pipeline_mode<synchronous>, transform_indices = @transform_5, window_bounds = array<i64: 16, 16>}, {pipeline_mode = #tpu.pipeline_mode<synchronous>, transform_indices = @transform_6, window_bounds = array<i64: 16, 16>}, {pipeline_mode = #tpu.pipeline_mode<synchronous>, transform_indices = @transform_7, window_bounds = array<i64: 1, 16>}, {pipeline_mode = #tpu.pipeline_mode<synchronous>, transform_indices = @transform_8, window_bounds = array<i64: 16, 16>}, {pipeline_mode = #tpu.pipeline_mode<synchronous>, transform_indices = @transform_9, window_bounds = array<i64: 1, 16>}, {pipeline_mode = #tpu.pipeline_mode<synchronous>, transform_indices = @transform_10, window_bounds = array<i64: 16, 144>}, {pipeline_mode = #tpu.pipeline_mode<synchronous>, transform_indices = @transform_11, window_bounds = array<i64: 1, 144>}, {transform_indices = @transform_12, window_bounds = array<i64: 16, 144>}]} {
    %c0 = arith.constant 0 : index
    %c0_0 = arith.constant 0 : index
    %0 = vector.load %arg1[%c0, %c0_0] : memref<16x1xf32, #tpu.memory_space<vmem>>, vector<16x1xf32>
    %c0_1 = arith.constant 0 : index
    %c0_2 = arith.constant 0 : index
    %1 = vector.load %arg4[%c0_1, %c0_2] : memref<1x640xf32, #tpu.memory_space<vmem>>, vector<1x640xf32>
    %2 = vector.broadcast %0 : vector<16x1xf32> to vector<16x640xf32>
    %3 = vector.broadcast %1 : vector<1x640xf32> to vector<16x640xf32>
    %4 = arith.subf %2, %3 : vector<16x640xf32>
    %5 = arith.mulf %4, %4 : vector<16x640xf32>
    %cst = arith.constant -311.459198 : f32
    %6 = vector.broadcast %cst : f32 to vector<16x640xf32>
    %7 = arith.mulf %6, %5 : vector<16x640xf32>
    %8 = math.exp %7 : vector<16x640xf32>
    %9 = arith.truncf %8 : vector<16x640xf32> to vector<16x640xbf16>
    %c0_3 = arith.constant 0 : index
    %c0_4 = arith.constant 0 : index
    %10 = vector.load %arg5[%c0_3, %c0_4] : memref<640x16xbf16, #tpu.memory_space<vmem>>, vector<640x16xbf16>
    %cst_5 = arith.constant dense<0.000000e+00> : vector<16x16xf32>
    %11 = tpu.matmul %9, %10, %cst_5 {dimension_numbers = #tpu.dot_dimension_numbers<[1], [0], [0], [1], [0, 0, 1, 1], [], []>} : vector<16x640xbf16>, vector<640x16xbf16>, vector<16x16xf32> -> vector<16x16xf32>
    %c0_6 = arith.constant 0 : index
    %c0_7 = arith.constant 0 : index
    %12 = vector.load %arg2[%c0_6, %c0_7] : memref<16x16xf32, #tpu.memory_space<vmem>>, vector<16x16xf32>
    %13 = arith.truncf %12 : vector<16x16xf32> to vector<16x16xbf16>
    %c0_8 = arith.constant 0 : index
    %c0_9 = arith.constant 0 : index
    %14 = vector.load %arg6[%c0_8, %c0_9] : memref<16x16xbf16, #tpu.memory_space<vmem>>, vector<16x16xbf16>
    %cst_10 = arith.constant dense<0.000000e+00> : vector<16x16xf32>
    %15 = tpu.matmul %13, %14, %cst_10 {dimension_numbers = #tpu.dot_dimension_numbers<[1], [0], [0], [1], [0, 0, 1, 1], [], []>} : vector<16x16xbf16>, vector<16x16xbf16>, vector<16x16xf32> -> vector<16x16xf32>
    %16 = arith.addf %11, %15 : vector<16x16xf32>
    %c0_11 = arith.constant 0 : index
    %c0_12 = arith.constant 0 : index
    %17 = vector.load %arg3[%c0_11, %c0_12] : memref<16x16xf32, #tpu.memory_space<vmem>>, vector<16x16xf32>
    %18 = arith.truncf %17 : vector<16x16xf32> to vector<16x16xbf16>
    %c0_13 = arith.constant 0 : index
    %c0_14 = arith.constant 0 : index
    %19 = vector.load %arg7[%c0_13, %c0_14] : memref<16x16xbf16, #tpu.memory_space<vmem>>, vector<16x16xbf16>
    %cst_15 = arith.constant dense<0.000000e+00> : vector<16x16xf32>
    %20 = tpu.matmul %18, %19, %cst_15 {dimension_numbers = #tpu.dot_dimension_numbers<[1], [0], [0], [1], [0, 0, 1, 1], [], []>} : vector<16x16xbf16>, vector<16x16xbf16>, vector<16x16xf32> -> vector<16x16xf32>
    %21 = arith.addf %16, %20 : vector<16x16xf32>
    %c0_16 = arith.constant 0 : index
    %c0_17 = arith.constant 0 : index
    %22 = vector.load %arg8[%c0_16, %c0_17] : memref<1x16xf32, #tpu.memory_space<vmem>>, vector<1x16xf32>
    %23 = vector.broadcast %22 : vector<1x16xf32> to vector<16x16xf32>
    %24 = arith.addf %21, %23 : vector<16x16xf32>
    %25 = arith.negf %24 : vector<16x16xf32>
    %26 = math.exp %25 : vector<16x16xf32>
    %cst_18 = arith.constant 1.000000e+00 : f32
    %27 = vector.broadcast %cst_18 : f32 to vector<16x16xf32>
    %28 = arith.addf %27, %26 : vector<16x16xf32>
    %29 = arith.divf %27, %28 : vector<16x16xf32>
    %30 = arith.mulf %24, %29 : vector<16x16xf32>
    %31 = arith.truncf %30 : vector<16x16xf32> to vector<16x16xbf16>
    %c0_19 = arith.constant 0 : index
    %c0_20 = arith.constant 0 : index
    %32 = vector.load %arg9[%c0_19, %c0_20] : memref<16x16xbf16, #tpu.memory_space<vmem>>, vector<16x16xbf16>
    %cst_21 = arith.constant dense<0.000000e+00> : vector<16x16xf32>
    %33 = tpu.matmul %31, %32, %cst_21 {dimension_numbers = #tpu.dot_dimension_numbers<[1], [0], [0], [1], [0, 0, 1, 1], [], []>} : vector<16x16xbf16>, vector<16x16xbf16>, vector<16x16xf32> -> vector<16x16xf32>
    %c0_22 = arith.constant 0 : index
    %c0_23 = arith.constant 0 : index
    %34 = vector.load %arg10[%c0_22, %c0_23] : memref<1x16xf32, #tpu.memory_space<vmem>>, vector<1x16xf32>
    %35 = vector.broadcast %34 : vector<1x16xf32> to vector<16x16xf32>
    %36 = arith.addf %33, %35 : vector<16x16xf32>
    %37 = arith.negf %36 : vector<16x16xf32>
    %38 = math.exp %37 : vector<16x16xf32>
    %cst_24 = arith.constant 1.000000e+00 : f32
    %39 = vector.broadcast %cst_24 : f32 to vector<16x16xf32>
    %40 = arith.addf %39, %38 : vector<16x16xf32>
    %41 = arith.divf %39, %40 : vector<16x16xf32>
    %42 = arith.mulf %36, %41 : vector<16x16xf32>
    %43 = arith.truncf %42 : vector<16x16xf32> to vector<16x16xbf16>
    %c0_25 = arith.constant 0 : index
    %c0_26 = arith.constant 0 : index
    %44 = vector.load %arg11[%c0_25, %c0_26] : memref<16x144xbf16, #tpu.memory_space<vmem>>, vector<16x144xbf16>
    %cst_27 = arith.constant dense<0.000000e+00> : vector<16x144xf32>
    %45 = tpu.matmul %43, %44, %cst_27 {dimension_numbers = #tpu.dot_dimension_numbers<[1], [0], [0], [1], [0, 0, 1, 1], [], []>} : vector<16x16xbf16>, vector<16x144xbf16>, vector<16x144xf32> -> vector<16x144xf32>
    %c0_28 = arith.constant 0 : index
    %c0_29 = arith.constant 0 : index
    %46 = vector.load %arg12[%c0_28, %c0_29] : memref<1x144xf32, #tpu.memory_space<vmem>>, vector<1x144xf32>
    %47 = vector.broadcast %46 : vector<1x144xf32> to vector<16x144xf32>
    %48 = arith.addf %45, %47 : vector<16x144xf32>
    %49 = arith.truncf %48 : vector<16x144xf32> to vector<16x144xbf16>
    %c0_30 = arith.constant 0 : index
    %c0_31 = arith.constant 0 : index
    %50 = vector.load %arg13[%c0_30, %c0_31] : memref<16x144xbf16, #tpu.memory_space<vmem>>, vector<16x144xbf16>
    tpu.vector_store %arg13[%c0_30, %c0_31], %49 {strides = array<i32>} : memref<16x144xbf16, #tpu.memory_space<vmem>>, vector<16x144xbf16>,
    return
  }
  func.func @transform_0(%arg0: i32) -> (i32, i32) {
    %c0_i32 = arith.constant 0 : i32
    %c0_i32_0 = arith.constant 0 : i32
    return %arg0, %c0_i32 : i32, i32
  }
  func.func @transform_1(%arg0: i32) -> (i32, i32) {
    %c0_i32 = arith.constant 0 : i32
    %c0_i32_0 = arith.constant 0 : i32
    return %arg0, %c0_i32 : i32, i32
  }
  func.func @transform_2(%arg0: i32) -> (i32, i32) {
    %c0_i32 = arith.constant 0 : i32
    %c0_i32_0 = arith.constant 0 : i32
    return %arg0, %c0_i32 : i32, i32
  }
  func.func @transform_3(%arg0: i32) -> (i32, i32) {
    %c0_i32 = arith.constant 0 : i32
    %c0_i32_0 = arith.constant 0 : i32
    %c0_i32_1 = arith.constant 0 : i32
    return %c0_i32, %c0_i32_0 : i32, i32
  }
  func.func @transform_4(%arg0: i32) -> (i32, i32) {
    %c0_i32 = arith.constant 0 : i32
    %c0_i32_0 = arith.constant 0 : i32
    %c0_i32_1 = arith.constant 0 : i32
    return %c0_i32, %c0_i32_0 : i32, i32
  }
  func.func @transform_5(%arg0: i32) -> (i32, i32) {
    %c0_i32 = arith.constant 0 : i32
    %c0_i32_0 = arith.constant 0 : i32
    %c0_i32_1 = arith.constant 0 : i32
    return %c0_i32, %c0_i32_0 : i32, i32
  }
  func.func @transform_6(%arg0: i32) -> (i32, i32) {
    %c0_i32 = arith.constant 0 : i32
    %c0_i32_0 = arith.constant 0 : i32
    %c0_i32_1 = arith.constant 0 : i32
    return %c0_i32, %c0_i32_0 : i32, i32
  }
  func.func @transform_7(%arg0: i32) -> (i32, i32) {
    %c0_i32 = arith.constant 0 : i32
    %c0_i32_0 = arith.constant 0 : i32
    %c0_i32_1 = arith.constant 0 : i32
    return %c0_i32, %c0_i32_0 : i32, i32
  }
  func.func @transform_8(%arg0: i32) -> (i32, i32) {
    %c0_i32 = arith.constant 0 : i32
    %c0_i32_0 = arith.constant 0 : i32
    %c0_i32_1 = arith.constant 0 : i32
    return %c0_i32, %c0_i32_0 : i32, i32
  }
  func.func @transform_9(%arg0: i32) -> (i32, i32) {
    %c0_i32 = arith.constant 0 : i32
    %c0_i32_0 = arith.constant 0 : i32
    %c0_i32_1 = arith.constant 0 : i32
    return %c0_i32, %c0_i32_0 : i32, i32
  }
  func.func @transform_10(%arg0: i32) -> (i32, i32) {
    %c0_i32 = arith.constant 0 : i32
    %c0_i32_0 = arith.constant 0 : i32
    %c0_i32_1 = arith.constant 0 : i32
    return %c0_i32, %c0_i32_0 : i32, i32
  }
  func.func @transform_11(%arg0: i32) -> (i32, i32) {
    %c0_i32 = arith.constant 0 : i32
    %c0_i32_0 = arith.constant 0 : i32
    %c0_i32_1 = arith.constant 0 : i32
    return %c0_i32, %c0_i32_0 : i32, i32
  }
  func.func @transform_12(%arg0: i32) -> (i32, i32) {
    %c0_i32 = arith.constant 0 : i32
    %c0_i32_0 = arith.constant 0 : i32
    return %arg0, %c0_i32 : i32, i32
  }
}

module attributes {stable_mosaic.version = 11 : i64} {
  func.func @_scatter_plain_kernel(%arg0: i32, %arg1: i32, %arg2: memref<1x16xi32, #tpu.memory_space<vmem>>, %arg3: memref<16x144xbf16, #tpu.memory_space<vmem>>, %arg4: memref<8x144xf32, #tpu.memory_space<vmem>>) attributes {dimension_semantics = [#tpu.dimension_semantics<parallel>, #tpu.dimension_semantics<arbitrary>], iteration_bounds = array<i64: 1, 1>, scalar_prefetch = 0 : i64, scratch_operands = 0 : i64, tpu.core_type = #tpu.core_type<tc>, window_params = [{transform_indices = @transform_0, window_bounds = array<i64: 1, 16>}, {transform_indices = @transform_1, window_bounds = array<i64: 16, 144>}, {transform_indices = @transform_2, window_bounds = array<i64: 8, 144>}]} {
    %c0_i32 = arith.constant 0 : i32
    %0 = arith.cmpi eq, %arg1, %c0_i32 : i32
    %1 = arith.extui %0 : i1 to i32
    %c0_i32_0 = arith.constant 0 : i32
    %2 = arith.cmpi ne, %1, %c0_i32_0 : i32
    scf.if %2 {
      %cst_8 = arith.constant 0.000000e+00 : f32
      %18 = vector.broadcast %cst_8 : f32 to vector<8x144xf32>
      %c0_9 = arith.constant 0 : index
      %c0_10 = arith.constant 0 : index
      %19 = vector.load %arg4[%c0_9, %c0_10] : memref<8x144xf32, #tpu.memory_space<vmem>>, vector<8x144xf32>
      tpu.vector_store %arg4[%c0_9, %c0_10], %18 {strides = array<i32>} : memref<8x144xf32, #tpu.memory_space<vmem>>, vector<8x144xf32>,
    } else {
    }
    %c8_i32 = arith.constant 8 : i32
    %3 = arith.muli %arg0, %c8_i32 : i32
    %4 = tpu.iota {dimensions = array<i32: 0>} : vector<8x16xi32>
    %5 = vector.broadcast %3 : i32 to vector<8x16xi32>
    %6 = arith.addi %4, %5 : vector<8x16xi32>
    %c0 = arith.constant 0 : index
    %c0_1 = arith.constant 0 : index
    %7 = vector.load %arg2[%c0, %c0_1] : memref<1x16xi32, #tpu.memory_space<vmem>>, vector<1x16xi32>
    %8 = vector.broadcast %7 : vector<1x16xi32> to vector<8x16xi32>
    %9 = arith.cmpi eq, %6, %8 : vector<8x16xi32>
    %10 = arith.extui %9 : vector<8x16xi1> to vector<8x16xi32>
    %11 = arith.sitofp %10 : vector<8x16xi32> to vector<8x16xf32>
    %12 = arith.truncf %11 : vector<8x16xf32> to vector<8x16xbf16>
    %c0_2 = arith.constant 0 : index
    %c0_3 = arith.constant 0 : index
    %13 = vector.load %arg4[%c0_2, %c0_3] : memref<8x144xf32, #tpu.memory_space<vmem>>, vector<8x144xf32>
    %c0_4 = arith.constant 0 : index
    %c0_5 = arith.constant 0 : index
    %14 = vector.load %arg3[%c0_4, %c0_5] : memref<16x144xbf16, #tpu.memory_space<vmem>>, vector<16x144xbf16>
    %cst = arith.constant dense<0.000000e+00> : vector<8x144xf32>
    %15 = tpu.matmul %12, %14, %cst {dimension_numbers = #tpu.dot_dimension_numbers<[1], [0], [0], [1], [0, 0, 1, 1], [], []>} : vector<8x16xbf16>, vector<16x144xbf16>, vector<8x144xf32> -> vector<8x144xf32>
    %16 = arith.addf %13, %15 : vector<8x144xf32>
    %c0_6 = arith.constant 0 : index
    %c0_7 = arith.constant 0 : index
    %17 = vector.load %arg4[%c0_6, %c0_7] : memref<8x144xf32, #tpu.memory_space<vmem>>, vector<8x144xf32>
    tpu.vector_store %arg4[%c0_6, %c0_7], %16 {strides = array<i32>} : memref<8x144xf32, #tpu.memory_space<vmem>>, vector<8x144xf32>,
    return
  }
  func.func @transform_0(%arg0: i32, %arg1: i32) -> (i32, i32) {
    %c0_i32 = arith.constant 0 : i32
    %c0_i32_0 = arith.constant 0 : i32
    return %c0_i32, %arg1 : i32, i32
  }
  func.func @transform_1(%arg0: i32, %arg1: i32) -> (i32, i32) {
    %c0_i32 = arith.constant 0 : i32
    %c0_i32_0 = arith.constant 0 : i32
    return %arg1, %c0_i32 : i32, i32
  }
  func.func @transform_2(%arg0: i32, %arg1: i32) -> (i32, i32) {
    %c0_i32 = arith.constant 0 : i32
    %c0_i32_0 = arith.constant 0 : i32
    return %arg0, %c0_i32 : i32, i32
  }
}

module attributes {stable_mosaic.version = 11 : i64} {
  func.func @_norm_kernel(%arg0: i32, %arg1: memref<8x144xf32, #tpu.memory_space<vmem>>, %arg2: memref<144x3xf32, #tpu.memory_space<vmem>>, %arg3: memref<3x144xf32, #tpu.memory_space<vmem>>, %arg4: memref<1x3xf32, #tpu.memory_space<vmem>>, %arg5: memref<1x144xf32, #tpu.memory_space<vmem>>, %arg6: memref<1x144xf32, #tpu.memory_space<vmem>>, %arg7: memref<8x144xbf16, #tpu.memory_space<vmem>>) attributes {dimension_semantics = [#tpu.dimension_semantics<parallel>], iteration_bounds = array<i64: 1>, scalar_prefetch = 0 : i64, scratch_operands = 0 : i64, tpu.core_type = #tpu.core_type<tc>, window_params = [{transform_indices = @transform_0, window_bounds = array<i64: 8, 144>}, {pipeline_mode = #tpu.pipeline_mode<synchronous>, transform_indices = @transform_1, window_bounds = array<i64: 144, 3>}, {pipeline_mode = #tpu.pipeline_mode<synchronous>, transform_indices = @transform_2, window_bounds = array<i64: 3, 144>}, {pipeline_mode = #tpu.pipeline_mode<synchronous>, transform_indices = @transform_3, window_bounds = array<i64: 1, 3>}, {pipeline_mode = #tpu.pipeline_mode<synchronous>, transform_indices = @transform_4, window_bounds = array<i64: 1, 144>}, {pipeline_mode = #tpu.pipeline_mode<synchronous>, transform_indices = @transform_5, window_bounds = array<i64: 1, 144>}, {transform_indices = @transform_6, window_bounds = array<i64: 8, 144>}]} {
    %c0 = arith.constant 0 : index
    %c0_0 = arith.constant 0 : index
    %0 = vector.load %arg1[%c0, %c0_0] : memref<8x144xf32, #tpu.memory_space<vmem>>, vector<8x144xf32>
    %c0_1 = arith.constant 0 : index
    %c0_2 = arith.constant 0 : index
    %1 = vector.load %arg2[%c0_1, %c0_2] : memref<144x3xf32, #tpu.memory_space<vmem>>, vector<144x3xf32>
    %c0_3 = arith.constant 0 : index
    %c0_4 = arith.constant 0 : index
    %2 = vector.load %arg3[%c0_3, %c0_4] : memref<3x144xf32, #tpu.memory_space<vmem>>, vector<3x144xf32>
    %c0_5 = arith.constant 0 : index
    %c0_6 = arith.constant 0 : index
    %3 = vector.load %arg4[%c0_5, %c0_6] : memref<1x3xf32, #tpu.memory_space<vmem>>, vector<1x3xf32>
    %c0_7 = arith.constant 0 : index
    %c0_8 = arith.constant 0 : index
    %4 = vector.load %arg5[%c0_7, %c0_8] : memref<1x144xf32, #tpu.memory_space<vmem>>, vector<1x144xf32>
    %c0_9 = arith.constant 0 : index
    %c0_10 = arith.constant 0 : index
    %5 = vector.load %arg6[%c0_9, %c0_10] : memref<1x144xf32, #tpu.memory_space<vmem>>, vector<1x144xf32>
    %cst = arith.constant dense<0.000000e+00> : vector<8x3xf32>
    %6 = tpu.matmul %0, %1, %cst {dimension_numbers = #tpu.dot_dimension_numbers<[1], [0], [0], [1], [0, 0, 1, 1], [], []>} : vector<8x144xf32>, vector<144x3xf32>, vector<8x3xf32> -> vector<8x3xf32>
    %7 = vector.broadcast %3 : vector<1x3xf32> to vector<8x3xf32>
    %8 = arith.mulf %6, %7 : vector<8x3xf32>
    %9 = arith.mulf %0, %0 : vector<8x144xf32>
    %cst_11 = arith.constant dense<0.000000e+00> : vector<8x3xf32>
    %10 = tpu.matmul %9, %1, %cst_11 {dimension_numbers = #tpu.dot_dimension_numbers<[1], [0], [0], [1], [0, 0, 1, 1], [], []>} : vector<8x144xf32>, vector<144x3xf32>, vector<8x3xf32> -> vector<8x3xf32>
    %11 = vector.broadcast %3 : vector<1x3xf32> to vector<8x3xf32>
    %12 = arith.mulf %10, %11 : vector<8x3xf32>
    %13 = tpu.iota {dimensions = array<i32: 1>} : vector<8x3xi32>
    %c0_i32 = arith.constant 0 : i32
    %14 = vector.broadcast %c0_i32 : i32 to vector<8x3xi32>
    %15 = arith.cmpi eq, %13, %14 : vector<8x3xi32>
    %cst_12 = arith.constant 0.000000e+00 : f32
    %16 = vector.broadcast %cst_12 : f32 to vector<8x3xf32>
    %17 = arith.select %15, %8, %16 : vector<8x3xi1>, vector<8x3xf32>
    %18 = arith.mulf %17, %17 : vector<8x3xf32>
    %19 = arith.subf %12, %18 : vector<8x3xf32>
    %cst_13 = arith.constant 9.99999974E-6 : f32
    %20 = vector.broadcast %cst_13 : f32 to vector<8x3xf32>
    %21 = arith.addf %19, %20 : vector<8x3xf32>
    %22 = math.rsqrt %21 : vector<8x3xf32>
    %cst_14 = arith.constant dense<0.000000e+00> : vector<8x144xf32>
    %23 = tpu.matmul %17, %2, %cst_14 {dimension_numbers = #tpu.dot_dimension_numbers<[1], [0], [0], [1], [0, 0, 1, 1], [], []>} : vector<8x3xf32>, vector<3x144xf32>, vector<8x144xf32> -> vector<8x144xf32>
    %cst_15 = arith.constant dense<0.000000e+00> : vector<8x144xf32>
    %24 = tpu.matmul %22, %2, %cst_15 {dimension_numbers = #tpu.dot_dimension_numbers<[1], [0], [0], [1], [0, 0, 1, 1], [], []>} : vector<8x3xf32>, vector<3x144xf32>, vector<8x144xf32> -> vector<8x144xf32>
    %25 = arith.subf %0, %23 : vector<8x144xf32>
    %26 = arith.mulf %25, %24 : vector<8x144xf32>
    %27 = vector.broadcast %4 : vector<1x144xf32> to vector<8x144xf32>
    %28 = arith.mulf %26, %27 : vector<8x144xf32>
    %29 = vector.broadcast %5 : vector<1x144xf32> to vector<8x144xf32>
    %30 = arith.addf %28, %29 : vector<8x144xf32>
    %31 = arith.truncf %30 : vector<8x144xf32> to vector<8x144xbf16>
    %c0_16 = arith.constant 0 : index
    %c0_17 = arith.constant 0 : index
    %32 = vector.load %arg7[%c0_16, %c0_17] : memref<8x144xbf16, #tpu.memory_space<vmem>>, vector<8x144xbf16>
    tpu.vector_store %arg7[%c0_16, %c0_17], %31 {strides = array<i32>} : memref<8x144xbf16, #tpu.memory_space<vmem>>, vector<8x144xbf16>,
    return
  }
  func.func @transform_0(%arg0: i32) -> (i32, i32) {
    %c0_i32 = arith.constant 0 : i32
    %c0_i32_0 = arith.constant 0 : i32
    return %arg0, %c0_i32 : i32, i32
  }
  func.func @transform_1(%arg0: i32) -> (i32, i32) {
    %c0_i32 = arith.constant 0 : i32
    %c0_i32_0 = arith.constant 0 : i32
    %c0_i32_1 = arith.constant 0 : i32
    return %c0_i32, %c0_i32_0 : i32, i32
  }
  func.func @transform_2(%arg0: i32) -> (i32, i32) {
    %c0_i32 = arith.constant 0 : i32
    %c0_i32_0 = arith.constant 0 : i32
    %c0_i32_1 = arith.constant 0 : i32
    return %c0_i32, %c0_i32_0 : i32, i32
  }
  func.func @transform_3(%arg0: i32) -> (i32, i32) {
    %c0_i32 = arith.constant 0 : i32
    %c0_i32_0 = arith.constant 0 : i32
    %c0_i32_1 = arith.constant 0 : i32
    return %c0_i32, %c0_i32_0 : i32, i32
  }
  func.func @transform_4(%arg0: i32) -> (i32, i32) {
    %c0_i32 = arith.constant 0 : i32
    %c0_i32_0 = arith.constant 0 : i32
    %c0_i32_1 = arith.constant 0 : i32
    return %c0_i32, %c0_i32_0 : i32, i32
  }
  func.func @transform_5(%arg0: i32) -> (i32, i32) {
    %c0_i32 = arith.constant 0 : i32
    %c0_i32_0 = arith.constant 0 : i32
    %c0_i32_1 = arith.constant 0 : i32
    return %c0_i32, %c0_i32_0 : i32, i32
  }
  func.func @transform_6(%arg0: i32) -> (i32, i32) {
    %c0_i32 = arith.constant 0 : i32
    %c0_i32_0 = arith.constant 0 : i32
    return %arg0, %c0_i32 : i32, i32
  }
}

module attributes {stable_mosaic.version = 11 : i64} {
  func.func @_edge_attn_kernel(%arg0: i32, %arg1: memref<16x1xf32, #tpu.memory_space<vmem>>, %arg2: memref<16x16xf32, #tpu.memory_space<vmem>>, %arg3: memref<16x16xf32, #tpu.memory_space<vmem>>, %arg4: memref<16x144xbf16, #tpu.memory_space<vmem>>, %arg5: memref<16x144xbf16, #tpu.memory_space<vmem>>, %arg6: memref<1x640xf32, #tpu.memory_space<vmem>>, %arg7: memref<640x16xbf16, #tpu.memory_space<vmem>>, %arg8: memref<16x16xbf16, #tpu.memory_space<vmem>>, %arg9: memref<16x16xbf16, #tpu.memory_space<vmem>>, %arg10: memref<1x16xf32, #tpu.memory_space<vmem>>, %arg11: memref<16x16xbf16, #tpu.memory_space<vmem>>, %arg12: memref<1x16xf32, #tpu.memory_space<vmem>>, %arg13: memref<16x16xbf16, #tpu.memory_space<vmem>>, %arg14: memref<1x16xf32, #tpu.memory_space<vmem>>, %arg15: memref<16x144xbf16, #tpu.memory_space<vmem>>, %arg16: memref<144x144xbf16, #tpu.memory_space<vmem>>, %arg17: memref<144x144xbf16, #tpu.memory_space<vmem>>, %arg18: memref<1x144xf32, #tpu.memory_space<vmem>>, %arg19: memref<144x128xbf16, #tpu.memory_space<vmem>>, %arg20: memref<1x128xf32, #tpu.memory_space<vmem>>, %arg21: memref<16x2xf32, #tpu.memory_space<vmem>>, %arg22: memref<2x128xf32, #tpu.memory_space<vmem>>, %arg23: memref<16x128xbf16, #tpu.memory_space<vmem>>) attributes {dimension_semantics = [#tpu.dimension_semantics<parallel>], iteration_bounds = array<i64: 1>, scalar_prefetch = 0 : i64, scratch_operands = 0 : i64, tpu.core_type = #tpu.core_type<tc>, window_params = [{transform_indices = @transform_0, window_bounds = array<i64: 16, 1>}, {transform_indices = @transform_1, window_bounds = array<i64: 16, 16>}, {transform_indices = @transform_2, window_bounds = array<i64: 16, 16>}, {transform_indices = @transform_3, window_bounds = array<i64: 16, 144>}, {transform_indices = @transform_4, window_bounds = array<i64: 16, 144>}, {pipeline_mode = #tpu.pipeline_mode<synchronous>, transform_indices = @transform_5, window_bounds = array<i64: 1, 640>}, {pipeline_mode = #tpu.pipeline_mode<synchronous>, transform_indices = @transform_6, window_bounds = array<i64: 640, 16>}, {pipeline_mode = #tpu.pipeline_mode<synchronous>, transform_indices = @transform_7, window_bounds = array<i64: 16, 16>}, {pipeline_mode = #tpu.pipeline_mode<synchronous>, transform_indices = @transform_8, window_bounds = array<i64: 16, 16>}, {pipeline_mode = #tpu.pipeline_mode<synchronous>, transform_indices = @transform_9, window_bounds = array<i64: 1, 16>}, {pipeline_mode = #tpu.pipeline_mode<synchronous>, transform_indices = @transform_10, window_bounds = array<i64: 16, 16>}, {pipeline_mode = #tpu.pipeline_mode<synchronous>, transform_indices = @transform_11, window_bounds = array<i64: 1, 16>}, {pipeline_mode = #tpu.pipeline_mode<synchronous>, transform_indices = @transform_12, window_bounds = array<i64: 16, 16>}, {pipeline_mode = #tpu.pipeline_mode<synchronous>, transform_indices = @transform_13, window_bounds = array<i64: 1, 16>}, {pipeline_mode = #tpu.pipeline_mode<synchronous>, transform_indices = @transform_14, window_bounds = array<i64: 16, 144>}, {pipeline_mode = #tpu.pipeline_mode<synchronous>, transform_indices = @transform_15, window_bounds = array<i64: 144, 144>}, {pipeline_mode = #tpu.pipeline_mode<synchronous>, transform_indices = @transform_16, window_bounds = array<i64: 144, 144>}, {pipeline_mode = #tpu.pipeline_mode<synchronous>, transform_indices = @transform_17, window_bounds = array<i64: 1, 144>}, {pipeline_mode = #tpu.pipeline_mode<synchronous>, transform_indices = @transform_18, window_bounds = array<i64: 144, 128>}, {pipeline_mode = #tpu.pipeline_mode<synchronous>, transform_indices = @transform_19, window_bounds = array<i64: 1, 128>}, {pipeline_mode = #tpu.pipeline_mode<synchronous>, transform_indices = @transform_20, window_bounds = array<i64: 16, 2>}, {pipeline_mode = #tpu.pipeline_mode<synchronous>, transform_indices = @transform_21, window_bounds = array<i64: 2, 128>}, {transform_indices = @transform_22, window_bounds = array<i64: 16, 128>}]} {
    %c0 = arith.constant 0 : index
    %c0_0 = arith.constant 0 : index
    %0 = vector.load %arg1[%c0, %c0_0] : memref<16x1xf32, #tpu.memory_space<vmem>>, vector<16x1xf32>
    %c0_1 = arith.constant 0 : index
    %c0_2 = arith.constant 0 : index
    %1 = vector.load %arg6[%c0_1, %c0_2] : memref<1x640xf32, #tpu.memory_space<vmem>>, vector<1x640xf32>
    %2 = vector.broadcast %0 : vector<16x1xf32> to vector<16x640xf32>
    %3 = vector.broadcast %1 : vector<1x640xf32> to vector<16x640xf32>
    %4 = arith.subf %2, %3 : vector<16x640xf32>
    %5 = arith.mulf %4, %4 : vector<16x640xf32>
    %cst = arith.constant -311.459198 : f32
    %6 = vector.broadcast %cst : f32 to vector<16x640xf32>
    %7 = arith.mulf %6, %5 : vector<16x640xf32>
    %8 = math.exp %7 : vector<16x640xf32>
    %9 = arith.truncf %8 : vector<16x640xf32> to vector<16x640xbf16>
    %c0_3 = arith.constant 0 : index
    %c0_4 = arith.constant 0 : index
    %10 = vector.load %arg7[%c0_3, %c0_4] : memref<640x16xbf16, #tpu.memory_space<vmem>>, vector<640x16xbf16>
    %cst_5 = arith.constant dense<0.000000e+00> : vector<16x16xf32>
    %11 = tpu.matmul %9, %10, %cst_5 {dimension_numbers = #tpu.dot_dimension_numbers<[1], [0], [0], [1], [0, 0, 1, 1], [], []>} : vector<16x640xbf16>, vector<640x16xbf16>, vector<16x16xf32> -> vector<16x16xf32>
    %c0_6 = arith.constant 0 : index
    %c0_7 = arith.constant 0 : index
    %12 = vector.load %arg2[%c0_6, %c0_7] : memref<16x16xf32, #tpu.memory_space<vmem>>, vector<16x16xf32>
    %13 = arith.truncf %12 : vector<16x16xf32> to vector<16x16xbf16>
    %c0_8 = arith.constant 0 : index
    %c0_9 = arith.constant 0 : index
    %14 = vector.load %arg8[%c0_8, %c0_9] : memref<16x16xbf16, #tpu.memory_space<vmem>>, vector<16x16xbf16>
    %cst_10 = arith.constant dense<0.000000e+00> : vector<16x16xf32>
    %15 = tpu.matmul %13, %14, %cst_10 {dimension_numbers = #tpu.dot_dimension_numbers<[1], [0], [0], [1], [0, 0, 1, 1], [], []>} : vector<16x16xbf16>, vector<16x16xbf16>, vector<16x16xf32> -> vector<16x16xf32>
    %16 = arith.addf %11, %15 : vector<16x16xf32>
    %c0_11 = arith.constant 0 : index
    %c0_12 = arith.constant 0 : index
    %17 = vector.load %arg3[%c0_11, %c0_12] : memref<16x16xf32, #tpu.memory_space<vmem>>, vector<16x16xf32>
    %18 = arith.truncf %17 : vector<16x16xf32> to vector<16x16xbf16>
    %c0_13 = arith.constant 0 : index
    %c0_14 = arith.constant 0 : index
    %19 = vector.load %arg9[%c0_13, %c0_14] : memref<16x16xbf16, #tpu.memory_space<vmem>>, vector<16x16xbf16>
    %cst_15 = arith.constant dense<0.000000e+00> : vector<16x16xf32>
    %20 = tpu.matmul %18, %19, %cst_15 {dimension_numbers = #tpu.dot_dimension_numbers<[1], [0], [0], [1], [0, 0, 1, 1], [], []>} : vector<16x16xbf16>, vector<16x16xbf16>, vector<16x16xf32> -> vector<16x16xf32>
    %21 = arith.addf %16, %20 : vector<16x16xf32>
    %c0_16 = arith.constant 0 : index
    %c0_17 = arith.constant 0 : index
    %22 = vector.load %arg10[%c0_16, %c0_17] : memref<1x16xf32, #tpu.memory_space<vmem>>, vector<1x16xf32>
    %23 = vector.broadcast %22 : vector<1x16xf32> to vector<16x16xf32>
    %24 = arith.addf %21, %23 : vector<16x16xf32>
    %25 = arith.negf %24 : vector<16x16xf32>
    %26 = math.exp %25 : vector<16x16xf32>
    %cst_18 = arith.constant 1.000000e+00 : f32
    %27 = vector.broadcast %cst_18 : f32 to vector<16x16xf32>
    %28 = arith.addf %27, %26 : vector<16x16xf32>
    %29 = arith.divf %27, %28 : vector<16x16xf32>
    %30 = arith.mulf %24, %29 : vector<16x16xf32>
    %31 = arith.truncf %30 : vector<16x16xf32> to vector<16x16xbf16>
    %c0_19 = arith.constant 0 : index
    %c0_20 = arith.constant 0 : index
    %32 = vector.load %arg11[%c0_19, %c0_20] : memref<16x16xbf16, #tpu.memory_space<vmem>>, vector<16x16xbf16>
    %cst_21 = arith.constant dense<0.000000e+00> : vector<16x16xf32>
    %33 = tpu.matmul %31, %32, %cst_21 {dimension_numbers = #tpu.dot_dimension_numbers<[1], [0], [0], [1], [0, 0, 1, 1], [], []>} : vector<16x16xbf16>, vector<16x16xbf16>, vector<16x16xf32> -> vector<16x16xf32>
    %c0_22 = arith.constant 0 : index
    %c0_23 = arith.constant 0 : index
    %34 = vector.load %arg12[%c0_22, %c0_23] : memref<1x16xf32, #tpu.memory_space<vmem>>, vector<1x16xf32>
    %35 = vector.broadcast %34 : vector<1x16xf32> to vector<16x16xf32>
    %36 = arith.addf %33, %35 : vector<16x16xf32>
    %37 = arith.negf %36 : vector<16x16xf32>
    %38 = math.exp %37 : vector<16x16xf32>
    %cst_24 = arith.constant 1.000000e+00 : f32
    %39 = vector.broadcast %cst_24 : f32 to vector<16x16xf32>
    %40 = arith.addf %39, %38 : vector<16x16xf32>
    %41 = arith.divf %39, %40 : vector<16x16xf32>
    %42 = arith.mulf %36, %41 : vector<16x16xf32>
    %43 = arith.truncf %42 : vector<16x16xf32> to vector<16x16xbf16>
    %c0_25 = arith.constant 0 : index
    %c0_26 = arith.constant 0 : index
    %44 = vector.load %arg13[%c0_25, %c0_26] : memref<16x16xbf16, #tpu.memory_space<vmem>>, vector<16x16xbf16>
    %cst_27 = arith.constant dense<0.000000e+00> : vector<16x16xf32>
    %45 = tpu.matmul %43, %44, %cst_27 {dimension_numbers = #tpu.dot_dimension_numbers<[1], [0], [0], [1], [0, 0, 1, 1], [], []>} : vector<16x16xbf16>, vector<16x16xbf16>, vector<16x16xf32> -> vector<16x16xf32>
    %c0_28 = arith.constant 0 : index
    %c0_29 = arith.constant 0 : index
    %46 = vector.load %arg14[%c0_28, %c0_29] : memref<1x16xf32, #tpu.memory_space<vmem>>, vector<1x16xf32>
    %47 = vector.broadcast %46 : vector<1x16xf32> to vector<16x16xf32>
    %48 = arith.addf %45, %47 : vector<16x16xf32>
    %49 = arith.negf %48 : vector<16x16xf32>
    %50 = math.exp %49 : vector<16x16xf32>
    %cst_30 = arith.constant 1.000000e+00 : f32
    %51 = vector.broadcast %cst_30 : f32 to vector<16x16xf32>
    %52 = arith.addf %51, %50 : vector<16x16xf32>
    %53 = arith.divf %51, %52 : vector<16x16xf32>
    %54 = arith.mulf %48, %53 : vector<16x16xf32>
    %55 = arith.truncf %54 : vector<16x16xf32> to vector<16x16xbf16>
    %c0_31 = arith.constant 0 : index
    %c0_32 = arith.constant 0 : index
    %56 = vector.load %arg15[%c0_31, %c0_32] : memref<16x144xbf16, #tpu.memory_space<vmem>>, vector<16x144xbf16>
    %cst_33 = arith.constant dense<0.000000e+00> : vector<16x144xf32>
    %57 = tpu.matmul %55, %56, %cst_33 {dimension_numbers = #tpu.dot_dimension_numbers<[1], [0], [0], [1], [0, 0, 1, 1], [], []>} : vector<16x16xbf16>, vector<16x144xbf16>, vector<16x144xf32> -> vector<16x144xf32>
    %c0_34 = arith.constant 0 : index
    %c0_35 = arith.constant 0 : index
    %58 = vector.load %arg4[%c0_34, %c0_35] : memref<16x144xbf16, #tpu.memory_space<vmem>>, vector<16x144xbf16>
    %c0_36 = arith.constant 0 : index
    %c0_37 = arith.constant 0 : index
    %59 = vector.load %arg16[%c0_36, %c0_37] : memref<144x144xbf16, #tpu.memory_space<vmem>>, vector<144x144xbf16>
    %cst_38 = arith.constant dense<0.000000e+00> : vector<16x144xf32>
    %60 = tpu.matmul %58, %59, %cst_38 {dimension_numbers = #tpu.dot_dimension_numbers<[1], [0], [0], [1], [0, 0, 1, 1], [], []>} : vector<16x144xbf16>, vector<144x144xbf16>, vector<16x144xf32> -> vector<16x144xf32>
    %c0_39 = arith.constant 0 : index
    %c0_40 = arith.constant 0 : index
    %61 = vector.load %arg5[%c0_39, %c0_40] : memref<16x144xbf16, #tpu.memory_space<vmem>>, vector<16x144xbf16>
    %c0_41 = arith.constant 0 : index
    %c0_42 = arith.constant 0 : index
    %62 = vector.load %arg17[%c0_41, %c0_42] : memref<144x144xbf16, #tpu.memory_space<vmem>>, vector<144x144xbf16>
    %cst_43 = arith.constant dense<0.000000e+00> : vector<16x144xf32>
    %63 = tpu.matmul %61, %62, %cst_43 {dimension_numbers = #tpu.dot_dimension_numbers<[1], [0], [0], [1], [0, 0, 1, 1], [], []>} : vector<16x144xbf16>, vector<144x144xbf16>, vector<16x144xf32> -> vector<16x144xf32>
    %64 = arith.addf %60, %63 : vector<16x144xf32>
    %c0_44 = arith.constant 0 : index
    %c0_45 = arith.constant 0 : index
    %65 = vector.load %arg18[%c0_44, %c0_45] : memref<1x144xf32, #tpu.memory_space<vmem>>, vector<1x144xf32>
    %66 = vector.broadcast %65 : vector<1x144xf32> to vector<16x144xf32>
    %67 = arith.addf %64, %66 : vector<16x144xf32>
    %68 = arith.mulf %67, %57 : vector<16x144xf32>
    %69 = arith.truncf %68 : vector<16x144xf32> to vector<16x144xbf16>
    %c0_46 = arith.constant 0 : index
    %c0_47 = arith.constant 0 : index
    %70 = vector.load %arg19[%c0_46, %c0_47] : memref<144x128xbf16, #tpu.memory_space<vmem>>, vector<144x128xbf16>
    %cst_48 = arith.constant dense<0.000000e+00> : vector<16x128xf32>
    %71 = tpu.matmul %69, %70, %cst_48 {dimension_numbers = #tpu.dot_dimension_numbers<[1], [0], [0], [1], [0, 0, 1, 1], [], []>} : vector<16x144xbf16>, vector<144x128xbf16>, vector<16x128xf32> -> vector<16x128xf32>
    %c0_49 = arith.constant 0 : index
    %c0_50 = arith.constant 0 : index
    %72 = vector.load %arg20[%c0_49, %c0_50] : memref<1x128xf32, #tpu.memory_space<vmem>>, vector<1x128xf32>
    %73 = vector.broadcast %72 : vector<1x128xf32> to vector<16x128xf32>
    %74 = arith.addf %71, %73 : vector<16x128xf32>
    %75 = vector.extract_strided_slice %74 {offsets = [0, 72], sizes = [16, 16], strides = [1, 1]} : vector<16x128xf32> to vector<16x16xf32>
    %76 = arith.negf %75 : vector<16x16xf32>
    %77 = math.exp %76 : vector<16x16xf32>
    %cst_51 = arith.constant 1.000000e+00 : f32
    %78 = vector.broadcast %cst_51 : f32 to vector<16x16xf32>
    %79 = arith.addf %78, %77 : vector<16x16xf32>
    %80 = arith.divf %78, %79 : vector<16x16xf32>
    %81 = arith.mulf %75, %80 : vector<16x16xf32>
    %c0_52 = arith.constant 0 : index
    %c0_53 = arith.constant 0 : index
    %82 = vector.load %arg21[%c0_52, %c0_53] : memref<16x2xf32, #tpu.memory_space<vmem>>, vector<16x2xf32>
    %cst_54 = arith.constant dense<0.000000e+00> : vector<16x2xf32>
    %83 = tpu.matmul %81, %82, %cst_54 {dimension_numbers = #tpu.dot_dimension_numbers<[1], [0], [0], [1], [0, 0, 1, 1], [], []>} : vector<16x16xf32>, vector<16x2xf32>, vector<16x2xf32> -> vector<16x2xf32>
    %cst_55 = arith.constant 0.000000e+00 : f32
    %84 = vector.broadcast %cst_55 : f32 to vector<16x2xf32>
    %85 = arith.cmpf ogt, %83, %84 : vector<16x2xf32>
    %cst_56 = arith.constant 2.000000e-01 : f32
    %86 = vector.broadcast %cst_56 : f32 to vector<16x2xf32>
    %87 = arith.mulf %86, %83 : vector<16x2xf32>
    %88 = arith.select %85, %83, %87 : vector<16x2xi1>, vector<16x2xf32>
    %89 = tpu.iota {dimensions = array<i32: 1>} : vector<16x128xi32>
    %c72_i32 = arith.constant 72 : i32
    %90 = vector.broadcast %c72_i32 : i32 to vector<16x128xi32>
    %91 = arith.cmpi slt, %89, %90 : vector<16x128xi32>
    %cst_57 = arith.constant 0.000000e+00 : f32
    %92 = vector.broadcast %cst_57 : f32 to vector<16x128xf32>
    %93 = arith.select %91, %74, %92 : vector<16x128xi1>, vector<16x128xf32>
    %c0_58 = arith.constant 0 : index
    %c0_59 = arith.constant 0 : index
    %94 = vector.load %arg22[%c0_58, %c0_59] : memref<2x128xf32, #tpu.memory_space<vmem>>, vector<2x128xf32>
    %cst_60 = arith.constant dense<0.000000e+00> : vector<16x128xf32>
    %95 = tpu.matmul %88, %94, %cst_60 {dimension_numbers = #tpu.dot_dimension_numbers<[1], [0], [0], [1], [0, 0, 1, 1], [], []>} : vector<16x2xf32>, vector<2x128xf32>, vector<16x128xf32> -> vector<16x128xf32>
    %96 = arith.addf %93, %95 : vector<16x128xf32>
    %97 = arith.truncf %96 : vector<16x128xf32> to vector<16x128xbf16>
    %c0_61 = arith.constant 0 : index
    %c0_62 = arith.constant 0 : index
    %98 = vector.load %arg23[%c0_61, %c0_62] : memref<16x128xbf16, #tpu.memory_space<vmem>>, vector<16x128xbf16>
    tpu.vector_store %arg23[%c0_61, %c0_62], %97 {strides = array<i32>} : memref<16x128xbf16, #tpu.memory_space<vmem>>, vector<16x128xbf16>,
    return
  }
  func.func @transform_0(%arg0: i32) -> (i32, i32) {
    %c0_i32 = arith.constant 0 : i32
    %c0_i32_0 = arith.constant 0 : i32
    return %arg0, %c0_i32 : i32, i32
  }
  func.func @transform_1(%arg0: i32) -> (i32, i32) {
    %c0_i32 = arith.constant 0 : i32
    %c0_i32_0 = arith.constant 0 : i32
    return %arg0, %c0_i32 : i32, i32
  }
  func.func @transform_2(%arg0: i32) -> (i32, i32) {
    %c0_i32 = arith.constant 0 : i32
    %c0_i32_0 = arith.constant 0 : i32
    return %arg0, %c0_i32 : i32, i32
  }
  func.func @transform_3(%arg0: i32) -> (i32, i32) {
    %c0_i32 = arith.constant 0 : i32
    %c0_i32_0 = arith.constant 0 : i32
    return %arg0, %c0_i32 : i32, i32
  }
  func.func @transform_4(%arg0: i32) -> (i32, i32) {
    %c0_i32 = arith.constant 0 : i32
    %c0_i32_0 = arith.constant 0 : i32
    return %arg0, %c0_i32 : i32, i32
  }
  func.func @transform_5(%arg0: i32) -> (i32, i32) {
    %c0_i32 = arith.constant 0 : i32
    %c0_i32_0 = arith.constant 0 : i32
    %c0_i32_1 = arith.constant 0 : i32
    return %c0_i32, %c0_i32_0 : i32, i32
  }
  func.func @transform_6(%arg0: i32) -> (i32, i32) {
    %c0_i32 = arith.constant 0 : i32
    %c0_i32_0 = arith.constant 0 : i32
    %c0_i32_1 = arith.constant 0 : i32
    return %c0_i32, %c0_i32_0 : i32, i32
  }
  func.func @transform_7(%arg0: i32) -> (i32, i32) {
    %c0_i32 = arith.constant 0 : i32
    %c0_i32_0 = arith.constant 0 : i32
    %c0_i32_1 = arith.constant 0 : i32
    return %c0_i32, %c0_i32_0 : i32, i32
  }
  func.func @transform_8(%arg0: i32) -> (i32, i32) {
    %c0_i32 = arith.constant 0 : i32
    %c0_i32_0 = arith.constant 0 : i32
    %c0_i32_1 = arith.constant 0 : i32
    return %c0_i32, %c0_i32_0 : i32, i32
  }
  func.func @transform_9(%arg0: i32) -> (i32, i32) {
    %c0_i32 = arith.constant 0 : i32
    %c0_i32_0 = arith.constant 0 : i32
    %c0_i32_1 = arith.constant 0 : i32
    return %c0_i32, %c0_i32_0 : i32, i32
  }
  func.func @transform_10(%arg0: i32) -> (i32, i32) {
    %c0_i32 = arith.constant 0 : i32
    %c0_i32_0 = arith.constant 0 : i32
    %c0_i32_1 = arith.constant 0 : i32
    return %c0_i32, %c0_i32_0 : i32, i32
  }
  func.func @transform_11(%arg0: i32) -> (i32, i32) {
    %c0_i32 = arith.constant 0 : i32
    %c0_i32_0 = arith.constant 0 : i32
    %c0_i32_1 = arith.constant 0 : i32
    return %c0_i32, %c0_i32_0 : i32, i32
  }
  func.func @transform_12(%arg0: i32) -> (i32, i32) {
    %c0_i32 = arith.constant 0 : i32
    %c0_i32_0 = arith.constant 0 : i32
    %c0_i32_1 = arith.constant 0 : i32
    return %c0_i32, %c0_i32_0 : i32, i32
  }
  func.func @transform_13(%arg0: i32) -> (i32, i32) {
    %c0_i32 = arith.constant 0 : i32
    %c0_i32_0 = arith.constant 0 : i32
    %c0_i32_1 = arith.constant 0 : i32
    return %c0_i32, %c0_i32_0 : i32, i32
  }
  func.func @transform_14(%arg0: i32) -> (i32, i32) {
    %c0_i32 = arith.constant 0 : i32
    %c0_i32_0 = arith.constant 0 : i32
    %c0_i32_1 = arith.constant 0 : i32
    return %c0_i32, %c0_i32_0 : i32, i32
  }
  func.func @transform_15(%arg0: i32) -> (i32, i32) {
    %c0_i32 = arith.constant 0 : i32
    %c0_i32_0 = arith.constant 0 : i32
    %c0_i32_1 = arith.constant 0 : i32
    return %c0_i32, %c0_i32_0 : i32, i32
  }
  func.func @transform_16(%arg0: i32) -> (i32, i32) {
    %c0_i32 = arith.constant 0 : i32
    %c0_i32_0 = arith.constant 0 : i32
    %c0_i32_1 = arith.constant 0 : i32
    return %c0_i32, %c0_i32_0 : i32, i32
  }
  func.func @transform_17(%arg0: i32) -> (i32, i32) {
    %c0_i32 = arith.constant 0 : i32
    %c0_i32_0 = arith.constant 0 : i32
    %c0_i32_1 = arith.constant 0 : i32
    return %c0_i32, %c0_i32_0 : i32, i32
  }
  func.func @transform_18(%arg0: i32) -> (i32, i32) {
    %c0_i32 = arith.constant 0 : i32
    %c0_i32_0 = arith.constant 0 : i32
    %c0_i32_1 = arith.constant 0 : i32
    return %c0_i32, %c0_i32_0 : i32, i32
  }
  func.func @transform_19(%arg0: i32) -> (i32, i32) {
    %c0_i32 = arith.constant 0 : i32
    %c0_i32_0 = arith.constant 0 : i32
    %c0_i32_1 = arith.constant 0 : i32
    return %c0_i32, %c0_i32_0 : i32, i32
  }
  func.func @transform_20(%arg0: i32) -> (i32, i32) {
    %c0_i32 = arith.constant 0 : i32
    %c0_i32_0 = arith.constant 0 : i32
    %c0_i32_1 = arith.constant 0 : i32
    return %c0_i32, %c0_i32_0 : i32, i32
  }
  func.func @transform_21(%arg0: i32) -> (i32, i32) {
    %c0_i32 = arith.constant 0 : i32
    %c0_i32_0 = arith.constant 0 : i32
    %c0_i32_1 = arith.constant 0 : i32
    return %c0_i32, %c0_i32_0 : i32, i32
  }
  func.func @transform_22(%arg0: i32) -> (i32, i32) {
    %c0_i32 = arith.constant 0 : i32
    %c0_i32_0 = arith.constant 0 : i32
    return %arg0, %c0_i32 : i32, i32
  }
}

module attributes {stable_mosaic.version = 11 : i64} {
  func.func @_scatter_attn_kernel(%arg0: i32, %arg1: i32, %arg2: memref<1x16xi32, #tpu.memory_space<vmem>>, %arg3: memref<1x2xf32, #tpu.memory_space<vmem>>, %arg4: memref<2x128xf32, #tpu.memory_space<vmem>>, %arg5: memref<16x128xbf16, #tpu.memory_space<vmem>>, %arg6: memref<8x128xf32, #tpu.memory_space<vmem>>) attributes {dimension_semantics = [#tpu.dimension_semantics<parallel>, #tpu.dimension_semantics<arbitrary>], iteration_bounds = array<i64: 1, 1>, scalar_prefetch = 0 : i64, scratch_operands = 0 : i64, tpu.core_type = #tpu.core_type<tc>, window_params = [{transform_indices = @transform_0, window_bounds = array<i64: 1, 16>}, {pipeline_mode = #tpu.pipeline_mode<synchronous>, transform_indices = @transform_1, window_bounds = array<i64: 1, 2>}, {pipeline_mode = #tpu.pipeline_mode<synchronous>, transform_indices = @transform_2, window_bounds = array<i64: 2, 128>}, {transform_indices = @transform_3, window_bounds = array<i64: 16, 128>}, {transform_indices = @transform_4, window_bounds = array<i64: 8, 128>}]} {
    %c0_i32 = arith.constant 0 : i32
    %0 = arith.cmpi eq, %arg1, %c0_i32 : i32
    %1 = arith.extui %0 : i1 to i32
    %c0_i32_0 = arith.constant 0 : i32
    %2 = arith.cmpi ne, %1, %c0_i32_0 : i32
    scf.if %2 {
      %cst_14 = arith.constant 0.000000e+00 : f32
      %33 = vector.broadcast %cst_14 : f32 to vector<8x128xf32>
      %c0_15 = arith.constant 0 : index
      %c0_16 = arith.constant 0 : index
      %34 = vector.load %arg6[%c0_15, %c0_16] : memref<8x128xf32, #tpu.memory_space<vmem>>, vector<8x128xf32>
      tpu.vector_store %arg6[%c0_15, %c0_16], %33 {strides = array<i32>} : memref<8x128xf32, #tpu.memory_space<vmem>>, vector<8x128xf32>,
    } else {
    }
    %c0 = arith.constant 0 : index
    %c0_1 = arith.constant 0 : index
    %3 = vector.load %arg5[%c0, %c0_1] : memref<16x128xbf16, #tpu.memory_space<vmem>>, vector<16x128xbf16>
    %4 = arith.extf %3 : vector<16x128xbf16> to vector<16x128xf32>
    %5 = vector.extract_strided_slice %4 {offsets = [0, 72], sizes = [16, 2], strides = [1, 1]} : vector<16x128xf32> to vector<16x2xf32>
    %c0_2 = arith.constant 0 : index
    %c0_3 = arith.constant 0 : index
    %6 = vector.load %arg3[%c0_2, %c0_3] : memref<1x2xf32, #tpu.memory_space<vmem>>, vector<1x2xf32>
    %7 = vector.broadcast %6 : vector<1x2xf32> to vector<16x2xf32>
    %8 = arith.subf %5, %7 : vector<16x2xf32>
    %9 = math.exp %8 : vector<16x2xf32>
    %c0_4 = arith.constant 0 : index
    %c0_5 = arith.constant 0 : index
    %10 = vector.load %arg4[%c0_4, %c0_5] : memref<2x128xf32, #tpu.memory_space<vmem>>, vector<2x128xf32>
    %cst = arith.constant dense<0.000000e+00> : vector<16x128xf32>
    %11 = tpu.matmul %9, %10, %cst {dimension_numbers = #tpu.dot_dimension_numbers<[1], [0], [0], [1], [0, 0, 1, 1], [], []>} : vector<16x2xf32>, vector<2x128xf32>, vector<16x128xf32> -> vector<16x128xf32>
    %12 = tpu.iota {dimensions = array<i32: 1>} : vector<16x128xi32>
    %c72_i32 = arith.constant 72 : i32
    %13 = vector.broadcast %c72_i32 : i32 to vector<16x128xi32>
    %14 = arith.cmpi slt, %12, %13 : vector<16x128xi32>
    %cst_6 = arith.constant 1.000000e+00 : f32
    %15 = vector.broadcast %cst_6 : f32 to vector<16x128xf32>
    %16 = arith.select %14, %4, %15 : vector<16x128xi1>, vector<16x128xf32>
    %17 = arith.mulf %16, %11 : vector<16x128xf32>
    %c8_i32 = arith.constant 8 : i32
    %18 = arith.muli %arg0, %c8_i32 : i32
    %19 = tpu.iota {dimensions = array<i32: 0>} : vector<8x16xi32>
    %20 = vector.broadcast %18 : i32 to vector<8x16xi32>
    %21 = arith.addi %19, %20 : vector<8x16xi32>
    %c0_7 = arith.constant 0 : index
    %c0_8 = arith.constant 0 : index
    %22 = vector.load %arg2[%c0_7, %c0_8] : memref<1x16xi32, #tpu.memory_space<vmem>>, vector<1x16xi32>
    %23 = vector.broadcast %22 : vector<1x16xi32> to vector<8x16xi32>
    %24 = arith.cmpi eq, %21, %23 : vector<8x16xi32>
    %25 = arith.extui %24 : vector<8x16xi1> to vector<8x16xi32>
    %26 = arith.sitofp %25 : vector<8x16xi32> to vector<8x16xf32>
    %27 = arith.truncf %26 : vector<8x16xf32> to vector<8x16xbf16>
    %c0_9 = arith.constant 0 : index
    %c0_10 = arith.constant 0 : index
    %28 = vector.load %arg6[%c0_9, %c0_10] : memref<8x128xf32, #tpu.memory_space<vmem>>, vector<8x128xf32>
    %29 = arith.truncf %17 : vector<16x128xf32> to vector<16x128xbf16>
    %cst_11 = arith.constant dense<0.000000e+00> : vector<8x128xf32>
    %30 = tpu.matmul %27, %29, %cst_11 {dimension_numbers = #tpu.dot_dimension_numbers<[1], [0], [0], [1], [0, 0, 1, 1], [], []>} : vector<8x16xbf16>, vector<16x128xbf16>, vector<8x128xf32> -> vector<8x128xf32>
    %31 = arith.addf %28, %30 : vector<8x128xf32>
    %c0_12 = arith.constant 0 : index
    %c0_13 = arith.constant 0 : index
    %32 = vector.load %arg6[%c0_12, %c0_13] : memref<8x128xf32, #tpu.memory_space<vmem>>, vector<8x128xf32>
    tpu.vector_store %arg6[%c0_12, %c0_13], %31 {strides = array<i32>} : memref<8x128xf32, #tpu.memory_space<vmem>>, vector<8x128xf32>,
    return
  }
  func.func @transform_0(%arg0: i32, %arg1: i32) -> (i32, i32) {
    %c0_i32 = arith.constant 0 : i32
    %c0_i32_0 = arith.constant 0 : i32
    return %c0_i32, %arg1 : i32, i32
  }
  func.func @transform_1(%arg0: i32, %arg1: i32) -> (i32, i32) {
    %c0_i32 = arith.constant 0 : i32
    %c0_i32_0 = arith.constant 0 : i32
    %c0_i32_1 = arith.constant 0 : i32
    return %c0_i32, %c0_i32_0 : i32, i32
  }
  func.func @transform_2(%arg0: i32, %arg1: i32) -> (i32, i32) {
    %c0_i32 = arith.constant 0 : i32
    %c0_i32_0 = arith.constant 0 : i32
    %c0_i32_1 = arith.constant 0 : i32
    return %c0_i32, %c0_i32_0 : i32, i32
  }
  func.func @transform_3(%arg0: i32, %arg1: i32) -> (i32, i32) {
    %c0_i32 = arith.constant 0 : i32
    %c0_i32_0 = arith.constant 0 : i32
    return %arg1, %c0_i32 : i32, i32
  }
  func.func @transform_4(%arg0: i32, %arg1: i32) -> (i32, i32) {
    %c0_i32 = arith.constant 0 : i32
    %c0_i32_0 = arith.constant 0 : i32
    return %arg0, %c0_i32 : i32, i32
  }
}

module attributes {stable_mosaic.version = 11 : i64} {
  func.func @_norm_kernel(%arg0: i32, %arg1: memref<8x144xf32, #tpu.memory_space<vmem>>, %arg2: memref<144x3xf32, #tpu.memory_space<vmem>>, %arg3: memref<3x144xf32, #tpu.memory_space<vmem>>, %arg4: memref<1x3xf32, #tpu.memory_space<vmem>>, %arg5: memref<1x144xf32, #tpu.memory_space<vmem>>, %arg6: memref<1x144xf32, #tpu.memory_space<vmem>>, %arg7: memref<8x144xf32, #tpu.memory_space<vmem>>) attributes {dimension_semantics = [#tpu.dimension_semantics<parallel>], iteration_bounds = array<i64: 1>, scalar_prefetch = 0 : i64, scratch_operands = 0 : i64, tpu.core_type = #tpu.core_type<tc>, window_params = [{transform_indices = @transform_0, window_bounds = array<i64: 8, 144>}, {pipeline_mode = #tpu.pipeline_mode<synchronous>, transform_indices = @transform_1, window_bounds = array<i64: 144, 3>}, {pipeline_mode = #tpu.pipeline_mode<synchronous>, transform_indices = @transform_2, window_bounds = array<i64: 3, 144>}, {pipeline_mode = #tpu.pipeline_mode<synchronous>, transform_indices = @transform_3, window_bounds = array<i64: 1, 3>}, {pipeline_mode = #tpu.pipeline_mode<synchronous>, transform_indices = @transform_4, window_bounds = array<i64: 1, 144>}, {pipeline_mode = #tpu.pipeline_mode<synchronous>, transform_indices = @transform_5, window_bounds = array<i64: 1, 144>}, {transform_indices = @transform_6, window_bounds = array<i64: 8, 144>}]} {
    %c0 = arith.constant 0 : index
    %c0_0 = arith.constant 0 : index
    %0 = vector.load %arg1[%c0, %c0_0] : memref<8x144xf32, #tpu.memory_space<vmem>>, vector<8x144xf32>
    %c0_1 = arith.constant 0 : index
    %c0_2 = arith.constant 0 : index
    %1 = vector.load %arg2[%c0_1, %c0_2] : memref<144x3xf32, #tpu.memory_space<vmem>>, vector<144x3xf32>
    %c0_3 = arith.constant 0 : index
    %c0_4 = arith.constant 0 : index
    %2 = vector.load %arg3[%c0_3, %c0_4] : memref<3x144xf32, #tpu.memory_space<vmem>>, vector<3x144xf32>
    %c0_5 = arith.constant 0 : index
    %c0_6 = arith.constant 0 : index
    %3 = vector.load %arg4[%c0_5, %c0_6] : memref<1x3xf32, #tpu.memory_space<vmem>>, vector<1x3xf32>
    %c0_7 = arith.constant 0 : index
    %c0_8 = arith.constant 0 : index
    %4 = vector.load %arg5[%c0_7, %c0_8] : memref<1x144xf32, #tpu.memory_space<vmem>>, vector<1x144xf32>
    %c0_9 = arith.constant 0 : index
    %c0_10 = arith.constant 0 : index
    %5 = vector.load %arg6[%c0_9, %c0_10] : memref<1x144xf32, #tpu.memory_space<vmem>>, vector<1x144xf32>
    %cst = arith.constant dense<0.000000e+00> : vector<8x3xf32>
    %6 = tpu.matmul %0, %1, %cst {dimension_numbers = #tpu.dot_dimension_numbers<[1], [0], [0], [1], [0, 0, 1, 1], [], []>} : vector<8x144xf32>, vector<144x3xf32>, vector<8x3xf32> -> vector<8x3xf32>
    %7 = vector.broadcast %3 : vector<1x3xf32> to vector<8x3xf32>
    %8 = arith.mulf %6, %7 : vector<8x3xf32>
    %9 = arith.mulf %0, %0 : vector<8x144xf32>
    %cst_11 = arith.constant dense<0.000000e+00> : vector<8x3xf32>
    %10 = tpu.matmul %9, %1, %cst_11 {dimension_numbers = #tpu.dot_dimension_numbers<[1], [0], [0], [1], [0, 0, 1, 1], [], []>} : vector<8x144xf32>, vector<144x3xf32>, vector<8x3xf32> -> vector<8x3xf32>
    %11 = vector.broadcast %3 : vector<1x3xf32> to vector<8x3xf32>
    %12 = arith.mulf %10, %11 : vector<8x3xf32>
    %13 = tpu.iota {dimensions = array<i32: 1>} : vector<8x3xi32>
    %c0_i32 = arith.constant 0 : i32
    %14 = vector.broadcast %c0_i32 : i32 to vector<8x3xi32>
    %15 = arith.cmpi eq, %13, %14 : vector<8x3xi32>
    %cst_12 = arith.constant 0.000000e+00 : f32
    %16 = vector.broadcast %cst_12 : f32 to vector<8x3xf32>
    %17 = arith.select %15, %8, %16 : vector<8x3xi1>, vector<8x3xf32>
    %18 = arith.mulf %17, %17 : vector<8x3xf32>
    %19 = arith.subf %12, %18 : vector<8x3xf32>
    %cst_13 = arith.constant 9.99999974E-6 : f32
    %20 = vector.broadcast %cst_13 : f32 to vector<8x3xf32>
    %21 = arith.addf %19, %20 : vector<8x3xf32>
    %22 = math.rsqrt %21 : vector<8x3xf32>
    %cst_14 = arith.constant dense<0.000000e+00> : vector<8x144xf32>
    %23 = tpu.matmul %17, %2, %cst_14 {dimension_numbers = #tpu.dot_dimension_numbers<[1], [0], [0], [1], [0, 0, 1, 1], [], []>} : vector<8x3xf32>, vector<3x144xf32>, vector<8x144xf32> -> vector<8x144xf32>
    %cst_15 = arith.constant dense<0.000000e+00> : vector<8x144xf32>
    %24 = tpu.matmul %22, %2, %cst_15 {dimension_numbers = #tpu.dot_dimension_numbers<[1], [0], [0], [1], [0, 0, 1, 1], [], []>} : vector<8x3xf32>, vector<3x144xf32>, vector<8x144xf32> -> vector<8x144xf32>
    %25 = arith.subf %0, %23 : vector<8x144xf32>
    %26 = arith.mulf %25, %24 : vector<8x144xf32>
    %27 = vector.broadcast %4 : vector<1x144xf32> to vector<8x144xf32>
    %28 = arith.mulf %26, %27 : vector<8x144xf32>
    %29 = vector.broadcast %5 : vector<1x144xf32> to vector<8x144xf32>
    %30 = arith.addf %28, %29 : vector<8x144xf32>
    %c0_16 = arith.constant 0 : index
    %c0_17 = arith.constant 0 : index
    %31 = vector.load %arg7[%c0_16, %c0_17] : memref<8x144xf32, #tpu.memory_space<vmem>>, vector<8x144xf32>
    tpu.vector_store %arg7[%c0_16, %c0_17], %30 {strides = array<i32>} : memref<8x144xf32, #tpu.memory_space<vmem>>, vector<8x144xf32>,
    return
  }
  func.func @transform_0(%arg0: i32) -> (i32, i32) {
    %c0_i32 = arith.constant 0 : i32
    %c0_i32_0 = arith.constant 0 : i32
    return %arg0, %c0_i32 : i32, i32
  }
  func.func @transform_1(%arg0: i32) -> (i32, i32) {
    %c0_i32 = arith.constant 0 : i32
    %c0_i32_0 = arith.constant 0 : i32
    %c0_i32_1 = arith.constant 0 : i32
    return %c0_i32, %c0_i32_0 : i32, i32
  }
  func.func @transform_2(%arg0: i32) -> (i32, i32) {
    %c0_i32 = arith.constant 0 : i32
    %c0_i32_0 = arith.constant 0 : i32
    %c0_i32_1 = arith.constant 0 : i32
    return %c0_i32, %c0_i32_0 : i32, i32
  }
  func.func @transform_3(%arg0: i32) -> (i32, i32) {
    %c0_i32 = arith.constant 0 : i32
    %c0_i32_0 = arith.constant 0 : i32
    %c0_i32_1 = arith.constant 0 : i32
    return %c0_i32, %c0_i32_0 : i32, i32
  }
  func.func @transform_4(%arg0: i32) -> (i32, i32) {
    %c0_i32 = arith.constant 0 : i32
    %c0_i32_0 = arith.constant 0 : i32
    %c0_i32_1 = arith.constant 0 : i32
    return %c0_i32, %c0_i32_0 : i32, i32
  }
  func.func @transform_5(%arg0: i32) -> (i32, i32) {
    %c0_i32 = arith.constant 0 : i32
    %c0_i32_0 = arith.constant 0 : i32
    %c0_i32_1 = arith.constant 0 : i32
    return %c0_i32, %c0_i32_0 : i32, i32
  }
  func.func @transform_6(%arg0: i32) -> (i32, i32) {
    %c0_i32 = arith.constant 0 : i32
    %c0_i32_0 = arith.constant 0 : i32
    return %arg0, %c0_i32 : i32, i32
  }
}

module attributes {stable_mosaic.version = 11 : i64} {
  func.func @_post_kernel(%arg0: i32, %arg1: memref<8x128xf32, #tpu.memory_space<vmem>>, %arg2: memref<8x144xf32, #tpu.memory_space<vmem>>, %arg3: memref<2x72xf32, #tpu.memory_space<vmem>>, %arg4: memref<72x144xbf16, #tpu.memory_space<vmem>>, %arg5: memref<1x144xf32, #tpu.memory_space<vmem>>, %arg6: memref<144x3xf32, #tpu.memory_space<vmem>>, %arg7: memref<3x144xf32, #tpu.memory_space<vmem>>, %arg8: memref<1x3xf32, #tpu.memory_space<vmem>>, %arg9: memref<1x144xf32, #tpu.memory_space<vmem>>, %arg10: memref<1x144xf32, #tpu.memory_space<vmem>>, %arg11: memref<16x16xbf16, #tpu.memory_space<vmem>>, %arg12: memref<1x16xf32, #tpu.memory_space<vmem>>, %arg13: memref<16x128xbf16, #tpu.memory_space<vmem>>, %arg14: memref<144x144xbf16, #tpu.memory_space<vmem>>, %arg15: memref<1x144xf32, #tpu.memory_space<vmem>>, %arg16: memref<16x144xbf16, #tpu.memory_space<vmem>>, %arg17: memref<128x144xbf16, #tpu.memory_space<vmem>>, %arg18: memref<1x144xf32, #tpu.memory_space<vmem>>, %arg19: memref<8x144xf32, #tpu.memory_space<vmem>>) attributes {dimension_semantics = [#tpu.dimension_semantics<parallel>], iteration_bounds = array<i64: 1>, scalar_prefetch = 0 : i64, scratch_operands = 0 : i64, tpu.core_type = #tpu.core_type<tc>, window_params = [{transform_indices = @transform_0, window_bounds = array<i64: 8, 128>}, {transform_indices = @transform_1, window_bounds = array<i64: 8, 144>}, {pipeline_mode = #tpu.pipeline_mode<synchronous>, transform_indices = @transform_2, window_bounds = array<i64: 2, 72>}, {pipeline_mode = #tpu.pipeline_mode<synchronous>, transform_indices = @transform_3, window_bounds = array<i64: 72, 144>}, {pipeline_mode = #tpu.pipeline_mode<synchronous>, transform_indices = @transform_4, window_bounds = array<i64: 1, 144>}, {pipeline_mode = #tpu.pipeline_mode<synchronous>, transform_indices = @transform_5, window_bounds = array<i64: 144, 3>}, {pipeline_mode = #tpu.pipeline_mode<synchronous>, transform_indices = @transform_6, window_bounds = array<i64: 3, 144>}, {pipeline_mode = #tpu.pipeline_mode<synchronous>, transform_indices = @transform_7, window_bounds = array<i64: 1, 3>}, {pipeline_mode = #tpu.pipeline_mode<synchronous>, transform_indices = @transform_8, window_bounds = array<i64: 1, 144>}, {pipeline_mode = #tpu.pipeline_mode<synchronous>, transform_indices = @transform_9, window_bounds = array<i64: 1, 144>}, {pipeline_mode = #tpu.pipeline_mode<synchronous>, transform_indices = @transform_10, window_bounds = array<i64: 16, 16>}, {pipeline_mode = #tpu.pipeline_mode<synchronous>, transform_indices = @transform_11, window_bounds = array<i64: 1, 16>}, {pipeline_mode = #tpu.pipeline_mode<synchronous>, transform_indices = @transform_12, window_bounds = array<i64: 16, 128>}, {pipeline_mode = #tpu.pipeline_mode<synchronous>, transform_indices = @transform_13, window_bounds = array<i64: 144, 144>}, {pipeline_mode = #tpu.pipeline_mode<synchronous>, transform_indices = @transform_14, window_bounds = array<i64: 1, 144>}, {pipeline_mode = #tpu.pipeline_mode<synchronous>, transform_indices = @transform_15, window_bounds = array<i64: 16, 144>}, {pipeline_mode = #tpu.pipeline_mode<synchronous>, transform_indices = @transform_16, window_bounds = array<i64: 128, 144>}, {pipeline_mode = #tpu.pipeline_mode<synchronous>, transform_indices = @transform_17, window_bounds = array<i64: 1, 144>}, {transform_indices = @transform_18, window_bounds = array<i64: 8, 144>}]} {
    %c0 = arith.constant 0 : index
    %c0_0 = arith.constant 0 : index
    %0 = vector.load %arg1[%c0, %c0_0] : memref<8x128xf32, #tpu.memory_space<vmem>>, vector<8x128xf32>
    %1 = vector.extract_strided_slice %0 {offsets = [0, 0], sizes = [8, 72], strides = [1, 1]} : vector<8x128xf32> to vector<8x72xf32>
    %2 = vector.extract_strided_slice %0 {offsets = [0, 72], sizes = [8, 2], strides = [1, 1]} : vector<8x128xf32> to vector<8x2xf32>
    %c0_1 = arith.constant 0 : index
    %c0_2 = arith.constant 0 : index
    %3 = vector.load %arg3[%c0_1, %c0_2] : memref<2x72xf32, #tpu.memory_space<vmem>>, vector<2x72xf32>
    %cst = arith.constant dense<0.000000e+00> : vector<8x72xf32>
    %4 = tpu.matmul %2, %3, %cst {dimension_numbers = #tpu.dot_dimension_numbers<[1], [0], [0], [1], [0, 0, 1, 1], [], []>} : vector<8x2xf32>, vector<2x72xf32>, vector<8x72xf32> -> vector<8x72xf32>
    %cst_3 = arith.constant 9.99999993E-9 : f32
    %5 = vector.broadcast %cst_3 : f32 to vector<8x72xf32>
    %6 = arith.addf %4, %5 : vector<8x72xf32>
    %7 = tpu.reciprocal %6 {approx = true} : vector<8x72xf32> -> vector<8x72xf32>
    %8 = arith.mulf %1, %7 : vector<8x72xf32>
    %c0_4 = arith.constant 0 : index
    %c0_5 = arith.constant 0 : index
    %9 = vector.load %arg2[%c0_4, %c0_5] : memref<8x144xf32, #tpu.memory_space<vmem>>, vector<8x144xf32>
    %10 = arith.truncf %8 : vector<8x72xf32> to vector<8x72xbf16>
    %c0_6 = arith.constant 0 : index
    %c0_7 = arith.constant 0 : index
    %11 = vector.load %arg4[%c0_6, %c0_7] : memref<72x144xbf16, #tpu.memory_space<vmem>>, vector<72x144xbf16>
    %cst_8 = arith.constant dense<0.000000e+00> : vector<8x144xf32>
    %12 = tpu.matmul %10, %11, %cst_8 {dimension_numbers = #tpu.dot_dimension_numbers<[1], [0], [0], [1], [0, 0, 1, 1], [], []>} : vector<8x72xbf16>, vector<72x144xbf16>, vector<8x144xf32> -> vector<8x144xf32>
    %13 = arith.addf %9, %12 : vector<8x144xf32>
    %c0_9 = arith.constant 0 : index
    %c0_10 = arith.constant 0 : index
    %14 = vector.load %arg5[%c0_9, %c0_10] : memref<1x144xf32, #tpu.memory_space<vmem>>, vector<1x144xf32>
    %15 = vector.broadcast %14 : vector<1x144xf32> to vector<8x144xf32>
    %16 = arith.addf %13, %15 : vector<8x144xf32>
    %c0_11 = arith.constant 0 : index
    %c0_12 = arith.constant 0 : index
    %17 = vector.load %arg6[%c0_11, %c0_12] : memref<144x3xf32, #tpu.memory_space<vmem>>, vector<144x3xf32>
    %c0_13 = arith.constant 0 : index
    %c0_14 = arith.constant 0 : index
    %18 = vector.load %arg7[%c0_13, %c0_14] : memref<3x144xf32, #tpu.memory_space<vmem>>, vector<3x144xf32>
    %c0_15 = arith.constant 0 : index
    %c0_16 = arith.constant 0 : index
    %19 = vector.load %arg8[%c0_15, %c0_16] : memref<1x3xf32, #tpu.memory_space<vmem>>, vector<1x3xf32>
    %c0_17 = arith.constant 0 : index
    %c0_18 = arith.constant 0 : index
    %20 = vector.load %arg9[%c0_17, %c0_18] : memref<1x144xf32, #tpu.memory_space<vmem>>, vector<1x144xf32>
    %c0_19 = arith.constant 0 : index
    %c0_20 = arith.constant 0 : index
    %21 = vector.load %arg10[%c0_19, %c0_20] : memref<1x144xf32, #tpu.memory_space<vmem>>, vector<1x144xf32>
    %cst_21 = arith.constant dense<0.000000e+00> : vector<8x3xf32>
    %22 = tpu.matmul %16, %17, %cst_21 {dimension_numbers = #tpu.dot_dimension_numbers<[1], [0], [0], [1], [0, 0, 1, 1], [], []>} : vector<8x144xf32>, vector<144x3xf32>, vector<8x3xf32> -> vector<8x3xf32>
    %23 = vector.broadcast %19 : vector<1x3xf32> to vector<8x3xf32>
    %24 = arith.mulf %22, %23 : vector<8x3xf32>
    %25 = arith.mulf %16, %16 : vector<8x144xf32>
    %cst_22 = arith.constant dense<0.000000e+00> : vector<8x3xf32>
    %26 = tpu.matmul %25, %17, %cst_22 {dimension_numbers = #tpu.dot_dimension_numbers<[1], [0], [0], [1], [0, 0, 1, 1], [], []>} : vector<8x144xf32>, vector<144x3xf32>, vector<8x3xf32> -> vector<8x3xf32>
    %27 = vector.broadcast %19 : vector<1x3xf32> to vector<8x3xf32>
    %28 = arith.mulf %26, %27 : vector<8x3xf32>
    %29 = tpu.iota {dimensions = array<i32: 1>} : vector<8x3xi32>
    %c0_i32 = arith.constant 0 : i32
    %30 = vector.broadcast %c0_i32 : i32 to vector<8x3xi32>
    %31 = arith.cmpi eq, %29, %30 : vector<8x3xi32>
    %cst_23 = arith.constant 0.000000e+00 : f32
    %32 = vector.broadcast %cst_23 : f32 to vector<8x3xf32>
    %33 = arith.select %31, %24, %32 : vector<8x3xi1>, vector<8x3xf32>
    %34 = arith.mulf %33, %33 : vector<8x3xf32>
    %35 = arith.subf %28, %34 : vector<8x3xf32>
    %cst_24 = arith.constant 9.99999974E-6 : f32
    %36 = vector.broadcast %cst_24 : f32 to vector<8x3xf32>
    %37 = arith.addf %35, %36 : vector<8x3xf32>
    %38 = math.rsqrt %37 : vector<8x3xf32>
    %cst_25 = arith.constant dense<0.000000e+00> : vector<8x144xf32>
    %39 = tpu.matmul %33, %18, %cst_25 {dimension_numbers = #tpu.dot_dimension_numbers<[1], [0], [0], [1], [0, 0, 1, 1], [], []>} : vector<8x3xf32>, vector<3x144xf32>, vector<8x144xf32> -> vector<8x144xf32>
    %cst_26 = arith.constant dense<0.000000e+00> : vector<8x144xf32>
    %40 = tpu.matmul %38, %18, %cst_26 {dimension_numbers = #tpu.dot_dimension_numbers<[1], [0], [0], [1], [0, 0, 1, 1], [], []>} : vector<8x3xf32>, vector<3x144xf32>, vector<8x144xf32> -> vector<8x144xf32>
    %41 = arith.subf %16, %39 : vector<8x144xf32>
    %42 = arith.mulf %41, %40 : vector<8x144xf32>
    %43 = vector.broadcast %20 : vector<1x144xf32> to vector<8x144xf32>
    %44 = arith.mulf %42, %43 : vector<8x144xf32>
    %45 = vector.broadcast %21 : vector<1x144xf32> to vector<8x144xf32>
    %46 = arith.addf %44, %45 : vector<8x144xf32>
    %47 = vector.extract_strided_slice %46 {offsets = [0, 0], sizes = [8, 16], strides = [1, 1]} : vector<8x144xf32> to vector<8x16xf32>
    %48 = arith.truncf %47 : vector<8x16xf32> to vector<8x16xbf16>
    %c0_27 = arith.constant 0 : index
    %c0_28 = arith.constant 0 : index
    %49 = vector.load %arg11[%c0_27, %c0_28] : memref<16x16xbf16, #tpu.memory_space<vmem>>, vector<16x16xbf16>
    %cst_29 = arith.constant dense<0.000000e+00> : vector<8x16xf32>
    %50 = tpu.matmul %48, %49, %cst_29 {dimension_numbers = #tpu.dot_dimension_numbers<[1], [0], [0], [1], [0, 0, 1, 1], [], []>} : vector<8x16xbf16>, vector<16x16xbf16>, vector<8x16xf32> -> vector<8x16xf32>
    %c0_30 = arith.constant 0 : index
    %c0_31 = arith.constant 0 : index
    %51 = vector.load %arg12[%c0_30, %c0_31] : memref<1x16xf32, #tpu.memory_space<vmem>>, vector<1x16xf32>
    %52 = vector.broadcast %51 : vector<1x16xf32> to vector<8x16xf32>
    %53 = arith.addf %50, %52 : vector<8x16xf32>
    %54 = arith.negf %53 : vector<8x16xf32>
    %55 = math.exp %54 : vector<8x16xf32>
    %cst_32 = arith.constant 1.000000e+00 : f32
    %56 = vector.broadcast %cst_32 : f32 to vector<8x16xf32>
    %57 = arith.addf %56, %55 : vector<8x16xf32>
    %58 = arith.divf %56, %57 : vector<8x16xf32>
    %59 = arith.truncf %46 : vector<8x144xf32> to vector<8x144xbf16>
    %c0_33 = arith.constant 0 : index
    %c0_34 = arith.constant 0 : index
    %60 = vector.load %arg14[%c0_33, %c0_34] : memref<144x144xbf16, #tpu.memory_space<vmem>>, vector<144x144xbf16>
    %cst_35 = arith.constant dense<0.000000e+00> : vector<8x144xf32>
    %61 = tpu.matmul %59, %60, %cst_35 {dimension_numbers = #tpu.dot_dimension_numbers<[1], [0], [0], [1], [0, 0, 1, 1], [], []>} : vector<8x144xbf16>, vector<144x144xbf16>, vector<8x144xf32> -> vector<8x144xf32>
    %c0_36 = arith.constant 0 : index
    %c0_37 = arith.constant 0 : index
    %62 = vector.load %arg15[%c0_36, %c0_37] : memref<1x144xf32, #tpu.memory_space<vmem>>, vector<1x144xf32>
    %63 = vector.broadcast %62 : vector<1x144xf32> to vector<8x144xf32>
    %64 = arith.addf %61, %63 : vector<8x144xf32>
    %65 = vector.extract_strided_slice %64 {offsets = [0, 0], sizes = [8, 16], strides = [1, 1]} : vector<8x144xf32> to vector<8x16xf32>
    %66 = arith.negf %65 : vector<8x16xf32>
    %67 = math.exp %66 : vector<8x16xf32>
    %cst_38 = arith.constant 1.000000e+00 : f32
    %68 = vector.broadcast %cst_38 : f32 to vector<8x16xf32>
    %69 = arith.addf %68, %67 : vector<8x16xf32>
    %70 = arith.divf %68, %69 : vector<8x16xf32>
    %71 = arith.mulf %65, %70 : vector<8x16xf32>
    %72 = arith.truncf %58 : vector<8x16xf32> to vector<8x16xbf16>
    %c0_39 = arith.constant 0 : index
    %c0_40 = arith.constant 0 : index
    %73 = vector.load %arg13[%c0_39, %c0_40] : memref<16x128xbf16, #tpu.memory_space<vmem>>, vector<16x128xbf16>
    %cst_41 = arith.constant dense<0.000000e+00> : vector<8x128xf32>
    %74 = tpu.matmul %72, %73, %cst_41 {dimension_numbers = #tpu.dot_dimension_numbers<[1], [0], [0], [1], [0, 0, 1, 1], [], []>} : vector<8x16xbf16>, vector<16x128xbf16>, vector<8x128xf32> -> vector<8x128xf32>
    %75 = vector.extract_strided_slice %64 {offsets = [0, 16], sizes = [8, 128], strides = [1, 1]} : vector<8x144xf32> to vector<8x128xf32>
    %76 = arith.mulf %75, %74 : vector<8x128xf32>
    %77 = arith.truncf %71 : vector<8x16xf32> to vector<8x16xbf16>
    %c0_42 = arith.constant 0 : index
    %c0_43 = arith.constant 0 : index
    %78 = vector.load %arg16[%c0_42, %c0_43] : memref<16x144xbf16, #tpu.memory_space<vmem>>, vector<16x144xbf16>
    %cst_44 = arith.constant dense<0.000000e+00> : vector<8x144xf32>
    %79 = tpu.matmul %77, %78, %cst_44 {dimension_numbers = #tpu.dot_dimension_numbers<[1], [0], [0], [1], [0, 0, 1, 1], [], []>} : vector<8x16xbf16>, vector<16x144xbf16>, vector<8x144xf32> -> vector<8x144xf32>
    %80 = arith.truncf %76 : vector<8x128xf32> to vector<8x128xbf16>
    %c0_45 = arith.constant 0 : index
    %c0_46 = arith.constant 0 : index
    %81 = vector.load %arg17[%c0_45, %c0_46] : memref<128x144xbf16, #tpu.memory_space<vmem>>, vector<128x144xbf16>
    %cst_47 = arith.constant dense<0.000000e+00> : vector<8x144xf32>
    %82 = tpu.matmul %80, %81, %cst_47 {dimension_numbers = #tpu.dot_dimension_numbers<[1], [0], [0], [1], [0, 0, 1, 1], [], []>} : vector<8x128xbf16>, vector<128x144xbf16>, vector<8x144xf32> -> vector<8x144xf32>
    %83 = arith.addf %79, %82 : vector<8x144xf32>
    %84 = arith.addf %16, %83 : vector<8x144xf32>
    %c0_48 = arith.constant 0 : index
    %c0_49 = arith.constant 0 : index
    %85 = vector.load %arg18[%c0_48, %c0_49] : memref<1x144xf32, #tpu.memory_space<vmem>>, vector<1x144xf32>
    %86 = vector.broadcast %85 : vector<1x144xf32> to vector<8x144xf32>
    %87 = arith.addf %84, %86 : vector<8x144xf32>
    %c0_50 = arith.constant 0 : index
    %c0_51 = arith.constant 0 : index
    %88 = vector.load %arg19[%c0_50, %c0_51] : memref<8x144xf32, #tpu.memory_space<vmem>>, vector<8x144xf32>
    tpu.vector_store %arg19[%c0_50, %c0_51], %87 {strides = array<i32>} : memref<8x144xf32, #tpu.memory_space<vmem>>, vector<8x144xf32>,
    return
  }
  func.func @transform_0(%arg0: i32) -> (i32, i32) {
    %c0_i32 = arith.constant 0 : i32
    %c0_i32_0 = arith.constant 0 : i32
    return %arg0, %c0_i32 : i32, i32
  }
  func.func @transform_1(%arg0: i32) -> (i32, i32) {
    %c0_i32 = arith.constant 0 : i32
    %c0_i32_0 = arith.constant 0 : i32
    return %arg0, %c0_i32 : i32, i32
  }
  func.func @transform_2(%arg0: i32) -> (i32, i32) {
    %c0_i32 = arith.constant 0 : i32
    %c0_i32_0 = arith.constant 0 : i32
    %c0_i32_1 = arith.constant 0 : i32
    return %c0_i32, %c0_i32_0 : i32, i32
  }
  func.func @transform_3(%arg0: i32) -> (i32, i32) {
    %c0_i32 = arith.constant 0 : i32
    %c0_i32_0 = arith.constant 0 : i32
    %c0_i32_1 = arith.constant 0 : i32
    return %c0_i32, %c0_i32_0 : i32, i32
  }
  func.func @transform_4(%arg0: i32) -> (i32, i32) {
    %c0_i32 = arith.constant 0 : i32
    %c0_i32_0 = arith.constant 0 : i32
    %c0_i32_1 = arith.constant 0 : i32
    return %c0_i32, %c0_i32_0 : i32, i32
  }
  func.func @transform_5(%arg0: i32) -> (i32, i32) {
    %c0_i32 = arith.constant 0 : i32
    %c0_i32_0 = arith.constant 0 : i32
    %c0_i32_1 = arith.constant 0 : i32
    return %c0_i32, %c0_i32_0 : i32, i32
  }
  func.func @transform_6(%arg0: i32) -> (i32, i32) {
    %c0_i32 = arith.constant 0 : i32
    %c0_i32_0 = arith.constant 0 : i32
    %c0_i32_1 = arith.constant 0 : i32
    return %c0_i32, %c0_i32_0 : i32, i32
  }
  func.func @transform_7(%arg0: i32) -> (i32, i32) {
    %c0_i32 = arith.constant 0 : i32
    %c0_i32_0 = arith.constant 0 : i32
    %c0_i32_1 = arith.constant 0 : i32
    return %c0_i32, %c0_i32_0 : i32, i32
  }
  func.func @transform_8(%arg0: i32) -> (i32, i32) {
    %c0_i32 = arith.constant 0 : i32
    %c0_i32_0 = arith.constant 0 : i32
    %c0_i32_1 = arith.constant 0 : i32
    return %c0_i32, %c0_i32_0 : i32, i32
  }
  func.func @transform_9(%arg0: i32) -> (i32, i32) {
    %c0_i32 = arith.constant 0 : i32
    %c0_i32_0 = arith.constant 0 : i32
    %c0_i32_1 = arith.constant 0 : i32
    return %c0_i32, %c0_i32_0 : i32, i32
  }
  func.func @transform_10(%arg0: i32) -> (i32, i32) {
    %c0_i32 = arith.constant 0 : i32
    %c0_i32_0 = arith.constant 0 : i32
    %c0_i32_1 = arith.constant 0 : i32
    return %c0_i32, %c0_i32_0 : i32, i32
  }
  func.func @transform_11(%arg0: i32) -> (i32, i32) {
    %c0_i32 = arith.constant 0 : i32
    %c0_i32_0 = arith.constant 0 : i32
    %c0_i32_1 = arith.constant 0 : i32
    return %c0_i32, %c0_i32_0 : i32, i32
  }
  func.func @transform_12(%arg0: i32) -> (i32, i32) {
    %c0_i32 = arith.constant 0 : i32
    %c0_i32_0 = arith.constant 0 : i32
    %c0_i32_1 = arith.constant 0 : i32
    return %c0_i32, %c0_i32_0 : i32, i32
  }
  func.func @transform_13(%arg0: i32) -> (i32, i32) {
    %c0_i32 = arith.constant 0 : i32
    %c0_i32_0 = arith.constant 0 : i32
    %c0_i32_1 = arith.constant 0 : i32
    return %c0_i32, %c0_i32_0 : i32, i32
  }
  func.func @transform_14(%arg0: i32) -> (i32, i32) {
    %c0_i32 = arith.constant 0 : i32
    %c0_i32_0 = arith.constant 0 : i32
    %c0_i32_1 = arith.constant 0 : i32
    return %c0_i32, %c0_i32_0 : i32, i32
  }
  func.func @transform_15(%arg0: i32) -> (i32, i32) {
    %c0_i32 = arith.constant 0 : i32
    %c0_i32_0 = arith.constant 0 : i32
    %c0_i32_1 = arith.constant 0 : i32
    return %c0_i32, %c0_i32_0 : i32, i32
  }
  func.func @transform_16(%arg0: i32) -> (i32, i32) {
    %c0_i32 = arith.constant 0 : i32
    %c0_i32_0 = arith.constant 0 : i32
    %c0_i32_1 = arith.constant 0 : i32
    return %c0_i32, %c0_i32_0 : i32, i32
  }
  func.func @transform_17(%arg0: i32) -> (i32, i32) {
    %c0_i32 = arith.constant 0 : i32
    %c0_i32_0 = arith.constant 0 : i32
    %c0_i32_1 = arith.constant 0 : i32
    return %c0_i32, %c0_i32_0 : i32, i32
  }
  func.func @transform_18(%arg0: i32) -> (i32, i32) {
    %c0_i32 = arith.constant 0 : i32
    %c0_i32_0 = arith.constant 0 : i32
    return %arg0, %c0_i32 : i32, i32
  }
}

</mosaic_0001>

<bundles_post_ra>
// kernel: equiformer_v2_backbone_forward.12
= control target key start
LH: loop header
LB: loop body
LE: loop exit
PB: predicated region body
PF: predicated region fallthrough
CT: control target
= control target key end

     0   :  { %vm17_vm0 = vcmask 130048   ;;  %v20_v0 = vlaneseq  ;;  %v110_v2 = vmov 0   ;;  %v111_v3 = vmov 0.0   ;;  %s151_s1 = inlined_call_operand.vmem [shape: bf16[16,144], index: 1, kind: input, shape index: {}]   ;;  %s152_s0 = inlined_call_operand.vmem [shape: s32[1,16], index: 0, kind: input, shape index: {}]   ;;  %s153_s2 = inlined_call_operand.vmem [shape: f32[8,144], index: 2, kind: output, shape index: {}]  }
   0x1   :  { %v107_v1 = vld [vmem:[%s151_s1 + $0x4] ss:$8 sps:$4 sm:$0xff]   ;;  %83 = vmatprep.mubr.bf16.mxu0 %v110_v2  ;;  %18 = vst.msk [vmem:[%s153_s2 + $0x8] sm:$0xff] %vm17_vm0, %v111_v3  ;;  %v109_v4 = vld [vmem:[%s151_s1] ss:$8 sps:$4 sm:$0xff]  }
   0x2   :  { %v21_v5 = vshrl.u32 %v20_v0, 7  ;;  %v100_v6 = vld [vmem:[%s152_s0] ss:$0 sm:$0xff]  ;;  %65 = vmatprep.subr.bf16.mxu0 %v107_v1 }
   0x3   :  { %66 = vmatpush1.bf16.msra.mxu0 %v109_v4 }
   0x4   :  { %vm29_vm1 = vcmp.eq.s32.totalorder %v21_v5, %v100_v6 }
   0x5   :  { %v101_v7 = vsel %vm29_vm1, 1.0, %v111_v3 }
   0x6   :  { %v32_v8 = vpack.c.bf16 %v101_v7, %v101_v7 }
   0x8   :  { %104 = vmatmul.mubr.msk.bf16.vlgmr.msra.gmra.mxu0 %vm17_vm0, %v32_v8  ;;  %v34_v10 = vld [vmem:[%s153_s2 + $0x8] sm:$0xff] }
  0xc8   :  { %v85_v9 = vpop.f32.mrf.mxu0 }
  0xc9   :  { %94 = vst [vmem:[%s153_s2] sm:$0xff] %v85_v9 }
  0xca   :  { %v87_v11 = vpop.f32.mrf.mxu0 }
  0xcb   :  { %v93_v12 = vadd.f32 %v87_v11, %v34_v10 }
  0xcc   :  { %v89_v13 = vpop.f32.mrf.mxu0 }
  0xcd   :  { %95 = vst.msk [vmem:[%s153_s2 + $0x8] sm:$0xff] %vm17_vm0, %v93_v12 }
  0xce   :  { %v90_v14 = vpop.f32.mrf.mxu0 }

// kernel: equiformer_v2_backbone_forward.13
= control target key start
LH: loop header
LB: loop body
LE: loop exit
PB: predicated region body
PF: predicated region fallthrough
CT: control target
= control target key end

     0   :  { %v429_v0 = vmov 0.0   ;;  %vm47_vm0 = vcmask 130048   ;;  %vm218_vm1 = vcmask 1042432   ;;  %v204_v25 = vlaneseq  ;;  %s584_s1 = inlined_call_operand.vmem [shape: f32[144,3], index: 1, kind: input, shape index: {}]   ;;  %s585_s0 = inlined_call_operand.vmem [shape: f32[8,144], index: 0, kind: input, shape index: {}]   ;;  %s586_s2 = inlined_call_operand.vmem [shape: f32[3,144], index: 2, kind: input, shape index: {}]   ;;  %s587_s3 = inlined_call_operand.vmem [shape: f32[1,3], index: 3, kind: input, shape index: {}]   ;;  %s588_s4 = inlined_call_operand.vmem [shape: f32[1,144], index: 4, kind: input, shape index: {}]   ;;  %s589_s5 = inlined_call_operand.vmem [shape: f32[1,144], index: 5, kind: input, shape index: {}]   ;;  %s590_s6 = inlined_call_operand.vmem [shape: bf16[8,144], index: 6, kind: output, shape index: {}]  }
   0x1   :  { %51 = vmatprep.subr.mxu0 %v429_v0  ;;  %v40_v1 = vld [vmem:[%s584_s1 + $0x78] sm:$0xff]  ;;  %133 = vmatprep.subr.mxu1 %v429_v0  ;;  %v39_v2 = vld [vmem:[%s584_s1 + $0x70] sm:$0xff]  ;;  %v38_v3 = vld [vmem:[%s584_s1 + $0x68] sm:$0xff]  ;;  %vm214_vm3 = vcmask 23552   ;;  %vm406_vm4 = vcmask 1043456   ;;  %vm407_vm5 = vcmask 130052  }
   0x2   :  { %52 = vmatpush1.msra.mxu0 %v40_v1  ;;  %134 = vmatpush1.msra.mxu1 %v40_v1  ;;  %v37_v4 = vld [vmem:[%s584_s1 + $0x60] sm:$0xff]  ;;  %v36_v5 = vld [vmem:[%s584_s1 + $0x58] sm:$0xff]  ;;  %v35_v6 = vld [vmem:[%s584_s1 + $0x50] sm:$0xff]  ;;  %v205_v26 = vand.u32 127, %v204_v25  ;;  %v374_v39 = vshrl.u32 %v204_v25, 7 }
   0x3   :  { %53 = vmatprep.subr.mxu0 %v429_v0  ;;  %135 = vmatprep.subr.mxu1 %v429_v0  ;;  %v34_v7 = vld [vmem:[%s584_s1 + $0x48] sm:$0xff]  ;;  %v33_v8 = vld [vmem:[%s584_s1 + $0x40] sm:$0xff]  ;;  %v32_v9 = vld [vmem:[%s584_s1 + $0x38] sm:$0xff] }
   0x4   :  { %54 = vmatpush1.msra.mxu0 %v39_v2  ;;  %136 = vmatpush1.msra.mxu1 %v39_v2  ;;  %v31_v10 = vld [vmem:[%s584_s1 + $0x30] sm:$0xff]  ;;  %v30_v11 = vld [vmem:[%s584_s1 + $0x28] sm:$0xff]  ;;  %v29_v12 = vld [vmem:[%s584_s1 + $0x20] sm:$0xff]  ;;  %vm206_vm2 = vcmp.eq.s32.totalorder %v205_v26, 0  ;;  %v375_v41 = vsub.s32 0, %v374_v39  ;;  %v379_v43 = vsub.s32 1, %v374_v39 }
   0x5   :  { %55 = vmatprep.subr.mxu0 %v429_v0  ;;  %137 = vmatprep.subr.mxu1 %v429_v0  ;;  %v28_v13 = vld [vmem:[%s584_s1 + $0x18] sm:$0xff]  ;;  %v27_v14 = vld [vmem:[%s584_s1 + $0x10] sm:$0xff]  ;;  %v26_v15 = vld [vmem:[%s584_s1 + $0x8] sm:$0xff] }
   0x6   :  { %56 = vmatpush1.msra.mxu0 %v38_v3  ;;  %138 = vmatpush1.msra.mxu1 %v38_v3  ;;  %v25_v16 = vld [vmem:[%s584_s1] sm:$0xff]  ;;  %v42_v17 = vld [vmem:[%s584_s1 + $0x88] sm:$0xff]  ;;  %vm408_vm6 = vmor %vm407_vm5, %vm406_vm4 }
   0x7   :  { %57 = vmatprep.subr.mxu0 %v429_v0  ;;  %139 = vmatprep.subr.mxu1 %v429_v0  ;;  %v551_v18 = vld [vmem:[%s585_s0 + $0x8] sm:$0xff]  ;;  %v23_v19 = vld [vmem:[%s585_s0] sm:$0xff] }
   0x8   :  { %58 = vmatpush1.msra.mxu0 %v37_v4  ;;  %140 = vmatpush1.msra.mxu1 %v37_v4  ;;  %v41_v20 = vld [vmem:[%s584_s1 + $0x80] sm:$0xff]  ;;  %v129_v21 = vmul.f32 %v551_v18, %v551_v18  ;;  %v128_v22 = vmul.f32 %v23_v19, %v23_v19 }
   0x9   :  { %59 = vmatprep.subr.mxu0 %v429_v0  ;;  %141 = vmatprep.subr.mxu1 %v429_v0  ;;  %v43_v23 = vld [vmem:[%s586_s2] sm:$0x77] }
   0xa   :  { %60 = vmatpush1.msra.mxu0 %v36_v5  ;;  %142 = vmatpush1.msra.mxu1 %v36_v5  ;;  %v213_v24 = vcombine.high %v43_v23, %v43_v23  ;;  %v415_v27 = vld [vmem:[%s587_s3] ss:$0 sm:$0xff] }
   0xb   :  { %61 = vmatprep.subr.mxu0 %v429_v0  ;;  %143 = vmatprep.subr.mxu1 %v429_v0  ;;  %v45_v42 = vld [vmem:[%s588_s4] sm:$0x3] }
   0xc   :  { %62 = vmatpush1.msra.mxu0 %v35_v6  ;;  %144 = vmatpush1.msra.mxu1 %v35_v6  ;;  %v376_v46 = vrot.slane %v45_v42, %v375_v41  ;;  %v46_v47 = vld [vmem:[%s589_s5] sm:$0x3]  ;;  %v380_v51 = vrot.slane %v45_v42, %v379_v43 }
   0xd   :  { %63 = vmatprep.subr.mxu0 %v429_v0  ;;  %145 = vmatprep.subr.mxu1 %v429_v0  ;;  %v389_v54 = vrot.slane %v46_v47, %v375_v41  ;;  %v393_v56 = vrot.slane %v46_v47, %v379_v43 }
   0xe   :  { %64 = vmatpush1.msra.mxu0 %v34_v7  ;;  %146 = vmatpush1.msra.mxu1 %v34_v7 }
   0xf   :  { %65 = vmatprep.subr.mxu0 %v429_v0  ;;  %147 = vmatprep.subr.mxu1 %v429_v0 }
  0x10   :  { %66 = vmatpush1.msra.mxu0 %v33_v8  ;;  %148 = vmatpush1.msra.mxu1 %v33_v8 }
  0x11   :  { %67 = vmatprep.subr.mxu0 %v429_v0  ;;  %149 = vmatprep.subr.mxu1 %v429_v0 }
  0x12   :  { %68 = vmatpush1.msra.mxu0 %v32_v9  ;;  %150 = vmatpush1.msra.mxu1 %v32_v9 }
  0x13   :  { %69 = vmatprep.subr.mxu0 %v429_v0  ;;  %151 = vmatprep.subr.mxu1 %v429_v0 }
  0x14   :  { %70 = vmatpush1.msra.mxu0 %v31_v10  ;;  %152 = vmatpush1.msra.mxu1 %v31_v10 }
  0x15   :  { %71 = vmatprep.subr.mxu0 %v429_v0  ;;  %153 = vmatprep.subr.mxu1 %v429_v0 }
  0x16   :  { %72 = vmatpush1.msra.mxu0 %v30_v11  ;;  %154 = vmatpush1.msra.mxu1 %v30_v11 }
  0x17   :  { %73 = vmatprep.subr.mxu0 %v429_v0  ;;  %155 = vmatprep.subr.mxu1 %v429_v0 }
  0x18   :  { %74 = vmatpush1.msra.mxu0 %v29_v12  ;;  %156 = vmatpush1.msra.mxu1 %v29_v12 }
  0x19   :  { %75 = vmatprep.subr.mxu0 %v429_v0  ;;  %157 = vmatprep.subr.mxu1 %v429_v0 }
  0x1a   :  { %76 = vmatpush1.msra.mxu0 %v28_v13  ;;  %158 = vmatpush1.msra.mxu1 %v28_v13 }
  0x1b   :  { %77 = vmatprep.subr.mxu0 %v429_v0  ;;  %159 = vmatprep.subr.mxu1 %v429_v0 }
  0x1c   :  { %78 = vmatpush1.msra.mxu0 %v27_v14  ;;  %160 = vmatpush1.msra.mxu1 %v27_v14 }
  0x1d   :  { %79 = vmatprep.subr.mxu0 %v429_v0  ;;  %161 = vmatprep.subr.mxu1 %v429_v0 }
  0x1e   :  { %80 = vmatpush1.msra.mxu0 %v26_v15  ;;  %162 = vmatpush1.msra.mxu1 %v26_v15 }
  0x1f   :  { %81 = vmatprep.subr.mxu0 %v429_v0  ;;  %163 = vmatprep.subr.mxu1 %v429_v0 }
  0x20   :  { %82 = vmatpush1.msra.mxu0 %v25_v16  ;;  %164 = vmatpush1.msra.mxu1 %v25_v16 }
  0x21   :  { %111 = vmatprep.subr.mxu0 %v429_v0  ;;  %193 = vmatprep.subr.mxu1 %v429_v0 }
  0x22   :  { %112 = vmatpush2.msra.mxu0 %v42_v17  ;;  %194 = vmatpush2.msra.mxu1 %v42_v17 }
  0x23   :  { %113 = vmatprep.subr.mxu0 %v429_v0  ;;  %414 = vmatprep.mubr.msk.f32.mxu0 %vm47_vm0, %v551_v18 }
  0x24   :  { %114 = vmatpush2.msra.mxu0 %v41_v20  ;;  %195 = vmatprep.subr.mxu1 %v429_v0 }
  0x25   :  { %116 = vmatmul.mubr.f32.vlgmr.msra.gmra.mxu0 %v23_v19  ;;  %196 = vmatpush2.msra.mxu1 %v41_v20 }
  0x26   :  { %416 = vmatprep.mubr.msk.f32.mxu1 %vm47_vm0, %v129_v21  ;;  %287 = vmatprep.mubr.f32.mxu0 %v429_v0 }
  0x27   :  { %198 = vmatmul.mubr.f32.vlgmr.msra.gmra.mxu1 %v128_v22  ;;  %417 = vmatprep.subr.msk.mxu0 %vm218_vm1, %v213_v24 }
  0x28   :  { %361 = vmatprep.mubr.f32.mxu1 %v429_v0  ;;  %420 = vmatprep.subr.msk.mxu1 %vm218_vm1, %v213_v24 }
  0x29   :  { %418 = vmatpush1.msk.msra.mxu0 %vm218_vm1, %v43_v23  ;;  %421 = vmatpush1.msk.msra.mxu1 %vm218_vm1, %v43_v23 }
  0xe5   :  { %v117_v28 = vpop.f32.mrf.mxu0 }
  0xe6   :  { %v127_v29 = vmul.f32 %v415_v27, %v117_v28 }
  0xe7   :  { %v199_v30 = vpop.f32.mrf.mxu1  ;;  %v119_v31 = vpop.f32.mrf.mxu0 }
  0xe8   :  { %v207_v32 = vsel %vm206_vm2, %v127_v29, 0.0  ;;  %v203_v33 = vmul.f32 %v415_v27, %v199_v30 }
  0xe9   :  { %v208_v34 = vmul.f32 %v207_v32, %v207_v32  ;;  %v201_v35 = vpop.f32.mrf.mxu1  ;;  %419 = vmatmul.mubr.msk.f32.vlgmr.msra.gmra.mxu0 %vm214_vm3, %v207_v32 }
  0xeb   :  { %v209_v36 = vsub.f32 %v203_v33, %v208_v34 }
  0xed   :  { %v210_v37 = vadd.f32 1e-05, %v209_v36 }
  0xef   :  { %427 = vrsqrt.f32 %v210_v37 }
  0xfc   :  { %v428_v38 = vpop.eup %427 }
  0xfd   :  { %422 = vmatmul.mubr.msk.f32.vlgmr.msra.gmra.mxu1 %vm214_vm3, %v428_v38 }
 0x1a9   :  { %v289_v40 = vpop.f32.mrf.mxu0 }
 0x1aa   :  { %v368_v45 = vsub.f32 %v23_v19, %v289_v40 }
 0x1ab   :  { %v291_v44 = vpop.f32.mrf.mxu0 }
 0x1ac   :  { %v369_v49 = vsub.f32 %v551_v18, %v291_v44 }
 0x1bd   :  { %v363_v48 = vpop.f32.mrf.mxu1 }
 0x1be   :  { %v370_v50 = vmul.f32 %v368_v45, %v363_v48 }
 0x1bf   :  { %v365_v52 = vpop.f32.mrf.mxu1 }
 0x1c0   :  { %v383_v53 = vmul.f32 %v376_v46, %v370_v50  ;;  %v371_v55 = vmul.f32 %v369_v49, %v365_v52 }
 0x1c2   :  { %v384_v57 = vmul.f32 %v380_v51, %v371_v55  ;;  %v396_v58 = vadd.f32 %v389_v54, %v383_v53 }
 0x1c4   :  { %v397_v59 = vadd.f32 %v393_v56, %v384_v57 }
 0x1c6   :  { %v424_v60 = vpack.c.bf16 %v397_v59, %v396_v58 }
 0x1c8   :  { %409 = vst.msk [vmem:[%s590_s6] sm:$0xff] %vm408_vm6, %v424_v60 }

// kernel: equiformer_v2_backbone_forward.11
= control target key start
LH: loop header
LB: loop body
LE: loop exit
PB: predicated region body
PF: predicated region fallthrough
CT: control target
= control target key end

     0   :  { %v1123_v0 = vmov 0   ;;  %v1124_v3 = vmov 0.0   ;;  %vm1125_vm0 = vmmov 0   ;;  %vm227_vm1 = vcmask 130048   ;;  %s1402_s0 = inlined_call_operand.vmem [shape: f32[16,1], index: 0, kind: input, shape index: {}]   ;;  %s1403_s5 = inlined_call_operand.vmem [shape: bf16[16,16], index: 5, kind: input, shape index: {}]   ;;  %s1404_s4 = inlined_call_operand.vmem [shape: bf16[640,16], index: 4, kind: input, shape index: {}]   ;;  %s1405_s1 = inlined_call_operand.vmem [shape: f32[16,16], index: 1, kind: input, shape index: {}]   ;;  %s1406_s6 = inlined_call_operand.vmem [shape: bf16[16,16], index: 6, kind: input, shape index: {}]   ;;  %s1407_s3 = inlined_call_operand.vmem [shape: f32[1,640], index: 3, kind: input, shape index: {}]   ;;  %s1408_s2 = inlined_call_operand.vmem [shape: f32[16,16], index: 2, kind: input, shape index: {}]   ;;  %s1409_s8 = inlined_call_operand.vmem [shape: bf16[16,16], index: 8, kind: input, shape index: {}]   ;;  %s1410_s7 = inlined_call_operand.vmem [shape: f32[1,16], index: 7, kind: input, shape index: {}]   ;;  %s1411_s10 = inlined_call_operand.vmem [shape: bf16[16,144], index: 10, kind: input, shape index: {}]   ;;  %s1412_s9 = inlined_call_operand.vmem [shape: f32[1,16], index: 9, kind: input, shape index: {}]   ;;  %s1413_s11 = inlined_call_operand.vmem [shape: f32[1,144], index: 11, kind: input, shape index: {}]   ;;  %s1414_s12 = inlined_call_operand.vmem [shape: bf16[16,144], index: 12, kind: output, shape index: {}]  }
   0x1   :  { %1040 = vset.pattern.permute.xlu0 %v1123_v0  ;;  %v42_v1 = vld [vmem:[%s1402_s0] sm:$0xff]  ;;  %v43_v2 = vld [vmem:[%s1402_s0 + $0x8] sm:$0xff]  ;;  %999 = vmatprep.subr.bf16.mxu0 %v1124_v3  ;;  %v1042_v5 = vld [vmem:[%s1404_s4 + $0x78] sm:$0xff]   ;;  %v56_v40 = vlaneseq  ;;  %vm872_vm2 = vcmask 1043456   ;;  %vm873_vm3 = vcmask 130052  }
   0x2   :  { %47 = vperm.xlu0 %1040, %v42_v1   ;;  %v1041_v4 = vld [vmem:[%s1403_s5] sm:$0xff]   ;;  %1001 = vmatprep.mubr.msk.bf16.mxu0 %vm1125_vm0, %v1124_v3  ;;  %v1043_v6 = vld [vmem:[%s1404_s4 + $0x38] sm:$0xff]   ;;  %v217_v9 = vld [vmem:[%s1405_s1 + $0x8] sm:$0xff] }
   0x3   :  { %1000 = vmatpush3.bf16.msra.mxu0 %v1041_v4  ;;  %942 = vmatprep.subr.bf16.mxu1 %v1042_v5  ;;  %v1044_v7 = vld [vmem:[%s1404_s4 + $0xf8] sm:$0xff]   ;;  %v216_v8 = vld [vmem:[%s1405_s1] sm:$0xff]  ;;  %v1046_v12 = vld [vmem:[%s1404_s4 + $0x70] sm:$0xff]   ;;  %v1309_v41 = vshrl.u32 %v56_v40, 7 }
   0x4   :  { %943 = vmatpush3.bf16.msra.mxu1 %v1043_v6  ;;  %964 = vmatprep.subr.bf16.mxu0 %v1044_v7  ;;  %v218_v10 = vpack.c.bf16 %v217_v9, %v216_v8  ;;  %v1045_v11 = vld [vmem:[%s1404_s4 + $0xb8] sm:$0xff]   ;;  %v1047_v13 = vld [vmem:[%s1404_s4 + $0x30] sm:$0xff]   ;;  %v1050_v16 = vld [vmem:[%s1404_s4 + $0x68] sm:$0xff]  }
   0x5   :  { %944 = vmatprep.subr.bf16.mxu1 %v1046_v12  ;;  %v1048_v14 = vld [vmem:[%s1404_s4 + $0xf0] sm:$0xff]   ;;  %v1051_v17 = vld [vmem:[%s1404_s4 + $0x28] sm:$0xff]   ;;  %v1054_v20 = vld [vmem:[%s1404_s4 + $0x60] sm:$0xff]   ;;  %v58_v42 = vsub.s32 0, %v1309_v41  ;;  %v62_v43 = vsub.s32 1, %v1309_v41  ;;  %v66_v44 = vsub.s32 2, %v1309_v41 }
   0x6   :  { %52 = vperm.xlu0 %1040, %v43_v2   ;;  %1002 = vmatmul.mubr.msk.bf16.vlgmr.msra.gmra.mxu0 %vm227_vm1, %v218_v10  ;;  %v1049_v15 = vld [vmem:[%s1404_s4 + $0xb0] sm:$0xff]   ;;  %v1052_v18 = vld [vmem:[%s1404_s4 + $0xe8] sm:$0xff]   ;;  %v1055_v21 = vld [vmem:[%s1404_s4 + $0x20] sm:$0xff]   ;;  %v70_v45 = vsub.s32 3, %v1309_v41 }
   0x7   :  { %965 = vmatpush3.bf16.msra.mxu0 %v1045_v11  ;;  %v1053_v19 = vld [vmem:[%s1404_s4 + $0xa8] sm:$0xff]   ;;  %v1056_v22 = vld [vmem:[%s1404_s4 + $0xe0] sm:$0xff]   ;;  %v1058_v24 = vld [vmem:[%s1404_s4 + $0x58] sm:$0xff]  }
   0x8   :  { %945 = vmatpush3.bf16.msra.mxu1 %v1047_v13  ;;  %966 = vmatprep.subr.bf16.mxu0 %v1048_v14  ;;  %v1057_v23 = vld [vmem:[%s1404_s4 + $0xa0] sm:$0xff]   ;;  %v1059_v25 = vld [vmem:[%s1404_s4 + $0x18] sm:$0xff]   ;;  %v1062_v28 = vld [vmem:[%s1404_s4 + $0x50] sm:$0xff]  }
   0x9   :  { %946 = vmatprep.subr.bf16.mxu1 %v1050_v16  ;;  %v1060_v26 = vld [vmem:[%s1404_s4 + $0xd8] sm:$0xff]   ;;  %v1063_v29 = vld [vmem:[%s1404_s4 + $0x10] sm:$0xff]   ;;  %v1066_v32 = vld [vmem:[%s1404_s4 + $0x48] sm:$0xff]  }
   0xa   :  { %v1061_v27 = vld [vmem:[%s1404_s4 + $0x98] sm:$0xff]   ;;  %v1064_v30 = vld [vmem:[%s1404_s4 + $0xd0] sm:$0xff]   ;;  %v1067_v33 = vld [vmem:[%s1404_s4 + $0x8] sm:$0xff]  }
   0xb   :  { %967 = vmatpush3.bf16.msra.mxu0 %v1049_v15  ;;  %v1065_v31 = vld [vmem:[%s1404_s4 + $0x90] sm:$0xff]   ;;  %v1068_v34 = vld [vmem:[%s1404_s4 + $0xc8] sm:$0xff]   ;;  %v1070_v36 = vld [vmem:[%s1404_s4 + $0x40] sm:$0xff]  }
   0xc   :  { %947 = vmatpush3.bf16.msra.mxu1 %v1051_v17  ;;  %968 = vmatprep.subr.bf16.mxu0 %v1052_v18  ;;  %v1069_v35 = vld [vmem:[%s1404_s4 + $0x88] sm:$0xff]   ;;  %v1071_v37 = vld [vmem:[%s1404_s4] sm:$0xff]   ;;  %vm874_vm4 = vmor %vm873_vm3, %vm872_vm2 }
   0xd   :  { %948 = vmatprep.subr.bf16.mxu1 %v1054_v20  ;;  %v1072_v38 = vld [vmem:[%s1404_s4 + $0xc0] sm:$0xff]  }
   0xe   :  { %v1073_v39 = vld [vmem:[%s1404_s4 + $0x80] sm:$0xff]  }
   0xf   :  { %969 = vmatpush3.bf16.msra.mxu0 %v1053_v19  ;;  %v44_v46 = vld [vmem:[%s1407_s3] sm:$0x1f] }
  0x10   :  { %949 = vmatpush3.bf16.msra.mxu1 %v1055_v21  ;;  %970 = vmatprep.subr.bf16.mxu0 %v1056_v22  ;;  %v59_v47 = vrot.slane %v44_v46, %v58_v42  ;;  %v63_v48 = vrot.slane %v44_v46, %v62_v43  ;;  %v67_v49 = vrot.slane %v44_v46, %v66_v44  ;;  %v1075_v44 = vld [vmem:[%s1404_s4 + $0x130] sm:$0xff]  }
  0x11   :  { %950 = vmatprep.subr.bf16.mxu1 %v1058_v24  ;;  %v71_v50 = vrot.slane %v44_v46, %v70_v45 }
  0x13   :  { %971 = vmatpush3.bf16.msra.mxu0 %v1057_v23 }
  0x14   :  { %951 = vmatpush3.bf16.msra.mxu1 %v1059_v25  ;;  %972 = vmatprep.subr.bf16.mxu0 %v1060_v26  ;;  %v74_v25 = vsub.s32 4, %v1309_v41 }
  0x15   :  { %952 = vmatprep.subr.bf16.mxu1 %v1062_v28 }
  0x17   :  { %973 = vmatpush3.bf16.msra.mxu0 %v1061_v27 }
  0x18   :  { %953 = vmatpush3.bf16.msra.mxu1 %v1063_v29  ;;  %974 = vmatprep.subr.bf16.mxu0 %v1064_v30  ;;  %v75_v30 = vrot.slane %v44_v46, %v74_v25  ;;  %v635_v46 = vld [vmem:[%s1408_s2] sm:$0xff] }
  0x19   :  { %954 = vmatprep.subr.bf16.mxu1 %v1066_v32 }
  0x1b   :  { %975 = vmatpush3.bf16.msra.mxu0 %v1065_v31 }
  0x1c   :  { %955 = vmatpush3.bf16.msra.mxu1 %v1067_v33  ;;  %976 = vmatprep.subr.bf16.mxu0 %v1068_v34  ;;  %v1074_v34 = vld [vmem:[%s1404_s4 + $0x138] sm:$0xff]  }
  0x1d   :  { %956 = vmatprep.subr.bf16.mxu1 %v1070_v36 }
  0x1f   :  { %977 = vmatpush3.bf16.msra.mxu0 %v1069_v35 }
  0x20   :  { %957 = vmatpush3.bf16.msra.mxu1 %v1071_v37  ;;  %978 = vmatprep.subr.bf16.mxu0 %v1072_v38 }
  0x21   :  { %1005 = vmatprep.subr.bf16.mxu1 %v1124_v3 }
  0x23   :  { %979 = vmatpush3.bf16.msra.mxu0 %v1073_v39  ;;  %v1081_v39 = vld [vmem:[%s1406_s6] sm:$0xff]  }
  0x24   :  { %1025 = vmatprep.subr.bf16.mxu0 %v1124_v3 }
  0x7d   :  { %v48_v51 = vpop.permute.xlu0 %47 }
  0x7e   :  { %v81_v52 = vsub.f32 %v48_v51, %v59_v47  ;;  %v82_v53 = vsub.f32 %v48_v51, %v63_v48  ;;  %v83_v54 = vsub.f32 %v48_v51, %v67_v49  ;;  %v84_v55 = vsub.f32 %v48_v51, %v71_v50 }
  0x7f   :  { %v85_v40 = vsub.f32 %v48_v51, %v75_v30 }
  0x80   :  { %v91_v56 = vmul.f32 %v81_v52, %v81_v52  ;;  %v92_v57 = vmul.f32 %v82_v53, %v82_v53  ;;  %v93_v58 = vmul.f32 %v83_v54, %v83_v54  ;;  %v94_v59 = vmul.f32 %v84_v55, %v84_v55  ;;  %v1077_v53 = vld [vmem:[%s1404_s4 + $0x120] sm:$0xff]  }
  0x81   :  { %v53_v60 = vpop.permute.xlu0 %52 }
  0x82   :  { %v101_v61 = vmul.f32 -311.4592, %v91_v56  ;;  %v102_v62 = vmul.f32 -311.4592, %v92_v57  ;;  %v103_v63 = vmul.f32 -311.4592, %v93_v58  ;;  %v86_v1 = vsub.f32 %v53_v60, %v59_v47 }
  0x83   :  { %v104_v2 = vmul.f32 -311.4592, %v94_v59  ;;  %v87_v4 = vsub.f32 %v53_v60, %v63_v48  ;;  %v88_v5 = vsub.f32 %v53_v60, %v67_v49  ;;  %v89_v8 = vsub.f32 %v53_v60, %v71_v50  ;;  %v636_v47 = vld [vmem:[%s1408_s2 + $0x8] sm:$0xff]  ;;  %v1078_v56 = vld [vmem:[%s1404_s4 + $0x118] sm:$0xff]   ;;  %v1079_v57 = vld [vmem:[%s1404_s4 + $0x110] sm:$0xff]  }
  0x84   :  { %v111_v6 = vmul.f32 1.442695, %v101_v61  ;;  %v113_v7 = vmul.f32 1.442695, %v102_v62  ;;  %v115_v9 = vmul.f32 1.442695, %v103_v63  ;;  %v96_v10 = vmul.f32 %v86_v1, %v86_v1 }
  0x85   :  { %v117_v11 = vmul.f32 1.442695, %v104_v2  ;;  %v97_v12 = vmul.f32 %v87_v4, %v87_v4  ;;  %v98_v13 = vmul.f32 %v88_v5, %v88_v5  ;;  %v99_v14 = vmul.f32 %v89_v8, %v89_v8  ;;  %v1076_v49 = vld [vmem:[%s1404_s4 + $0x128] sm:$0xff]   ;;  %v1082_v59 = vld [vmem:[%s1404_s4 + $0x100] sm:$0xff]  }
  0x86   :  { %1087 = vpow2.f32 %v111_v6  ;;  %v106_v15 = vmul.f32 -311.4592, %v96_v10  ;;  %v90_v36 = vsub.f32 %v53_v60, %v75_v30  ;;  %v95_v48 = vmul.f32 %v85_v40, %v85_v40  ;;  %v1080_v58 = vld [vmem:[%s1404_s4 + $0x108] sm:$0xff]   ;;  %v1083_v5 = vld [vmem:[%s1409_s8] sm:$0xff]  }
  0x87   :  { %1089 = vpow2.f32 %v113_v7  ;;  %v107_v16 = vmul.f32 -311.4592, %v97_v12  ;;  %v108_v17 = vmul.f32 -311.4592, %v98_v13  ;;  %v109_v18 = vmul.f32 -311.4592, %v99_v14 }
  0x88   :  { %1091 = vpow2.f32 %v115_v9  ;;  %v121_v19 = vmul.f32 1.442695, %v106_v15  ;;  %v100_v45 = vmul.f32 %v90_v36, %v90_v36  ;;  %v637_v51 = vpack.c.bf16 %v636_v47, %v635_v46 }
  0x89   :  { %1093 = vpow2.f32 %v117_v11  ;;  %v123_v20 = vmul.f32 1.442695, %v107_v16  ;;  %v125_v21 = vmul.f32 1.442695, %v108_v17  ;;  %v127_v22 = vmul.f32 1.442695, %v109_v18 }
  0x8a   :  { %1095 = vpow2.f32 %v121_v19  ;;  %v110_v50 = vmul.f32 -311.4592, %v100_v45  ;;  %v105_v52 = vmul.f32 -311.4592, %v95_v48 }
  0x8b   :  { %1097 = vpow2.f32 %v123_v20 }
  0x8c   :  { %1099 = vpow2.f32 %v125_v21  ;;  %v129_v54 = vmul.f32 1.442695, %v110_v50  ;;  %v119_v55 = vmul.f32 1.442695, %v105_v52  ;;  %v1086_v50 = vld [vmem:[%s1411_s10 + $0x4] ss:$8 sps:$4 sm:$0xff]  }
  0x8d   :  { %1101 = vpow2.f32 %v127_v22  ;;  %v928_v52 = vld [vmem:[%s1412_s9] ss:$0 sm:$0xff] }
  0x8e   :  { %1103 = vpow2.f32 %v129_v54 }
  0x8f   :  { %1105 = vpow2.f32 %v119_v55 }
  0x93   :  { %v1088_v23 = vpop.eup %1087 }
  0x94   :  { %v1090_v24 = vpop.eup %1089 }
  0x95   :  { %v1092_v26 = vpop.eup %1091 }
  0x96   :  { %v1094_v27 = vpop.eup %1093 }
  0x97   :  { %v1096_v28 = vpop.eup %1095 }
  0x98   :  { %v1098_v29 = vpop.eup %1097  ;;  %v131_v31 = vpack.c.bf16 %v1096_v28, %v1088_v23 }
  0x99   :  { %v1100_v32 = vpop.eup %1099  ;;  %v132_v33 = vpack.c.bf16 %v1098_v29, %v1090_v24 }
  0x9a   :  { %v1102_v35 = vpop.eup %1101  ;;  %v133_v37 = vpack.c.bf16 %v1100_v32, %v1092_v26  ;;  %v925_v26 = vld [vmem:[%s1410_s7] ss:$0 sm:$0xff] }
  0x9b   :  { %544 = vmatprep.mubr.bf16.mxu1 %v132_v33  ;;  %v134_v38 = vpack.c.bf16 %v1102_v35, %v1094_v27  ;;  %v1104_v60 = vpop.eup %1103 }
  0x9c   :  { %545 = vmatmul.mubr.bf16.vlgmr.msra.gmra.mxu1 %v131_v31  ;;  %v1106_v61 = vpop.eup %1105 }
  0x9d   :  { %585 = vmatprep.mubr.bf16.mxu0 %v134_v38  ;;  %1006 = vmatpush3.bf16.msra.mxu1 %v1074_v34  ;;  %v135_v62 = vpack.c.bf16 %v1104_v60, %v1106_v61 }
  0x9e   :  { %586 = vmatmul.mubr.bf16.vlgmr.msra.gmra.mxu0 %v133_v37  ;;  %1007 = vmatprep.subr.bf16.mxu1 %v1124_v3 }
  0x9f   :  { %1026 = vmatpush3.bf16.msra.mxu0 %v1081_v39  ;;  %1027 = vmatprep.mubr.msk.bf16.mxu0 %vm1125_vm0, %v1124_v3 }
  0xa0   :  { %1021 = vmatprep.mubr.msk.bf16.mxu1 %vm1125_vm0, %v1124_v3  ;;  %1031 = vmatprep.subr.bf16.mxu0 %v1124_v3 }
  0xa1   :  { %1008 = vmatpush3.bf16.msra.mxu1 %v1075_v44 }
  0xa2   :  { %1009 = vmatprep.subr.bf16.mxu1 %v1124_v3 }
  0xa5   :  { %1010 = vmatpush3.bf16.msra.mxu1 %v1076_v49 }
  0xa6   :  { %1011 = vmatprep.subr.bf16.mxu1 %v1124_v3  ;;  %1028 = vmatmul.mubr.msk.bf16.vlgmr.msra.gmra.mxu0 %vm227_vm1, %v637_v51  ;;  %v1084_v51 = vld [vmem:[%s1411_s10] ss:$8 sps:$4 sm:$0xff]  }
  0xa7   :  { %1033 = vmatprep.mubr.msk.bf16.mxu0 %vm1125_vm0, %v1124_v3  ;;  %1032 = vmatpush3.bf16.msra.mxu0 %v1083_v5 }
  0xa8   :  { %831 = vmatprep.subr.bf16.mxu0 %v1086_v50 }
  0xa9   :  { %1012 = vmatpush3.bf16.msra.mxu1 %v1077_v53 }
  0xaa   :  { %1013 = vmatprep.subr.bf16.mxu1 %v1124_v3 }
  0xad   :  { %1014 = vmatpush3.bf16.msra.mxu1 %v1078_v56 }
  0xae   :  { %1015 = vmatprep.subr.bf16.mxu1 %v1124_v3 }
  0xb1   :  { %1016 = vmatpush3.bf16.msra.mxu1 %v1079_v57 }
  0xb2   :  { %1017 = vmatprep.subr.bf16.mxu1 %v1124_v3 }
  0xb5   :  { %1018 = vmatpush3.bf16.msra.mxu1 %v1080_v58 }
  0xb6   :  { %1019 = vmatprep.subr.bf16.mxu1 %v1124_v3 }
  0xb9   :  { %1020 = vmatpush3.bf16.msra.mxu1 %v1082_v59 }
  0xbc   :  { %1022 = vmatmul.mubr.bf16.vlgmr.msra.gmra.mxu1 %v135_v62 }
  0xc6   :  { %v265_v63 = vpop.f32.mrf.mxu0 }
  0xc8   :  { %v1003_v1 = vpop.f32.mrf.mxu0 }
  0xca   :  { %v268_v2 = vpop.f32.mrf.mxu0 }
  0xcc   :  { %v1004_v4 = vpop.f32.mrf.mxu0 }
 0x15c   :  { %v958_v3 = vpop.f32.mrf.mxu1 }
 0x15e   :  { %v980_v6 = vpop.f32.mrf.mxu0  ;;  %v959_v13 = vpop.f32.mrf.mxu1 }
 0x15f   :  { %v960_v16 = vadd.f32 %v959_v13, %v958_v3 }
 0x160   :  { %v981_v7 = vpop.f32.mrf.mxu0  ;;  %v961_v15 = vpop.f32.mrf.mxu1 }
 0x161   :  { %v547_v18 = vadd.f32 %v960_v16, %v265_v63  ;;  %v982_v20 = vadd.f32 %v981_v7, %v980_v6  ;;  %v792_v7 = vld [vmem:[%s1413_s11] sm:$0x3] }
 0x162   :  { %v983_v8 = vpop.f32.mrf.mxu0  ;;  %v962_v17 = vpop.f32.mrf.mxu1 }
 0x163   :  { %v963_v19 = vadd.f32 %v962_v17, %v961_v15  ;;  %v588_v22 = vadd.f32 %v982_v20, %v547_v18 }
 0x164   :  { %v984_v9 = vpop.f32.mrf.mxu0 }
 0x165   :  { %v550_v21 = vadd.f32 %v963_v19, %v268_v2  ;;  %v985_v24 = vadd.f32 %v984_v9, %v983_v8  ;;  %v797_v8 = vrot.slane %v792_v7, %v58_v42  ;;  %v801_v9 = vrot.slane %v792_v7, %v62_v43 }
 0x166   :  { %v683_v10 = vpop.f32.mrf.mxu0 }
 0x167   :  { %v591_v29 = vadd.f32 %v985_v24, %v550_v21 }
 0x168   :  { %v1029_v11 = vpop.f32.mrf.mxu0 }
 0x16a   :  { %v686_v12 = vpop.f32.mrf.mxu0 }
 0x16c   :  { %v1030_v14 = vpop.f32.mrf.mxu0 }
 0x17c   :  { %v628_v23 = vpop.f32.mrf.mxu1 }
 0x17d   :  { %v629_v25 = vadd.f32 %v628_v23, %v588_v22 }
 0x17e   :  { %v1023_v27 = vpop.f32.mrf.mxu1 }
 0x17f   :  { %v690_v28 = vadd.f32 %v683_v10, %v629_v25 }
 0x180   :  { %v631_v30 = vpop.f32.mrf.mxu1 }
 0x181   :  { %v699_v31 = vadd.f32 %v925_v26, %v690_v28  ;;  %v632_v32 = vadd.f32 %v631_v30, %v591_v29 }
 0x182   :  { %v1024_v33 = vpop.f32.mrf.mxu1 }
 0x183   :  { %v926_v34 = vmul.f32 -1.442695, %v699_v31  ;;  %v691_v35 = vadd.f32 %v686_v12, %v632_v32 }
 0x185   :  { %1107 = vpow2.f32 %v926_v34  ;;  %v700_v36 = vadd.f32 %v925_v26, %v691_v35 }
 0x187   :  { %v927_v37 = vmul.f32 -1.442695, %v700_v36 }
 0x189   :  { %1109 = vpow2.f32 %v927_v37 }
 0x192   :  { %v1108_v38 = vpop.eup %1107 }
 0x193   :  { %v707_v39 = vadd.f32 1.0, %v1108_v38 }
 0x195   :  { %1111 = vrcp.f32 %v707_v39 }
 0x196   :  { %v1110_v40 = vpop.eup %1109 }
 0x197   :  { %v708_v44 = vadd.f32 1.0, %v1110_v40 }
 0x199   :  { %1113 = vrcp.f32 %v708_v44 }
 0x1a2   :  { %v1112_v45 = vpop.eup %1111 }
 0x1a3   :  { %v713_v47 = vmul.f32 %v1112_v45, %v699_v31 }
 0x1a6   :  { %v1114_v46 = vpop.eup %1113 }
 0x1a7   :  { %v714_v48 = vmul.f32 %v1114_v46, %v700_v36 }
 0x1a9   :  { %v715_v49 = vpack.c.bf16 %v714_v48, %v713_v47 }
 0x1ab   :  { %1034 = vmatmul.mubr.msk.bf16.vlgmr.msra.gmra.mxu0 %vm227_vm1, %v715_v49 }
 0x1ac   :  { %849 = vmatprep.mubr.bf16.mxu0 %v1123_v0  ;;  %832 = vmatpush1.bf16.msra.mxu0 %v1084_v51 }
 0x26b   :  { %v768_v53 = vpop.f32.mrf.mxu0 }
 0x26c   :  { %v769_v54 = vadd.f32 %v928_v52, %v768_v53 }
 0x26d   :  { %v1035_v55 = vpop.f32.mrf.mxu0 }
 0x26e   :  { %v931_v56 = vmul.f32 -1.442695, %v769_v54 }
 0x26f   :  { %v771_v57 = vpop.f32.mrf.mxu0 }
 0x270   :  { %1115 = vpow2.f32 %v931_v56  ;;  %v772_v0 = vadd.f32 %v928_v52, %v771_v57 }
 0x271   :  { %v1036_v58 = vpop.f32.mrf.mxu0 }
 0x272   :  { %v932_v59 = vmul.f32 -1.442695, %v772_v0 }
 0x274   :  { %1117 = vpow2.f32 %v932_v59 }
 0x27d   :  { %v1116_v60 = vpop.eup %1115 }
 0x27e   :  { %v781_v61 = vadd.f32 1.0, %v1116_v60 }
 0x280   :  { %1119 = vrcp.f32 %v781_v61 }
 0x281   :  { %v1118_v62 = vpop.eup %1117 }
 0x282   :  { %v782_v63 = vadd.f32 1.0, %v1118_v62 }
 0x284   :  { %1121 = vrcp.f32 %v782_v63 }
 0x28d   :  { %v1120_v1 = vpop.eup %1119 }
 0x28e   :  { %v787_v4 = vmul.f32 %v1120_v1, %v769_v54 }
 0x291   :  { %v1122_v2 = vpop.eup %1121 }
 0x292   :  { %v788_v5 = vmul.f32 %v1122_v2, %v772_v0 }
 0x294   :  { %v789_v6 = vpack.c.bf16 %v788_v5, %v787_v4 }
 0x296   :  { %935 = vmatmul.mubr.msk.bf16.vlgmr.msra.gmra.mxu0 %vm227_vm1, %v789_v6 }
 0x356   :  { %v851_v10 = vpop.f32.mrf.mxu0 }
 0x357   :  { %v852_v11 = vadd.f32 %v851_v10, %v797_v8 }
 0x358   :  { %v853_v3 = vpop.f32.mrf.mxu0 }
 0x359   :  { %v854_v12 = vadd.f32 %v853_v3, %v801_v9 }
 0x35a   :  { %v855_v13 = vpop.f32.mrf.mxu0 }
 0x35b   :  { %v938_v14 = vpack.c.bf16 %v854_v12, %v852_v11  ;;  %v856_v16 = vadd.f32 %v855_v13, %v797_v8 }
 0x35c   :  { %v857_v15 = vpop.f32.mrf.mxu0 }
 0x35d   :  { %875 = vst.msk [vmem:[%s1414_s12] sm:$0xff] %vm874_vm4, %v938_v14  ;;  %v858_v17 = vadd.f32 %v857_v15, %v801_v9 }
 0x35f   :  { %v939_v42 = vpack.c.bf16 %v858_v17, %v856_v16 }
 0x361   :  { %876 = vst.msk [vmem:[%s1414_s12 + $0x8] sm:$0xff] %vm874_vm4, %v939_v42 }

// kernel: equiformer_v2_backbone_forward.15
= control target key start
LH: loop header
LB: loop body
LE: loop exit
PB: predicated region body
PF: predicated region fallthrough
CT: control target
= control target key end

     0   :  { %s241_s17 = smov 72   ;;  %vm54_vm0 = vcmask 1041408   ;;  %vm49_vm1 = vcmask 15360   ;;  %v243_v14 = vmov 0.0   ;;  %vm244_vm2 = vmmov 0   ;;  %s285_s1 = inlined_call_operand.vmem [shape: f32[1,2], index: 1, kind: input, shape index: {}]   ;;  %s286_s2 = inlined_call_operand.vmem [shape: f32[2,128], index: 2, kind: input, shape index: {}]   ;;  %s287_s3 = inlined_call_operand.vmem [shape: bf16[16,128], index: 3, kind: input, shape index: {}]   ;;  %s288_s0 = inlined_call_operand.vmem [shape: s32[1,16], index: 0, kind: input, shape index: {}]   ;;  %s289_s4 = inlined_call_operand.vmem [shape: f32[8,128], index: 4, kind: output, shape index: {}]  }
   0x1   :  { %v206_v0 = vld [vmem:[%s285_s1] ss:$0 sm:$0xff]  ;;  %s242_s1 = smov 56   ;;  %227 = vmatprep.subr.bf16.mxu1 %v243_v14  ;;  %229 = vmatprep.mubr.msk.bf16.mxu1 %vm244_vm2, %v243_v14  ;;  %v133_v15 = vlaneseq  ;;  %vm156_vm5 = vcmask 130048  }
   0x2   :  { %33 = vrot.lane.b32.xlu0 %v206_v0, %s241_s17  ;;  %v42_v1 = vld [vmem:[%s286_s2] sm:$0x3] }
   0x3   :  { %222 = vmatprep.subr.msk.mxu0 %vm54_vm0, %v42_v1  ;;  %v214_v2 = vld [vmem:[%s287_s3] sm:$0xff]   ;;  %v134_v16 = vand.u32 127, %v133_v15  ;;  %v142_v17 = vshrl.u32 %v133_v15, 7 }
   0x4   :  { %223 = vmatpush3.msk.msra.mxu0 %vm54_vm0, %v42_v1  ;;  %v215_v3 = vunpack.c.l.bf16 %v214_v2  ;;  %v216_v4 = vunpack.c.h.bf16 %v214_v2  ;;  %v210_v18 = vld [vmem:[%s288_s0] ss:$0 sm:$0xff] }
   0x5   :  { %vm135_vm3 = vcmp.lt.s32.totalorder %v134_v16, 72  ;;  %vm150_vm4 = vcmp.eq.s32.totalorder %v142_v17, %v210_v18 }
   0x6   :  { %v137_v20 = vsel %vm135_vm3, %v216_v4, 1.0  ;;  %v136_v21 = vsel %vm135_vm3, %v215_v3, 1.0  ;;  %v211_v25 = vsel %vm150_vm4, 1.0, %v243_v14 }
   0x7   :  { %v153_v27 = vpack.c.bf16 %v211_v25, %v211_v25 }
  0x74   :  { %v34_v5 = vpop.permute.xlu0 %33 }
  0x75   :  { %v36_v6 = vsub.f32 %v215_v3, %v34_v5  ;;  %v37_v7 = vsub.f32 %v216_v4, %v34_v5 }
  0x77   :  { %v38_v8 = vmul.f32 1.442695, %v36_v6  ;;  %v40_v9 = vmul.f32 1.442695, %v37_v7 }
  0x79   :  { %237 = vpow2.f32 %v38_v8 }
  0x7a   :  { %239 = vpow2.f32 %v40_v9 }
  0x86   :  { %v238_v10 = vpop.eup %237 }
  0x87   :  { %v240_v11 = vpop.eup %239  ;;  %45 = vrot.lane.b32.xlu0 %v238_v10, %s242_s1 }
  0x88   :  { %47 = vrot.lane.b32.xlu1 %v240_v11, %s242_s1 }
  0xf9   :  { %v46_v12 = vpop.permute.xlu0 %45 }
  0xfa   :  { %v48_v13 = vpop.permute.xlu1 %47  ;;  %224 = vmatprep.mubr.msk.f32.mxu0 %vm49_vm1, %v46_v12 }
  0xfb   :  { %225 = vmatmul.mubr.msk.f32.vlgmr.msra.gmra.mxu0 %vm49_vm1, %v48_v13 }
 0x1bb   :  { %v226_v19 = vpop.f32.mrf.mxu0 }
 0x1bc   :  { %v139_v23 = vmul.f32 %v226_v19, %v137_v20 }
 0x1bd   :  { %v124_v22 = vpop.f32.mrf.mxu0 }
 0x1be   :  { %v138_v24 = vmul.f32 %v136_v21, %v124_v22 }
 0x1c0   :  { %v155_v26 = vpack.c.bf16 %v139_v23, %v138_v24 }
 0x1c2   :  { %228 = vmatpush3.bf16.msra.mxu1 %v155_v26 }
 0x1c5   :  { %230 = vmatmul.mubr.msk.bf16.vlgmr.msra.gmra.mxu1 %vm156_vm5, %v153_v27 }
 0x285   :  { %v194_v28 = vpop.f32.mrf.mxu1 }
 0x286   :  { %201 = vst [vmem:[%s289_s4] sm:$0xff] %v194_v28 }
 0x287   :  { %v231_v29 = vpop.f32.mrf.mxu1 }
 0x289   :  { %v197_v30 = vpop.f32.mrf.mxu1 }
 0x28b   :  { %v232_v31 = vpop.f32.mrf.mxu1 }

// kernel: equiformer_v2_backbone_forward.21
= control target key start
LH: loop header
LB: loop body
LE: loop exit
PB: predicated region body
PF: predicated region fallthrough
CT: control target
= control target key end

     0   :  { %v417_v0 = vmov 0.0   ;;  %vm47_vm0 = vcmask 130048   ;;  %vm218_vm1 = vcmask 1042432   ;;  %v204_v25 = vlaneseq  ;;  %s578_s1 = inlined_call_operand.vmem [shape: f32[144,3], index: 1, kind: input, shape index: {}]   ;;  %s579_s0 = inlined_call_operand.vmem [shape: f32[8,144], index: 0, kind: input, shape index: {}]   ;;  %s580_s2 = inlined_call_operand.vmem [shape: f32[3,144], index: 2, kind: input, shape index: {}]   ;;  %s581_s3 = inlined_call_operand.vmem [shape: f32[1,3], index: 3, kind: input, shape index: {}]   ;;  %s582_s4 = inlined_call_operand.vmem [shape: f32[1,144], index: 4, kind: input, shape index: {}]   ;;  %s583_s5 = inlined_call_operand.vmem [shape: f32[1,144], index: 5, kind: input, shape index: {}]   ;;  %s584_s6 = inlined_call_operand.vmem [shape: f32[8,144], index: 6, kind: output, shape index: {}]  }
   0x1   :  { %51 = vmatprep.subr.mxu0 %v417_v0  ;;  %v40_v1 = vld [vmem:[%s578_s1 + $0x78] sm:$0xff]  ;;  %133 = vmatprep.subr.mxu1 %v417_v0  ;;  %v39_v2 = vld [vmem:[%s578_s1 + $0x70] sm:$0xff]  ;;  %v38_v3 = vld [vmem:[%s578_s1 + $0x68] sm:$0xff]  ;;  %vm214_vm3 = vcmask 23552  }
   0x2   :  { %52 = vmatpush1.msra.mxu0 %v40_v1  ;;  %134 = vmatpush1.msra.mxu1 %v40_v1  ;;  %v37_v4 = vld [vmem:[%s578_s1 + $0x60] sm:$0xff]  ;;  %v36_v5 = vld [vmem:[%s578_s1 + $0x58] sm:$0xff]  ;;  %v35_v6 = vld [vmem:[%s578_s1 + $0x50] sm:$0xff]  ;;  %v205_v26 = vand.u32 127, %v204_v25  ;;  %v374_v39 = vshrl.u32 %v204_v25, 7 }
   0x3   :  { %53 = vmatprep.subr.mxu0 %v417_v0  ;;  %135 = vmatprep.subr.mxu1 %v417_v0  ;;  %v34_v7 = vld [vmem:[%s578_s1 + $0x48] sm:$0xff]  ;;  %v33_v8 = vld [vmem:[%s578_s1 + $0x40] sm:$0xff]  ;;  %v32_v9 = vld [vmem:[%s578_s1 + $0x38] sm:$0xff] }
   0x4   :  { %54 = vmatpush1.msra.mxu0 %v39_v2  ;;  %136 = vmatpush1.msra.mxu1 %v39_v2  ;;  %v31_v10 = vld [vmem:[%s578_s1 + $0x30] sm:$0xff]  ;;  %v30_v11 = vld [vmem:[%s578_s1 + $0x28] sm:$0xff]  ;;  %v29_v12 = vld [vmem:[%s578_s1 + $0x20] sm:$0xff]  ;;  %vm206_vm2 = vcmp.eq.s32.totalorder %v205_v26, 0  ;;  %v375_v41 = vsub.s32 0, %v374_v39  ;;  %v379_v43 = vsub.s32 1, %v374_v39 }
   0x5   :  { %55 = vmatprep.subr.mxu0 %v417_v0  ;;  %137 = vmatprep.subr.mxu1 %v417_v0  ;;  %v28_v13 = vld [vmem:[%s578_s1 + $0x18] sm:$0xff]  ;;  %v27_v14 = vld [vmem:[%s578_s1 + $0x10] sm:$0xff]  ;;  %v26_v15 = vld [vmem:[%s578_s1 + $0x8] sm:$0xff] }
   0x6   :  { %56 = vmatpush1.msra.mxu0 %v38_v3  ;;  %138 = vmatpush1.msra.mxu1 %v38_v3  ;;  %v25_v16 = vld [vmem:[%s578_s1] sm:$0xff]  ;;  %v42_v17 = vld [vmem:[%s578_s1 + $0x88] sm:$0xff] }
   0x7   :  { %57 = vmatprep.subr.mxu0 %v417_v0  ;;  %139 = vmatprep.subr.mxu1 %v417_v0  ;;  %v539_v18 = vld [vmem:[%s579_s0 + $0x8] sm:$0xff]  ;;  %v23_v19 = vld [vmem:[%s579_s0] sm:$0xff] }
   0x8   :  { %58 = vmatpush1.msra.mxu0 %v37_v4  ;;  %140 = vmatpush1.msra.mxu1 %v37_v4  ;;  %v41_v20 = vld [vmem:[%s578_s1 + $0x80] sm:$0xff]  ;;  %v129_v21 = vmul.f32 %v539_v18, %v539_v18  ;;  %v128_v22 = vmul.f32 %v23_v19, %v23_v19 }
   0x9   :  { %59 = vmatprep.subr.mxu0 %v417_v0  ;;  %141 = vmatprep.subr.mxu1 %v417_v0  ;;  %v43_v23 = vld [vmem:[%s580_s2] sm:$0x77] }
   0xa   :  { %60 = vmatpush1.msra.mxu0 %v36_v5  ;;  %142 = vmatpush1.msra.mxu1 %v36_v5  ;;  %v213_v24 = vcombine.high %v43_v23, %v43_v23  ;;  %v405_v27 = vld [vmem:[%s581_s3] ss:$0 sm:$0xff] }
   0xb   :  { %61 = vmatprep.subr.mxu0 %v417_v0  ;;  %143 = vmatprep.subr.mxu1 %v417_v0  ;;  %v45_v42 = vld [vmem:[%s582_s4] sm:$0x3] }
   0xc   :  { %62 = vmatpush1.msra.mxu0 %v35_v6  ;;  %144 = vmatpush1.msra.mxu1 %v35_v6  ;;  %v46_v45 = vld [vmem:[%s583_s5] sm:$0x3]  ;;  %v376_v47 = vrot.slane %v45_v42, %v375_v41  ;;  %v380_v52 = vrot.slane %v45_v42, %v379_v43 }
   0xd   :  { %63 = vmatprep.subr.mxu0 %v417_v0  ;;  %145 = vmatprep.subr.mxu1 %v417_v0  ;;  %v389_v51 = vrot.slane %v46_v45, %v375_v41  ;;  %v393_v56 = vrot.slane %v46_v45, %v379_v43 }
   0xe   :  { %64 = vmatpush1.msra.mxu0 %v34_v7  ;;  %146 = vmatpush1.msra.mxu1 %v34_v7 }
   0xf   :  { %65 = vmatprep.subr.mxu0 %v417_v0  ;;  %147 = vmatprep.subr.mxu1 %v417_v0 }
  0x10   :  { %66 = vmatpush1.msra.mxu0 %v33_v8  ;;  %148 = vmatpush1.msra.mxu1 %v33_v8 }
  0x11   :  { %67 = vmatprep.subr.mxu0 %v417_v0  ;;  %149 = vmatprep.subr.mxu1 %v417_v0 }
  0x12   :  { %68 = vmatpush1.msra.mxu0 %v32_v9  ;;  %150 = vmatpush1.msra.mxu1 %v32_v9 }
  0x13   :  { %69 = vmatprep.subr.mxu0 %v417_v0  ;;  %151 = vmatprep.subr.mxu1 %v417_v0 }
  0x14   :  { %70 = vmatpush1.msra.mxu0 %v31_v10  ;;  %152 = vmatpush1.msra.mxu1 %v31_v10 }
  0x15   :  { %71 = vmatprep.subr.mxu0 %v417_v0  ;;  %153 = vmatprep.subr.mxu1 %v417_v0 }
  0x16   :  { %72 = vmatpush1.msra.mxu0 %v30_v11  ;;  %154 = vmatpush1.msra.mxu1 %v30_v11 }
  0x17   :  { %73 = vmatprep.subr.mxu0 %v417_v0  ;;  %155 = vmatprep.subr.mxu1 %v417_v0 }
  0x18   :  { %74 = vmatpush1.msra.mxu0 %v29_v12  ;;  %156 = vmatpush1.msra.mxu1 %v29_v12 }
  0x19   :  { %75 = vmatprep.subr.mxu0 %v417_v0  ;;  %157 = vmatprep.subr.mxu1 %v417_v0 }
  0x1a   :  { %76 = vmatpush1.msra.mxu0 %v28_v13  ;;  %158 = vmatpush1.msra.mxu1 %v28_v13 }
  0x1b   :  { %77 = vmatprep.subr.mxu0 %v417_v0  ;;  %159 = vmatprep.subr.mxu1 %v417_v0 }
  0x1c   :  { %78 = vmatpush1.msra.mxu0 %v27_v14  ;;  %160 = vmatpush1.msra.mxu1 %v27_v14 }
  0x1d   :  { %79 = vmatprep.subr.mxu0 %v417_v0  ;;  %161 = vmatprep.subr.mxu1 %v417_v0 }
  0x1e   :  { %80 = vmatpush1.msra.mxu0 %v26_v15  ;;  %162 = vmatpush1.msra.mxu1 %v26_v15 }
  0x1f   :  { %81 = vmatprep.subr.mxu0 %v417_v0  ;;  %163 = vmatprep.subr.mxu1 %v417_v0 }
  0x20   :  { %82 = vmatpush1.msra.mxu0 %v25_v16  ;;  %164 = vmatpush1.msra.mxu1 %v25_v16 }
  0x21   :  { %111 = vmatprep.subr.mxu0 %v417_v0  ;;  %193 = vmatprep.subr.mxu1 %v417_v0 }
  0x22   :  { %112 = vmatpush2.msra.mxu0 %v42_v17  ;;  %194 = vmatpush2.msra.mxu1 %v42_v17 }
  0x23   :  { %113 = vmatprep.subr.mxu0 %v417_v0  ;;  %404 = vmatprep.mubr.msk.f32.mxu0 %vm47_vm0, %v539_v18 }
  0x24   :  { %114 = vmatpush2.msra.mxu0 %v41_v20  ;;  %195 = vmatprep.subr.mxu1 %v417_v0 }
  0x25   :  { %116 = vmatmul.mubr.f32.vlgmr.msra.gmra.mxu0 %v23_v19  ;;  %196 = vmatpush2.msra.mxu1 %v41_v20 }
  0x26   :  { %406 = vmatprep.mubr.msk.f32.mxu1 %vm47_vm0, %v129_v21  ;;  %287 = vmatprep.mubr.f32.mxu0 %v417_v0 }
  0x27   :  { %198 = vmatmul.mubr.f32.vlgmr.msra.gmra.mxu1 %v128_v22  ;;  %407 = vmatprep.subr.msk.mxu0 %vm218_vm1, %v213_v24 }
  0x28   :  { %361 = vmatprep.mubr.f32.mxu1 %v417_v0  ;;  %410 = vmatprep.subr.msk.mxu1 %vm218_vm1, %v213_v24 }
  0x29   :  { %408 = vmatpush1.msk.msra.mxu0 %vm218_vm1, %v43_v23  ;;  %411 = vmatpush1.msk.msra.mxu1 %vm218_vm1, %v43_v23 }
  0xe5   :  { %v117_v28 = vpop.f32.mrf.mxu0 }
  0xe6   :  { %v127_v29 = vmul.f32 %v405_v27, %v117_v28 }
  0xe7   :  { %v199_v30 = vpop.f32.mrf.mxu1  ;;  %v119_v31 = vpop.f32.mrf.mxu0 }
  0xe8   :  { %v207_v32 = vsel %vm206_vm2, %v127_v29, 0.0  ;;  %v203_v33 = vmul.f32 %v405_v27, %v199_v30 }
  0xe9   :  { %v208_v34 = vmul.f32 %v207_v32, %v207_v32  ;;  %v201_v35 = vpop.f32.mrf.mxu1  ;;  %409 = vmatmul.mubr.msk.f32.vlgmr.msra.gmra.mxu0 %vm214_vm3, %v207_v32 }
  0xeb   :  { %v209_v36 = vsub.f32 %v203_v33, %v208_v34 }
  0xed   :  { %v210_v37 = vadd.f32 1e-05, %v209_v36 }
  0xef   :  { %415 = vrsqrt.f32 %v210_v37 }
  0xfc   :  { %v416_v38 = vpop.eup %415 }
  0xfd   :  { %412 = vmatmul.mubr.msk.f32.vlgmr.msra.gmra.mxu1 %vm214_vm3, %v416_v38 }
 0x1a9   :  { %v289_v40 = vpop.f32.mrf.mxu0 }
 0x1aa   :  { %v368_v46 = vsub.f32 %v23_v19, %v289_v40 }
 0x1ab   :  { %v291_v44 = vpop.f32.mrf.mxu0 }
 0x1ac   :  { %v369_v49 = vsub.f32 %v539_v18, %v291_v44 }
 0x1bd   :  { %v363_v48 = vpop.f32.mrf.mxu1 }
 0x1be   :  { %v370_v50 = vmul.f32 %v368_v46, %v363_v48 }
 0x1bf   :  { %v365_v53 = vpop.f32.mrf.mxu1 }
 0x1c0   :  { %v383_v54 = vmul.f32 %v376_v47, %v370_v50  ;;  %v371_v55 = vmul.f32 %v369_v49, %v365_v53 }
 0x1c2   :  { %v396_v57 = vadd.f32 %v389_v51, %v383_v54  ;;  %v384_v58 = vmul.f32 %v380_v52, %v371_v55 }
 0x1c4   :  { %398 = vst [vmem:[%s584_s6] sm:$0xff] %v396_v57  ;;  %v397_v59 = vadd.f32 %v393_v56, %v384_v58 }
 0x1c6   :  { %399 = vst.msk [vmem:[%s584_s6 + $0x8] sm:$0xff] %vm47_vm0, %v397_v59 }

// kernel: equiformer_v2_backbone_forward.14
= control target key start
LH: loop header
LB: loop body
LE: loop exit
PB: predicated region body
PF: predicated region fallthrough
CT: control target
= control target key end

     0   :  { %v2068_v0 = vmov 0   ;;  %v2069_v3 = vmov 0.0   ;;  %vm2070_vm0 = vmmov 0   ;;  %vm257_vm1 = vcmask 130048   ;;  %s2580_s0 = inlined_call_operand.vmem [shape: f32[16,1], index: 0, kind: input, shape index: {}]   ;;  %s2581_s7 = inlined_call_operand.vmem [shape: bf16[16,16], index: 7, kind: input, shape index: {}]   ;;  %s2582_s6 = inlined_call_operand.vmem [shape: bf16[640,16], index: 6, kind: input, shape index: {}]   ;;  %s2583_s1 = inlined_call_operand.vmem [shape: f32[16,16], index: 1, kind: input, shape index: {}]   ;;  %s2584_s8 = inlined_call_operand.vmem [shape: bf16[16,16], index: 8, kind: input, shape index: {}]   ;;  %s2585_s5 = inlined_call_operand.vmem [shape: f32[1,640], index: 5, kind: input, shape index: {}]   ;;  %s2586_s2 = inlined_call_operand.vmem [shape: f32[16,16], index: 2, kind: input, shape index: {}]   ;;  %s2587_s10 = inlined_call_operand.vmem [shape: bf16[16,16], index: 10, kind: input, shape index: {}]   ;;  %s2588_s9 = inlined_call_operand.vmem [shape: f32[1,16], index: 9, kind: input, shape index: {}]   ;;  %s2589_s12 = inlined_call_operand.vmem [shape: bf16[16,16], index: 12, kind: input, shape index: {}]   ;;  %s2590_s11 = inlined_call_operand.vmem [shape: f32[1,16], index: 11, kind: input, shape index: {}]   ;;  %s2591_s16 = inlined_call_operand.vmem [shape: bf16[144,144], index: 16, kind: input, shape index: {}]   ;;  %s2592_s14 = inlined_call_operand.vmem [shape: bf16[16,144], index: 14, kind: input, shape index: {}]   ;;  %s2593_s15 = inlined_call_operand.vmem [shape: bf16[144,144], index: 15, kind: input, shape index: {}]   ;;  %s2594_s4 = inlined_call_operand.vmem [shape: bf16[16,144], index: 4, kind: input, shape index: {}]   ;;  %s2595_s3 = inlined_call_operand.vmem [shape: bf16[16,144], index: 3, kind: input, shape index: {}]   ;;  %s2596_s13 = inlined_call_operand.vmem [shape: f32[1,16], index: 13, kind: input, shape index: {}]   ;;  %s2597_s18 = inlined_call_operand.vmem [shape: bf16[144,128], index: 18, kind: input, shape index: {}]   ;;  %s2598_s17 = inlined_call_operand.vmem [shape: f32[1,144], index: 17, kind: input, shape index: {}]   ;;  %s2599_s20 = inlined_call_operand.vmem [shape: f32[16,2], index: 20, kind: input, shape index: {}]   ;;  %s2600_s19 = inlined_call_operand.vmem [shape: f32[1,128], index: 19, kind: input, shape index: {}]   ;;  %s2601_s21 = inlined_call_operand.vmem [shape: f32[2,128], index: 21, kind: input, shape index: {}]   ;;  %s2602_s22 = inlined_call_operand.vmem [shape: bf16[16,128], index: 22, kind: output, shape index: {}]  }
   0x1   :  { %2607 = sst [smem:[#allocation2_spill]] %s2580_s0  ;;  %1899 = vset.pattern.permute.xlu0 %v2068_v0  ;;  %1839 = vmatprep.subr.bf16.mxu0 %v2069_v3  ;;  %v86_v40 = vlaneseq  ;;  %vm1547_vm2 = vcmask 1041408   ;;  %vm1540_vm5 = vcmask 15360  }
   0x2   :  { %2608 = sst [smem:[#allocation3_spill]] %s2581_s7  ;;  %1841 = vmatprep.mubr.msk.bf16.mxu0 %vm2070_vm0, %v2069_v3 }
   0x3   :  { %2609 = sst [smem:[#allocation4_spill]] %s2582_s6  ;;  %v2306_v41 = vshrl.u32 %v86_v40, 7 }
   0x4   :  { %2610 = sst [smem:[#allocation5_spill]] %s2583_s1 }
   0x5   :  { %2611 = sst [smem:[#allocation6_spill]] %s2584_s8  ;;  %v88_v42 = vsub.s32 0, %v2306_v41  ;;  %v92_v43 = vsub.s32 1, %v2306_v41  ;;  %v96_v44 = vsub.s32 2, %v2306_v41  ;;  %v100_v45 = vsub.s32 3, %v2306_v41 }
   0x6   :  { %2612 = sst [smem:[#allocation7_spill]] %s2585_s5 }
   0x7   :  { %2613 = sst [smem:[#allocation8_spill]] %s2586_s2 }
   0x8   :  { %s2614_s29 = sld [smem:[#allocation2_spill]] }
   0x9   :  { %s2615_s23 = sld [smem:[#allocation3_spill]] }
   0xa   :  { %s2616_s2 = sld [smem:[#allocation4_spill]] }
   0xb   :  { %s2618_s24 = sld [smem:[#allocation7_spill]] }
   0xc   :  { %s2619_s1 = sld [smem:[#allocation6_spill]] }
   0xd   :  { %s2620_s0 = sld [smem:[#allocation8_spill]] }
   0xe   :  { %v72_v1 = vld [vmem:[%s2614_s29] sm:$0xff]  ;;  %v73_v2 = vld [vmem:[%s2614_s29 + $0x8] sm:$0xff]  ;;  %s2617_s29 = sld [smem:[#allocation5_spill]] }
   0xf   :  { %77 = vperm.xlu0 %1899, %v72_v1   ;;  %v1900_v4 = vld [vmem:[%s2615_s23] sm:$0xff]  }
  0x10   :  { %v1901_v5 = vld [vmem:[%s2616_s2 + $0x78] sm:$0xff]   ;;  %1840 = vmatpush3.bf16.msra.mxu0 %v1900_v4  ;;  %v1905_v12 = vld [vmem:[%s2616_s2 + $0x70] sm:$0xff]   ;;  %v1909_v16 = vld [vmem:[%s2616_s2 + $0x68] sm:$0xff]  }
  0x11   :  { %v1902_v6 = vld [vmem:[%s2616_s2 + $0x38] sm:$0xff]   ;;  %1773 = vmatprep.subr.bf16.mxu1 %v1901_v5  ;;  %v1906_v13 = vld [vmem:[%s2616_s2 + $0x30] sm:$0xff]   ;;  %v1910_v17 = vld [vmem:[%s2616_s2 + $0x28] sm:$0xff]  }
  0x12   :  { %v1903_v7 = vld [vmem:[%s2616_s2 + $0xf8] sm:$0xff]   ;;  %1774 = vmatpush3.bf16.msra.mxu1 %v1902_v6  ;;  %v1907_v14 = vld [vmem:[%s2616_s2 + $0xf0] sm:$0xff]   ;;  %v1911_v18 = vld [vmem:[%s2616_s2 + $0xe8] sm:$0xff]  }
  0x13   :  { %82 = vperm.xlu0 %1899, %v73_v2   ;;  %1795 = vmatprep.subr.bf16.mxu0 %v1903_v7  ;;  %v1904_v11 = vld [vmem:[%s2616_s2 + $0xb8] sm:$0xff]   ;;  %v1908_v15 = vld [vmem:[%s2616_s2 + $0xb0] sm:$0xff]   ;;  %v1912_v19 = vld [vmem:[%s2616_s2 + $0xa8] sm:$0xff]  }
  0x14   :  { %v246_v8 = vld [vmem:[%s2617_s29] sm:$0xff]  ;;  %v247_v9 = vld [vmem:[%s2617_s29 + $0x8] sm:$0xff]  ;;  %1775 = vmatprep.subr.bf16.mxu1 %v1905_v12  ;;  %v1917_v24 = vld [vmem:[%s2616_s2 + $0x58] sm:$0xff]  }
  0x15   :  { %v248_v10 = vpack.c.bf16 %v247_v9, %v246_v8  ;;  %v1913_v20 = vld [vmem:[%s2616_s2 + $0x60] sm:$0xff]   ;;  %v1918_v25 = vld [vmem:[%s2616_s2 + $0x18] sm:$0xff]   ;;  %v1921_v28 = vld [vmem:[%s2616_s2 + $0x50] sm:$0xff]  }
  0x16   :  { %1776 = vmatpush3.bf16.msra.mxu1 %v1906_v13  ;;  %v1914_v21 = vld [vmem:[%s2616_s2 + $0x20] sm:$0xff]   ;;  %v1919_v26 = vld [vmem:[%s2616_s2 + $0xd8] sm:$0xff]   ;;  %v1922_v29 = vld [vmem:[%s2616_s2 + $0x10] sm:$0xff]  }
  0x17   :  { %1842 = vmatmul.mubr.msk.bf16.vlgmr.msra.gmra.mxu0 %vm257_vm1, %v248_v10  ;;  %1777 = vmatprep.subr.bf16.mxu1 %v1909_v16  ;;  %v1915_v22 = vld [vmem:[%s2616_s2 + $0xe0] sm:$0xff]   ;;  %v1920_v27 = vld [vmem:[%s2616_s2 + $0x98] sm:$0xff]   ;;  %v1923_v30 = vld [vmem:[%s2616_s2 + $0xd0] sm:$0xff]  }
  0x18   :  { %1796 = vmatpush3.bf16.msra.mxu0 %v1904_v11  ;;  %v1916_v23 = vld [vmem:[%s2616_s2 + $0xa0] sm:$0xff]   ;;  %v1924_v31 = vld [vmem:[%s2616_s2 + $0x90] sm:$0xff]   ;;  %v1925_v32 = vld [vmem:[%s2616_s2 + $0x48] sm:$0xff]  }
  0x19   :  { %1797 = vmatprep.subr.bf16.mxu0 %v1907_v14  ;;  %v1926_v33 = vld [vmem:[%s2616_s2 + $0x8] sm:$0xff]   ;;  %v1929_v36 = vld [vmem:[%s2616_s2 + $0x40] sm:$0xff]  }
  0x1a   :  { %1778 = vmatpush3.bf16.msra.mxu1 %v1910_v17  ;;  %v1927_v34 = vld [vmem:[%s2616_s2 + $0xc8] sm:$0xff]   ;;  %v1930_v37 = vld [vmem:[%s2616_s2] sm:$0xff]  }
  0x1b   :  { %1779 = vmatprep.subr.bf16.mxu1 %v1913_v20  ;;  %v1928_v35 = vld [vmem:[%s2616_s2 + $0x88] sm:$0xff]   ;;  %v1931_v38 = vld [vmem:[%s2616_s2 + $0xc0] sm:$0xff]  }
  0x1c   :  { %1798 = vmatpush3.bf16.msra.mxu0 %v1908_v15  ;;  %v1932_v39 = vld [vmem:[%s2616_s2 + $0x80] sm:$0xff]  }
  0x1d   :  { %1799 = vmatprep.subr.bf16.mxu0 %v1911_v18  ;;  %v74_v46 = vld [vmem:[%s2618_s24] sm:$0x1f] }
  0x1e   :  { %1780 = vmatpush3.bf16.msra.mxu1 %v1914_v21  ;;  %v89_v47 = vrot.slane %v74_v46, %v88_v42  ;;  %v93_v48 = vrot.slane %v74_v46, %v92_v43  ;;  %v97_v49 = vrot.slane %v74_v46, %v96_v44  ;;  %v101_v50 = vrot.slane %v74_v46, %v100_v45  ;;  %v1934_v45 = vld [vmem:[%s2616_s2 + $0x130] sm:$0xff]  }
  0x1f   :  { %1781 = vmatprep.subr.bf16.mxu1 %v1917_v24 }
  0x20   :  { %1800 = vmatpush3.bf16.msra.mxu0 %v1912_v19 }
  0x21   :  { %1801 = vmatprep.subr.bf16.mxu0 %v1915_v22 }
  0x22   :  { %1782 = vmatpush3.bf16.msra.mxu1 %v1918_v25  ;;  %v104_v25 = vsub.s32 4, %v2306_v41  ;;  %v1442_v41 = vld [vmem:[%s2599_s20 + $0x8] sm:$0xff] }
  0x23   :  { %1783 = vmatprep.subr.bf16.mxu1 %v1921_v28 }
  0x24   :  { %1802 = vmatpush3.bf16.msra.mxu0 %v1916_v23 }
  0x25   :  { %1803 = vmatprep.subr.bf16.mxu0 %v1919_v26 }
  0x26   :  { %1784 = vmatpush3.bf16.msra.mxu1 %v1922_v29 }
  0x27   :  { %1785 = vmatprep.subr.bf16.mxu1 %v1925_v32 }
  0x28   :  { %1804 = vmatpush3.bf16.msra.mxu0 %v1920_v27 }
  0x29   :  { %1805 = vmatprep.subr.bf16.mxu0 %v1923_v30  ;;  %v105_v30 = vrot.slane %v74_v46, %v104_v25 }
  0x2a   :  { %1786 = vmatpush3.bf16.msra.mxu1 %v1926_v33 }
  0x2b   :  { %1787 = vmatprep.subr.bf16.mxu1 %v1929_v36 }
  0x2c   :  { %1806 = vmatpush3.bf16.msra.mxu0 %v1924_v31 }
  0x2d   :  { %1807 = vmatprep.subr.bf16.mxu0 %v1927_v34  ;;  %v1933_v34 = vld [vmem:[%s2616_s2 + $0x138] sm:$0xff]  }
  0x2e   :  { %1788 = vmatpush3.bf16.msra.mxu1 %v1930_v37 }
  0x2f   :  { %1845 = vmatprep.subr.bf16.mxu1 %v2069_v3 }
  0x30   :  { %1808 = vmatpush3.bf16.msra.mxu0 %v1928_v35 }
  0x31   :  { %1809 = vmatprep.subr.bf16.mxu0 %v1931_v38 }
  0x34   :  { %1810 = vmatpush3.bf16.msra.mxu0 %v1932_v39  ;;  %v1940_v39 = vld [vmem:[%s2619_s1] sm:$0xff]  }
  0x35   :  { %1865 = vmatprep.subr.bf16.mxu0 %v2069_v3 }
  0x8a   :  { %v78_v51 = vpop.permute.xlu0 %77 }
  0x8b   :  { %v111_v52 = vsub.f32 %v78_v51, %v89_v47  ;;  %v112_v53 = vsub.f32 %v78_v51, %v93_v48  ;;  %v113_v54 = vsub.f32 %v78_v51, %v97_v49  ;;  %v114_v55 = vsub.f32 %v78_v51, %v101_v50 }
  0x8c   :  { %v115_v44 = vsub.f32 %v78_v51, %v105_v30 }
  0x8d   :  { %v121_v56 = vmul.f32 %v111_v52, %v111_v52  ;;  %v122_v57 = vmul.f32 %v112_v53, %v112_v53  ;;  %v123_v58 = vmul.f32 %v113_v54, %v113_v54  ;;  %v124_v59 = vmul.f32 %v114_v55, %v114_v55  ;;  %v1936_v54 = vld [vmem:[%s2616_s2 + $0x120] sm:$0xff]  }
  0x8e   :  { %v83_v60 = vpop.permute.xlu0 %82 }
  0x8f   :  { %v131_v61 = vmul.f32 -311.4592, %v121_v56  ;;  %v132_v62 = vmul.f32 -311.4592, %v122_v57  ;;  %v133_v63 = vmul.f32 -311.4592, %v123_v58  ;;  %v116_v1 = vsub.f32 %v83_v60, %v89_v47 }
  0x90   :  { %v134_v2 = vmul.f32 -311.4592, %v124_v59  ;;  %v117_v4 = vsub.f32 %v83_v60, %v93_v48  ;;  %v118_v5 = vsub.f32 %v83_v60, %v97_v49  ;;  %v119_v8 = vsub.f32 %v83_v60, %v101_v50  ;;  %v665_v47 = vld [vmem:[%s2620_s0] sm:$0xff]  ;;  %v666_v48 = vld [vmem:[%s2620_s0 + $0x8] sm:$0xff]  ;;  %v1937_v57 = vld [vmem:[%s2616_s2 + $0x118] sm:$0xff]  }
  0x91   :  { %v141_v6 = vmul.f32 1.442695, %v131_v61  ;;  %v143_v7 = vmul.f32 1.442695, %v132_v62  ;;  %v145_v9 = vmul.f32 1.442695, %v133_v63  ;;  %v126_v10 = vmul.f32 %v116_v1, %v116_v1 }
  0x92   :  { %v147_v11 = vmul.f32 1.442695, %v134_v2  ;;  %v127_v12 = vmul.f32 %v117_v4, %v117_v4  ;;  %v128_v13 = vmul.f32 %v118_v5, %v118_v5  ;;  %v129_v14 = vmul.f32 %v119_v8, %v119_v8  ;;  %v1935_v50 = vld [vmem:[%s2616_s2 + $0x128] sm:$0xff]   ;;  %v1938_v58 = vld [vmem:[%s2616_s2 + $0x110] sm:$0xff]  }
  0x93   :  { %2016 = vpow2.f32 %v141_v6  ;;  %v136_v15 = vmul.f32 -311.4592, %v126_v10  ;;  %v120_v36 = vsub.f32 %v83_v60, %v105_v30  ;;  %v125_v49 = vmul.f32 %v115_v44, %v115_v44  ;;  %v1939_v59 = vld [vmem:[%s2616_s2 + $0x108] sm:$0xff]   ;;  %v1941_v60 = vld [vmem:[%s2616_s2 + $0x100] sm:$0xff]  }
  0x94   :  { %2018 = vpow2.f32 %v143_v7  ;;  %v137_v16 = vmul.f32 -311.4592, %v127_v12  ;;  %v138_v17 = vmul.f32 -311.4592, %v128_v13  ;;  %v139_v18 = vmul.f32 -311.4592, %v129_v14 }
  0x95   :  { %2020 = vpow2.f32 %v145_v9  ;;  %v151_v19 = vmul.f32 1.442695, %v136_v15  ;;  %v130_v46 = vmul.f32 %v120_v36, %v120_v36  ;;  %v667_v52 = vpack.c.bf16 %v666_v48, %v665_v47  ;;  %v1942_v6 = vld [vmem:[%s2587_s10] sm:$0xff]  }
  0x96   :  { %2022 = vpow2.f32 %v147_v11  ;;  %v153_v20 = vmul.f32 1.442695, %v137_v16  ;;  %v155_v21 = vmul.f32 1.442695, %v138_v17  ;;  %v157_v22 = vmul.f32 1.442695, %v139_v18 }
  0x97   :  { %2024 = vpow2.f32 %v151_v19  ;;  %v140_v51 = vmul.f32 -311.4592, %v130_v46  ;;  %v135_v53 = vmul.f32 -311.4592, %v125_v49 }
  0x98   :  { %2026 = vpow2.f32 %v153_v20 }
  0x99   :  { %2028 = vpow2.f32 %v155_v21  ;;  %v159_v55 = vmul.f32 1.442695, %v140_v51  ;;  %v149_v56 = vmul.f32 1.442695, %v135_v53  ;;  %v1943_v53 = vld [vmem:[%s2589_s12] sm:$0xff]  }
  0x9a   :  { %2030 = vpow2.f32 %v157_v22 }
  0x9b   :  { %2032 = vpow2.f32 %v159_v55 }
  0x9c   :  { %2034 = vpow2.f32 %v149_v56 }
  0xa0   :  { %v2017_v23 = vpop.eup %2016 }
  0xa1   :  { %v2019_v24 = vpop.eup %2018 }
  0xa2   :  { %v2021_v26 = vpop.eup %2020 }
  0xa3   :  { %v2023_v27 = vpop.eup %2022 }
  0xa4   :  { %v2025_v28 = vpop.eup %2024 }
  0xa5   :  { %v2027_v29 = vpop.eup %2026  ;;  %v161_v31 = vpack.c.bf16 %v2025_v28, %v2017_v23  ;;  %v1686_v28 = vld [vmem:[%s2588_s9] ss:$0 sm:$0xff] }
  0xa6   :  { %v2029_v32 = vpop.eup %2028  ;;  %v162_v33 = vpack.c.bf16 %v2027_v29, %v2019_v24 }
  0xa7   :  { %v2031_v35 = vpop.eup %2030  ;;  %v163_v37 = vpack.c.bf16 %v2029_v32, %v2021_v26 }
  0xa8   :  { %574 = vmatprep.mubr.bf16.mxu1 %v162_v33  ;;  %v164_v38 = vpack.c.bf16 %v2031_v35, %v2023_v27  ;;  %v2033_v61 = vpop.eup %2032 }
  0xa9   :  { %575 = vmatmul.mubr.bf16.vlgmr.msra.gmra.mxu1 %v161_v31  ;;  %v2035_v62 = vpop.eup %2034 }
  0xaa   :  { %615 = vmatprep.mubr.bf16.mxu0 %v164_v38  ;;  %1846 = vmatpush3.bf16.msra.mxu1 %v1933_v34  ;;  %v165_v63 = vpack.c.bf16 %v2033_v61, %v2035_v62 }
  0xab   :  { %616 = vmatmul.mubr.bf16.vlgmr.msra.gmra.mxu0 %v163_v37  ;;  %1847 = vmatprep.subr.bf16.mxu1 %v2069_v3 }
  0xac   :  { %1866 = vmatpush3.bf16.msra.mxu0 %v1940_v39  ;;  %1867 = vmatprep.mubr.msk.bf16.mxu0 %vm2070_vm0, %v2069_v3 }
  0xad   :  { %1861 = vmatprep.mubr.msk.bf16.mxu1 %vm2070_vm0, %v2069_v3  ;;  %1871 = vmatprep.subr.bf16.mxu0 %v2069_v3 }
  0xae   :  { %1848 = vmatpush3.bf16.msra.mxu1 %v1934_v45 }
  0xaf   :  { %1849 = vmatprep.subr.bf16.mxu1 %v2069_v3 }
  0xb2   :  { %1850 = vmatpush3.bf16.msra.mxu1 %v1935_v50 }
  0xb3   :  { %1851 = vmatprep.subr.bf16.mxu1 %v2069_v3  ;;  %1868 = vmatmul.mubr.msk.bf16.vlgmr.msra.gmra.mxu0 %vm257_vm1, %v667_v52 }
  0xb4   :  { %1873 = vmatprep.mubr.msk.bf16.mxu0 %vm2070_vm0, %v2069_v3  ;;  %1872 = vmatpush3.bf16.msra.mxu0 %v1942_v6 }
  0xb5   :  { %1877 = vmatprep.subr.bf16.mxu0 %v2069_v3 }
  0xb6   :  { %1852 = vmatpush3.bf16.msra.mxu1 %v1936_v54  ;;  %v1689_v54 = vld [vmem:[%s2590_s11] ss:$0 sm:$0xff] }
  0xb7   :  { %1853 = vmatprep.subr.bf16.mxu1 %v2069_v3 }
  0xba   :  { %1854 = vmatpush3.bf16.msra.mxu1 %v1937_v57 }
  0xbb   :  { %1855 = vmatprep.subr.bf16.mxu1 %v2069_v3 }
  0xbe   :  { %1856 = vmatpush3.bf16.msra.mxu1 %v1938_v58 }
  0xbf   :  { %1857 = vmatprep.subr.bf16.mxu1 %v2069_v3 }
  0xc2   :  { %1858 = vmatpush3.bf16.msra.mxu1 %v1939_v59 }
  0xc3   :  { %1859 = vmatprep.subr.bf16.mxu1 %v2069_v3 }
  0xc6   :  { %1860 = vmatpush3.bf16.msra.mxu1 %v1941_v60 }
  0xc9   :  { %1862 = vmatmul.mubr.bf16.vlgmr.msra.gmra.mxu1 %v165_v63 }
  0xd7   :  { %v295_v1 = vpop.f32.mrf.mxu0 }
  0xd9   :  { %v1843_v2 = vpop.f32.mrf.mxu0 }
  0xdb   :  { %v298_v4 = vpop.f32.mrf.mxu0 }
  0xdd   :  { %v1844_v5 = vpop.f32.mrf.mxu0 }
 0x169   :  { %v1789_v12 = vpop.f32.mrf.mxu1 }
 0x16b   :  { %v1811_v7 = vpop.f32.mrf.mxu0  ;;  %v1790_v15 = vpop.f32.mrf.mxu1 }
 0x16c   :  { %v1791_v18 = vadd.f32 %v1790_v15, %v1789_v12  ;;  %v1944_v12 = vld [vmem:[%s2592_s14] ss:$8 sps:$4 sm:$0xff]   ;;  %v1955_v15 = vld [vmem:[%s2593_s15 + $0x74] ss:$8 sps:$4 sm:$0xff]  }
 0x16d   :  { %v1812_v8 = vpop.f32.mrf.mxu0  ;;  %v1792_v17 = vpop.f32.mrf.mxu1 }
 0x16e   :  { %v577_v20 = vadd.f32 %v1791_v18, %v295_v1  ;;  %v1813_v22 = vadd.f32 %v1812_v8, %v1811_v7  ;;  %v1962_v18 = vld [vmem:[%s2591_s16 + $0x40] ss:$8 sps:$4 sm:$0xff]  }
 0x16f   :  { %v1814_v9 = vpop.f32.mrf.mxu0  ;;  %v1793_v19 = vpop.f32.mrf.mxu1 }
 0x170   :  { %v1794_v21 = vadd.f32 %v1793_v19, %v1792_v17  ;;  %v618_v24 = vadd.f32 %v1813_v22, %v577_v20  ;;  %v1958_v17 = vld [vmem:[%s2591_s16 + $0x54] ss:$8 sps:$4 sm:$0xff]   ;;  %v1964_v19 = vld [vmem:[%s2591_s16 + $0x44] ss:$8 sps:$4 sm:$0xff]   ;;  %v1968_v20 = vld [vmem:[%s2591_s16 + $0x30] ss:$8 sps:$4 sm:$0xff]  }
 0x171   :  { %v1815_v10 = vpop.f32.mrf.mxu0  ;;  %v1974_v22 = vld [vmem:[%s2591_s16 + $0x20] ss:$8 sps:$4 sm:$0xff]  }
 0x172   :  { %v580_v23 = vadd.f32 %v1794_v21, %v298_v4  ;;  %v1816_v26 = vadd.f32 %v1815_v10, %v1814_v9  ;;  %v1949_v9 = vld [vmem:[%s2591_s16 + $0x74] ss:$8 sps:$4 sm:$0xff]   ;;  %v1947_v10 = vld [vmem:[%s2591_s16 + $0x70] ss:$8 sps:$4 sm:$0xff]  }
 0x173   :  { %v713_v11 = vpop.f32.mrf.mxu0  ;;  %1094 = vmatprep.subr.bf16.mxu1 %v1949_v9  ;;  %v1970_v21 = vld [vmem:[%s2591_s16 + $0x34] ss:$8 sps:$4 sm:$0xff]   ;;  %v2006_v9 = vld [vmem:[%s2595_s3] ss:$8 sps:$4 sm:$0xff]  }
 0x174   :  { %v621_v31 = vadd.f32 %v1816_v26, %v580_v23  ;;  %1095 = vmatpush1.bf16.msra.mxu1 %v1947_v10  ;;  %v1976_v23 = vld [vmem:[%s2591_s16 + $0x24] ss:$8 sps:$4 sm:$0xff]   ;;  %v1986_v26 = vld [vmem:[%s2591_s16] ss:$8 sps:$4 sm:$0xff]   ;;  %v2007_v10 = vld [vmem:[%s2597_s18 + $0x38] sm:$0xff]  }
 0x175   :  { %v1869_v13 = vpop.f32.mrf.mxu0 }
 0x176   :  { %v1952_v13 = vld [vmem:[%s2591_s16 + $0x64] ss:$8 sps:$4 sm:$0xff]  }
 0x177   :  { %v716_v14 = vpop.f32.mrf.mxu0  ;;  %1096 = vmatprep.subr.bf16.mxu1 %v1952_v13  ;;  %v2010_v13 = vld [vmem:[%s2597_s18 + $0x20] sm:$0xff]  }
 0x179   :  { %v1870_v16 = vpop.f32.mrf.mxu0 }
 0x17a   :  { %v1956_v16 = vld [vmem:[%s2591_s16 + $0x50] ss:$8 sps:$4 sm:$0xff]  }
 0x189   :  { %v658_v25 = vpop.f32.mrf.mxu1 }
 0x18a   :  { %v659_v27 = vadd.f32 %v658_v25, %v618_v24  ;;  %v1980_v24 = vld [vmem:[%s2591_s16 + $0x10] ss:$8 sps:$4 sm:$0xff]   ;;  %v1982_v25 = vld [vmem:[%s2591_s16 + $0x14] ss:$8 sps:$4 sm:$0xff]  }
 0x18b   :  { %v1863_v29 = vpop.f32.mrf.mxu1 }
 0x18c   :  { %v720_v30 = vadd.f32 %v713_v11, %v659_v27  ;;  %v1946_v11 = vld [vmem:[%s2592_s14 + $0x4] ss:$8 sps:$4 sm:$0xff]  }
 0x18d   :  { %v661_v32 = vpop.f32.mrf.mxu1  ;;  %v1988_v27 = vld [vmem:[%s2591_s16 + $0x4] ss:$8 sps:$4 sm:$0xff]  }
 0x18e   :  { %v729_v33 = vadd.f32 %v1686_v28, %v720_v30  ;;  %v662_v34 = vadd.f32 %v661_v32, %v621_v31  ;;  %v1994_v29 = vld [vmem:[%s2591_s16 + $0x84] ss:$8 sps:$4 sm:$0xff]   ;;  %v2000_v31 = vld [vmem:[%s2594_s4] ss:$8 sps:$4 sm:$0xff]  }
 0x18f   :  { %v1864_v35 = vpop.f32.mrf.mxu1  ;;  %v1998_v30 = vld [vmem:[%s2594_s4 + $0x4] ss:$8 sps:$4 sm:$0xff]   ;;  %v1694_v32 = vld [vmem:[%s2596_s13] ss:$0 sm:$0xff] }
 0x190   :  { %v1687_v36 = vmul.f32 -1.442695, %v729_v33  ;;  %v721_v37 = vadd.f32 %v716_v14, %v662_v34  ;;  %v1950_v14 = vld [vmem:[%s2591_s16 + $0x60] ss:$8 sps:$4 sm:$0xff]   ;;  %1722 = vmatprep.mubr.msk.bf16.mxu1 %vm257_vm1, %v1998_v30 }
 0x191   :  { %1097 = vmatpush1.bf16.msra.mxu1 %v1950_v14  ;;  %v2011_v14 = vld [vmem:[%s2597_s18 + $0x18] sm:$0xff]  }
 0x192   :  { %2036 = vpow2.f32 %v1687_v36  ;;  %v730_v38 = vadd.f32 %v1686_v28, %v721_v37  ;;  %1098 = vmatprep.subr.bf16.mxu1 %v1958_v17  ;;  %v1992_v28 = vld [vmem:[%s2591_s16 + $0x80] ss:$8 sps:$4 sm:$0xff]  }
 0x193   :  { %v2014_v17 = vld [vmem:[%s2597_s18] sm:$0xff]  }
 0x194   :  { %v1688_v39 = vmul.f32 -1.442695, %v730_v38 }
 0x195   :  { %1099 = vmatpush1.bf16.msra.mxu1 %v1956_v16  ;;  %v2013_v16 = vld [vmem:[%s2597_s18 + $0x8] sm:$0xff]  }
 0x196   :  { %2038 = vpow2.f32 %v1688_v39  ;;  %1100 = vmatprep.subr.bf16.mxu1 %v1964_v19 }
 0x199   :  { %1101 = vmatpush1.bf16.msra.mxu1 %v1962_v18  ;;  %v2015_v18 = vld [vmem:[%s2597_s18 + $0x40] sm:$0xff]  }
 0x19a   :  { %1102 = vmatprep.subr.bf16.mxu1 %v1970_v21 }
 0x19d   :  { %1103 = vmatpush1.bf16.msra.mxu1 %v1968_v20 }
 0x19e   :  { %1104 = vmatprep.subr.bf16.mxu1 %v1976_v23 }
 0x19f   :  { %v2037_v44 = vpop.eup %2036 }
 0x1a0   :  { %v737_v45 = vadd.f32 1.0, %v2037_v44 }
 0x1a1   :  { %1105 = vmatpush1.bf16.msra.mxu1 %v1974_v22 }
 0x1a2   :  { %2040 = vrcp.f32 %v737_v45  ;;  %1106 = vmatprep.subr.bf16.mxu1 %v1982_v25 }
 0x1a3   :  { %v2039_v46 = vpop.eup %2038 }
 0x1a4   :  { %v738_v47 = vadd.f32 1.0, %v2039_v46 }
 0x1a5   :  { %1107 = vmatpush1.bf16.msra.mxu1 %v1980_v24 }
 0x1a6   :  { %2042 = vrcp.f32 %v738_v47  ;;  %1108 = vmatprep.subr.bf16.mxu1 %v1988_v27 }
 0x1a9   :  { %1109 = vmatpush1.bf16.msra.mxu1 %v1986_v26  ;;  %v1282_v26 = vld [vmem:[%s2598_s17] sm:$0x3] }
 0x1aa   :  { %1124 = vmatprep.subr.bf16.mxu1 %v1994_v29 }
 0x1ad   :  { %1125 = vmatpush2.bf16.msra.mxu1 %v1992_v28 }
 0x1ae   :  { %1386 = vmatprep.subr.bf16.mxu1 %v2068_v0 }
 0x1af   :  { %v2041_v48 = vpop.eup %2040 }
 0x1b0   :  { %v743_v50 = vmul.f32 %v2041_v48, %v729_v33  ;;  %1127 = vmatmul.mubr.bf16.vlgmr.msra.gmra.mxu1 %v2000_v31  ;;  %v1287_v31 = vrot.slane %v1282_v26, %v88_v42  ;;  %v1441_v42 = vld [vmem:[%s2599_s20] sm:$0xff]  ;;  %s2071_s20 = smov 56  }
 0x1b1   :  { %1387 = vmatpush1.bf16.msra.mxu1 %v2007_v10 }
 0x1b2   :  { %1388 = vmatprep.subr.bf16.mxu1 %v2068_v0 }
 0x1b3   :  { %v2043_v49 = vpop.eup %2042 }
 0x1b4   :  { %v744_v51 = vmul.f32 %v2043_v49, %v730_v38 }
 0x1b6   :  { %v745_v52 = vpack.c.bf16 %v744_v51, %v743_v50 }
 0x1b8   :  { %1874 = vmatmul.mubr.msk.bf16.vlgmr.msra.gmra.mxu0 %vm257_vm1, %v745_v52 }
 0x1b9   :  { %1879 = vmatprep.mubr.msk.bf16.mxu0 %vm2070_vm0, %v2069_v3  ;;  %1878 = vmatpush3.bf16.msra.mxu0 %v1943_v53  ;;  %v1953_v53 = vld [vmem:[%s2593_s15 + $0x70] ss:$8 sps:$4 sm:$0xff]  }
 0x1ba   :  { %923 = vmatprep.subr.bf16.mxu0 %v1946_v11  ;;  %v2008_v11 = vld [vmem:[%s2597_s18 + $0x30] sm:$0xff]  }
 0x1bb   :  { %1389 = vmatpush1.bf16.msra.mxu1 %v2008_v11 }
 0x1bc   :  { %1390 = vmatprep.subr.bf16.mxu1 %v2068_v0 }
 0x270   :  { %v1128_v22 = vpop.f32.mrf.mxu1 }
 0x272   :  { %v1130_v24 = vpop.f32.mrf.mxu1 }
 0x274   :  { %v1132_v27 = vpop.f32.mrf.mxu1 }
 0x278   :  { %v798_v55 = vpop.f32.mrf.mxu0 }
 0x279   :  { %v799_v56 = vadd.f32 %v1689_v54, %v798_v55 }
 0x27a   :  { %v1875_v57 = vpop.f32.mrf.mxu0 }
 0x27b   :  { %v1692_v58 = vmul.f32 -1.442695, %v799_v56  ;;  %v1959_v57 = vld [vmem:[%s2593_s15 + $0x60] ss:$8 sps:$4 sm:$0xff]  }
 0x27c   :  { %v801_v59 = vpop.f32.mrf.mxu0 }
 0x27d   :  { %2044 = vpow2.f32 %v1692_v58  ;;  %v802_v60 = vadd.f32 %v1689_v54, %v801_v59  ;;  %v2004_v54 = vld [vmem:[%s2595_s3 + $0x4] ss:$8 sps:$4 sm:$0xff]   ;;  %v1967_v58 = vld [vmem:[%s2593_s15 + $0x54] ss:$8 sps:$4 sm:$0xff]   ;;  %v1965_v59 = vld [vmem:[%s2593_s15 + $0x50] ss:$8 sps:$4 sm:$0xff]  }
 0x27e   :  { %v1876_v61 = vpop.f32.mrf.mxu0 }
 0x27f   :  { %v1693_v62 = vmul.f32 -1.442695, %v802_v60  ;;  %v1971_v61 = vld [vmem:[%s2593_s15 + $0x40] ss:$8 sps:$4 sm:$0xff]  }
 0x281   :  { %2046 = vpow2.f32 %v1693_v62  ;;  %v1979_v62 = vld [vmem:[%s2593_s15 + $0x34] ss:$8 sps:$4 sm:$0xff]  }
 0x28a   :  { %v2045_v3 = vpop.eup %2044 }
 0x28b   :  { %v811_v63 = vadd.f32 1.0, %v2045_v3  ;;  %v1977_v3 = vld [vmem:[%s2593_s15 + $0x30] ss:$8 sps:$4 sm:$0xff]  }
 0x28d   :  { %2048 = vrcp.f32 %v811_v63  ;;  %v1985_v63 = vld [vmem:[%s2593_s15 + $0x24] ss:$8 sps:$4 sm:$0xff]  }
 0x28e   :  { %v2047_v1 = vpop.eup %2046 }
 0x28f   :  { %v812_v2 = vadd.f32 1.0, %v2047_v1  ;;  %v1983_v1 = vld [vmem:[%s2593_s15 + $0x20] ss:$8 sps:$4 sm:$0xff]  }
 0x291   :  { %2050 = vrcp.f32 %v812_v2  ;;  %v1991_v2 = vld [vmem:[%s2593_s15 + $0x14] ss:$8 sps:$4 sm:$0xff]  }
 0x29a   :  { %v2049_v4 = vpop.eup %2048 }
 0x29b   :  { %v817_v6 = vmul.f32 %v2049_v4, %v799_v56  ;;  %v1961_v56 = vld [vmem:[%s2593_s15 + $0x64] ss:$8 sps:$4 sm:$0xff]   ;;  %v1989_v4 = vld [vmem:[%s2593_s15 + $0x10] ss:$8 sps:$4 sm:$0xff]  }
 0x29e   :  { %v2051_v5 = vpop.eup %2050 }
 0x29f   :  { %v818_v7 = vmul.f32 %v2051_v5, %v802_v60  ;;  %v1973_v60 = vld [vmem:[%s2593_s15 + $0x44] ss:$8 sps:$4 sm:$0xff]  }
 0x2a0   :  { %v1997_v5 = vld [vmem:[%s2593_s15 + $0x4] ss:$8 sps:$4 sm:$0xff]  }
 0x2a1   :  { %v819_v8 = vpack.c.bf16 %v818_v7, %v817_v6  ;;  %v1995_v6 = vld [vmem:[%s2593_s15] ss:$8 sps:$4 sm:$0xff]   ;;  %v2003_v7 = vld [vmem:[%s2593_s15 + $0x84] ss:$8 sps:$4 sm:$0xff]  }
 0x2a3   :  { %1880 = vmatmul.mubr.msk.bf16.vlgmr.msra.gmra.mxu0 %vm257_vm1, %v819_v8  ;;  %v2001_v8 = vld [vmem:[%s2593_s15 + $0x80] ss:$8 sps:$4 sm:$0xff]  }
 0x2a4   :  { %941 = vmatprep.mubr.bf16.mxu0 %v2068_v0  ;;  %924 = vmatpush1.bf16.msra.mxu0 %v1944_v12  ;;  %v2009_v12 = vld [vmem:[%s2597_s18 + $0x28] sm:$0xff]  }
 0x2a5   :  { %1239 = vmatprep.subr.bf16.mxu0 %v1955_v15  ;;  %1391 = vmatpush1.bf16.msra.mxu1 %v2009_v12  ;;  %v2012_v15 = vld [vmem:[%s2597_s18 + $0x10] sm:$0xff]  }
 0x2a6   :  { %1392 = vmatprep.subr.bf16.mxu1 %v2068_v0 }
 0x2a9   :  { %1393 = vmatpush1.bf16.msra.mxu1 %v2010_v13  ;;  %v1535_v13 = vand.u32 127, %v86_v40 }
 0x2aa   :  { %1394 = vmatprep.subr.bf16.mxu1 %v2068_v0 }
 0x2ab   :  { %vm1536_vm6 = vcmp.lt.s32.totalorder %v1535_v13, 72 }
 0x2ad   :  { %1395 = vmatpush1.bf16.msra.mxu1 %v2011_v14 }
 0x2ae   :  { %1396 = vmatprep.subr.bf16.mxu1 %v2068_v0 }
 0x2b1   :  { %1397 = vmatpush1.bf16.msra.mxu1 %v2012_v15 }
 0x2b2   :  { %1398 = vmatprep.subr.bf16.mxu1 %v2068_v0 }
 0x2b5   :  { %1399 = vmatpush1.bf16.msra.mxu1 %v2013_v16 }
 0x2b6   :  { %1400 = vmatprep.subr.bf16.mxu1 %v2068_v0 }
 0x2b9   :  { %1401 = vmatpush1.bf16.msra.mxu1 %v2014_v17 }
 0x2ba   :  { %1416 = vmatprep.subr.bf16.mxu1 %v2068_v0  ;;  %v1291_v0 = vrot.slane %v1282_v26, %v92_v43  ;;  %v1744_v43 = vld [vmem:[%s2600_s19] ss:$0 sm:$0xff] }
 0x2bd   :  { %1417 = vmatpush2.bf16.msra.mxu1 %v2015_v18 }
 0x363   :  { %v872_v33 = vpop.f32.mrf.mxu0 }
 0x364   :  { %v873_v34 = vadd.f32 %v1694_v32, %v872_v33 }
 0x365   :  { %v1881_v35 = vpop.f32.mrf.mxu0 }
 0x366   :  { %v1697_v36 = vmul.f32 -1.442695, %v873_v34 }
 0x367   :  { %v875_v37 = vpop.f32.mrf.mxu0 }
 0x368   :  { %2052 = vpow2.f32 %v1697_v36  ;;  %v876_v38 = vadd.f32 %v1694_v32, %v875_v37 }
 0x369   :  { %v1882_v39 = vpop.f32.mrf.mxu0 }
 0x36a   :  { %v1698_v44 = vmul.f32 -1.442695, %v876_v38 }
 0x36c   :  { %2054 = vpow2.f32 %v1698_v44 }
 0x375   :  { %v2053_v45 = vpop.eup %2052 }
 0x376   :  { %v885_v46 = vadd.f32 1.0, %v2053_v45 }
 0x378   :  { %2056 = vrcp.f32 %v885_v46 }
 0x379   :  { %v2055_v47 = vpop.eup %2054 }
 0x37a   :  { %v886_v48 = vadd.f32 1.0, %v2055_v47 }
 0x37c   :  { %2058 = vrcp.f32 %v886_v48 }
 0x385   :  { %v2057_v49 = vpop.eup %2056 }
 0x386   :  { %v891_v51 = vmul.f32 %v2057_v49, %v873_v34  ;;  %v1134_v34 = vpop.f32.mrf.mxu1 }
 0x389   :  { %v2059_v50 = vpop.eup %2058 }
 0x38a   :  { %v892_v52 = vmul.f32 %v2059_v50, %v876_v38 }
 0x38c   :  { %v893_v55 = vpack.c.bf16 %v892_v52, %v891_v51 }
 0x38e   :  { %1701 = vmatmul.mubr.msk.bf16.vlgmr.msra.gmra.mxu0 %vm257_vm1, %v893_v55 }
 0x38f   :  { %1240 = vmatpush1.bf16.msra.mxu0 %v1953_v53  ;;  %1743 = vmatprep.mubr.msk.bf16.mxu0 %vm257_vm1, %v2004_v54 }
 0x390   :  { %1241 = vmatprep.subr.bf16.mxu0 %v1961_v56 }
 0x393   :  { %1242 = vmatpush1.bf16.msra.mxu0 %v1959_v57 }
 0x394   :  { %1243 = vmatprep.subr.bf16.mxu0 %v1967_v58 }
 0x397   :  { %1244 = vmatpush1.bf16.msra.mxu0 %v1965_v59 }
 0x398   :  { %1245 = vmatprep.subr.bf16.mxu0 %v1973_v60 }
 0x39b   :  { %1246 = vmatpush1.bf16.msra.mxu0 %v1971_v61 }
 0x39c   :  { %1247 = vmatprep.subr.bf16.mxu0 %v1979_v62 }
 0x39f   :  { %1248 = vmatpush1.bf16.msra.mxu0 %v1977_v3 }
 0x3a0   :  { %1249 = vmatprep.subr.bf16.mxu0 %v1985_v63 }
 0x3a3   :  { %1250 = vmatpush1.bf16.msra.mxu0 %v1983_v1 }
 0x3a4   :  { %1251 = vmatprep.subr.bf16.mxu0 %v1991_v2 }
 0x3a7   :  { %1252 = vmatpush1.bf16.msra.mxu0 %v1989_v4 }
 0x3a8   :  { %1253 = vmatprep.subr.bf16.mxu0 %v1997_v5 }
 0x3ab   :  { %1254 = vmatpush1.bf16.msra.mxu0 %v1995_v6  ;;  %v1539_v6 = vld [vmem:[%s2601_s21] sm:$0x3] }
 0x3ac   :  { %1269 = vmatprep.subr.bf16.mxu0 %v2003_v7 }
 0x3af   :  { %1270 = vmatpush2.bf16.msra.mxu0 %v2001_v8 }
 0x3b0   :  { %1883 = vmatprep.subr.mxu0 %v1442_v41 }
 0x3b2   :  { %1272 = vmatmul.mubr.bf16.vlgmr.msra.gmra.mxu0 %v2006_v9 }
 0x3b3   :  { %1884 = vmatpush3.msra.mxu0 %v1442_v41 }
 0x3b4   :  { %1885 = vmatprep.subr.mxu0 %v1441_v42 }
 0x3b5   :  { %1886 = vmatpush3.msra.mxu0 %v1441_v42 }
 0x3b6   :  { %1890 = vmatprep.subr.msk.mxu0 %vm1547_vm2, %v1539_v6 }
 0x44e   :  { %v943_v19 = vpop.f32.mrf.mxu0 }
 0x450   :  { %v945_v20 = vpop.f32.mrf.mxu0 }
 0x452   :  { %v947_v21 = vpop.f32.mrf.mxu0 }
 0x454   :  { %v949_v23 = vpop.f32.mrf.mxu0 }
 0x472   :  { %v1273_v25 = vpop.f32.mrf.mxu0 }
 0x473   :  { %v1274_v30 = vadd.f32 %v1273_v25, %v1128_v22 }
 0x474   :  { %v1275_v28 = vpop.f32.mrf.mxu0 }
 0x475   :  { %v1276_v29 = vadd.f32 %v1275_v28, %v1130_v24  ;;  %v1294_v39 = vadd.f32 %v1287_v31, %v1274_v30 }
 0x476   :  { %v1277_v32 = vpop.f32.mrf.mxu0 }
 0x477   :  { %v1278_v33 = vadd.f32 %v1277_v32, %v1132_v27  ;;  %v1295_v36 = vadd.f32 %v1291_v0, %v1276_v29  ;;  %v1298_v48 = vmul.f32 %v1294_v39, %v943_v19 }
 0x478   :  { %v1279_v35 = vpop.f32.mrf.mxu0 }
 0x479   :  { %v1296_v37 = vadd.f32 %v1287_v31, %v1278_v33  ;;  %v1280_v38 = vadd.f32 %v1279_v35, %v1134_v34  ;;  %v1299_v46 = vmul.f32 %v1295_v36, %v945_v20 }
 0x47b   :  { %v1297_v44 = vadd.f32 %v1291_v0, %v1280_v38  ;;  %v1300_v45 = vmul.f32 %v1296_v37, %v947_v21 }
 0x47d   :  { %v1301_v47 = vmul.f32 %v1297_v44, %v949_v23  ;;  %v1302_v50 = vpack.c.bf16 %v1300_v45, %v1298_v48 }
 0x47f   :  { %v1303_v49 = vpack.c.bf16 %v1301_v47, %v1299_v46 }
 0x481   :  { %1754 = vmatprep.mubr.msk.bf16.mxu1 %vm257_vm1, %v1303_v49 }
 0x482   :  { %1419 = vmatmul.mubr.bf16.vlgmr.msra.gmra.mxu1 %v1302_v50 }
 0x542   :  { %v1420_v51 = vpop.f32.mrf.mxu1 }
 0x543   :  { %v1421_v52 = vadd.f32 %v1744_v43, %v1420_v51 }
 0x544   :  { %v1422_v53 = vpop.f32.mrf.mxu1 }
 0x545   :  { %v1755_v54 = vmul.f32 -1.442695, %v1421_v52  ;;  %v1537_v16 = vsel %vm1536_vm6, %v1421_v52, 0.0 }
 0x546   :  { %v1423_v55 = vpop.f32.mrf.mxu1 }
 0x547   :  { %2060 = vpow2.f32 %v1755_v54  ;;  %v1424_v56 = vadd.f32 %v1744_v43, %v1423_v55 }
 0x548   :  { %v1425_v57 = vpop.f32.mrf.mxu1 }
 0x549   :  { %v1756_v58 = vmul.f32 -1.442695, %v1424_v56  ;;  %v1538_v15 = vsel %vm1536_vm6, %v1424_v56, 0.0 }
 0x54b   :  { %2062 = vpow2.f32 %v1756_v58 }
 0x554   :  { %v2061_v59 = vpop.eup %2060 }
 0x555   :  { %v1433_v60 = vadd.f32 1.0, %v2061_v59 }
 0x557   :  { %2064 = vrcp.f32 %v1433_v60 }
 0x558   :  { %v2063_v61 = vpop.eup %2062 }
 0x559   :  { %v1434_v62 = vadd.f32 1.0, %v2063_v61 }
 0x55b   :  { %2066 = vrcp.f32 %v1434_v62 }
 0x564   :  { %v2065_v3 = vpop.eup %2064 }
 0x565   :  { %v1439_v63 = vmul.f32 %v2065_v3, %v1421_v52 }
 0x567   :  { %1445 = vrot.lane.b32.xlu1 %v1439_v63, %s2071_s20 }
 0x568   :  { %v2067_v1 = vpop.eup %2066 }
 0x569   :  { %v1440_v2 = vmul.f32 %v2067_v1, %v1424_v56 }
 0x56b   :  { %1447 = vrot.lane.b32.xlu1 %v1440_v2, %s2071_s20 }
 0x5d9   :  { %v1446_v4 = vpop.permute.xlu1 %1445 }
 0x5da   :  { %1887 = vmatprep.mubr.msk.f32.mxu0 %vm257_vm1, %v1446_v4 }
 0x5dd   :  { %v1448_v5 = vpop.permute.xlu1 %1447 }
 0x5de   :  { %1888 = vmatmul.mubr.msk.f32.vlgmr.msra.gmra.mxu0 %vm257_vm1, %v1448_v5 }
 0x5df   :  { %1891 = vmatpush3.msk.msra.mxu0 %vm1547_vm2, %v1539_v6 }
 0x69e   :  { %v1889_v7 = vpop.f32.mrf.mxu0 }
 0x69f   :  { %v1531_v8 = vmul.f32 0.2, %v1889_v7  ;;  %vm1529_vm3 = vcmp.gt.f32.partialorder %v1889_v7, 0.0 }
 0x6a0   :  { %v1519_v9 = vpop.f32.mrf.mxu0 }
 0x6a1   :  { %vm1528_vm4 = vcmp.gt.f32.partialorder %v1519_v9, 0.0  ;;  %v1530_v10 = vmul.f32 0.2, %v1519_v9  ;;  %v1533_v12 = vsel %vm1529_vm3, %v1889_v7, %v1531_v8 }
 0x6a3   :  { %v1532_v11 = vsel %vm1528_vm4, %v1519_v9, %v1530_v10 }
 0x6a4   :  { %1892 = vmatprep.mubr.msk.f32.mxu0 %vm1540_vm5, %v1532_v11 }
 0x6a5   :  { %1893 = vmatmul.mubr.msk.f32.vlgmr.msra.gmra.mxu0 %vm1540_vm5, %v1533_v12 }
 0x765   :  { %v1894_v14 = vpop.f32.mrf.mxu0 }
 0x766   :  { %v1627_v18 = vadd.f32 %v1894_v14, %v1538_v15 }
 0x767   :  { %v1617_v17 = vpop.f32.mrf.mxu0 }
 0x768   :  { %v1626_v19 = vadd.f32 %v1617_v17, %v1537_v16 }
 0x76a   :  { %v1769_v20 = vpack.c.bf16 %v1627_v18, %v1626_v19 }
 0x76c   :  { %1770 = vst [vmem:[%s2602_s22] sm:$0xff] %v1769_v20  }

// kernel: equiformer_v2_backbone_forward.16
= control target key start
LH: loop header
LB: loop body
LE: loop exit
PB: predicated region body
PF: predicated region fallthrough
CT: control target
= control target key end

     0   :  { %vm68_vm0 = vcmask 1041408   ;;  %v1344_v1 = vmov 0.0   ;;  %vm1345_vm1 = vmmov 0   ;;  %vm65_vm2 = vcmask 15360   ;;  %s1348_s27 = smov 16   ;;  %s1349_s26 = smov 112   ;;  %s1775_s0 = inlined_call_operand.vmem [shape: f32[8,128], index: 0, kind: input, shape index: {}]   ;;  %s1776_s2 = inlined_call_operand.vmem [shape: f32[2,72], index: 2, kind: input, shape index: {}]   ;;  %s1777_s3 = inlined_call_operand.vmem [shape: bf16[72,144], index: 3, kind: input, shape index: {}]   ;;  %s1778_s5 = inlined_call_operand.vmem [shape: f32[144,3], index: 5, kind: input, shape index: {}]   ;;  %s1779_s4 = inlined_call_operand.vmem [shape: f32[1,144], index: 4, kind: input, shape index: {}]   ;;  %s1780_s1 = inlined_call_operand.vmem [shape: f32[8,144], index: 1, kind: input, shape index: {}]   ;;  %s1781_s6 = inlined_call_operand.vmem [shape: f32[3,144], index: 6, kind: input, shape index: {}]   ;;  %s1782_s7 = inlined_call_operand.vmem [shape: f32[1,3], index: 7, kind: input, shape index: {}]   ;;  %s1783_s10 = inlined_call_operand.vmem [shape: bf16[16,16], index: 10, kind: input, shape index: {}]   ;;  %s1784_s13 = inlined_call_operand.vmem [shape: bf16[144,144], index: 13, kind: input, shape index: {}]   ;;  %s1785_s8 = inlined_call_operand.vmem [shape: f32[1,144], index: 8, kind: input, shape index: {}]   ;;  %s1786_s9 = inlined_call_operand.vmem [shape: f32[1,144], index: 9, kind: input, shape index: {}]   ;;  %s1787_s12 = inlined_call_operand.vmem [shape: bf16[16,128], index: 12, kind: input, shape index: {}]   ;;  %s1788_s15 = inlined_call_operand.vmem [shape: bf16[16,144], index: 15, kind: input, shape index: {}]   ;;  %s1789_s11 = inlined_call_operand.vmem [shape: f32[1,16], index: 11, kind: input, shape index: {}]   ;;  %s1790_s14 = inlined_call_operand.vmem [shape: f32[1,144], index: 14, kind: input, shape index: {}]   ;;  %s1791_s16 = inlined_call_operand.vmem [shape: bf16[128,144], index: 16, kind: input, shape index: {}]   ;;  %s1792_s17 = inlined_call_operand.vmem [shape: f32[1,144], index: 17, kind: input, shape index: {}]   ;;  %s1793_s18 = inlined_call_operand.vmem [shape: f32[8,144], index: 18, kind: output, shape index: {}]  }
   0x1   :  { %1795 = sst [smem:[#allocation2_spill]] %s1775_s0  ;;  %1238 = vmatprep.subr.mxu0 %v1344_v1  ;;  %1240 = vmatprep.mubr.msk.f32.mxu0 %vm1345_vm1, %v1344_v1  ;;  %vm205_vm3 = vcmask 1043456   ;;  %v1347_v12 = vmov 0   ;;  %v284_v17 = vld [vmem:[%s1778_s5 + $0x78] sm:$0xff]  ;;  %v283_v18 = vld [vmem:[%s1778_s5 + $0x70] sm:$0xff]  ;;  %v282_v19 = vld [vmem:[%s1778_s5 + $0x68] sm:$0xff]  ;;  %v257_v41 = vlaneseq }
   0x2   :  { %1796 = sst [smem:[#allocation3_spill]] %s1776_s2  ;;  %s1346_s2 = smov 56   ;;  %244 = vmatprep.mubr.bf16.mxu1 %v1347_v12  ;;  %v281_v20 = vld [vmem:[%s1778_s5 + $0x60] sm:$0xff]  ;;  %v280_v21 = vld [vmem:[%s1778_s5 + $0x58] sm:$0xff]  ;;  %v279_v22 = vld [vmem:[%s1778_s5 + $0x50] sm:$0xff]  ;;  %vm201_vm4 = vcmask 588800  }
   0x3   :  { %1797 = sst [smem:[#allocation4_spill]] %s1777_s3  ;;  %v278_v23 = vld [vmem:[%s1778_s5 + $0x48] sm:$0xff]  ;;  %v277_v24 = vld [vmem:[%s1778_s5 + $0x40] sm:$0xff]  ;;  %v276_v25 = vld [vmem:[%s1778_s5 + $0x38] sm:$0xff]  ;;  %v258_v42 = vshrl.u32 %v257_v41, 7  ;;  %vm291_vm5 = vcmask 130048  }
   0x4   :  { %s1798_s29 = sld [smem:[#allocation2_spill]]  ;;  %v275_v26 = vld [vmem:[%s1778_s5 + $0x30] sm:$0xff]  ;;  %v274_v27 = vld [vmem:[%s1778_s5 + $0x28] sm:$0xff]  ;;  %v273_v28 = vld [vmem:[%s1778_s5 + $0x20] sm:$0xff]  ;;  %vm462_vm6 = vcmask 1042432   ;;  %v449_v62 = vand.u32 127, %v257_v41 }
   0x5   :  { %s1799_s19 = sld [smem:[#allocation3_spill]]  ;;  %v272_v29 = vld [vmem:[%s1778_s5 + $0x18] sm:$0xff]  ;;  %v271_v30 = vld [vmem:[%s1778_s5 + $0x10] sm:$0xff]  ;;  %v270_v37 = vld [vmem:[%s1778_s5 + $0x8] sm:$0xff]  ;;  %v1577_v43 = vsub.s32 0, %v258_v42  ;;  %v1582_v45 = vsub.s32 1, %v258_v42 }
   0x6   :  { %s1800_s22 = sld [smem:[#allocation4_spill]]  ;;  %v269_v38 = vld [vmem:[%s1778_s5] sm:$0xff]  ;;  %v286_v39 = vld [vmem:[%s1778_s5 + $0x88] sm:$0xff]  ;;  %vm450_vm7 = vcmp.eq.s32.totalorder %v449_v62, 0  ;;  %vm458_vm8 = vcmask 23552   ;;  %vm964_vm9 = vcmask 916480  }
   0x7   :  { %v285_v40 = vld [vmem:[%s1778_s5 + $0x80] sm:$0xff]  ;;  %v145_v49 = vld [vmem:[%s1780_s1 + $0x8] sm:$0xff]  ;;  %v1291_v41 = vld [vmem:[%s1784_s13 + $0x34] ss:$8 sps:$4 sm:$0xff]  }
   0x8   :  { %v255_v44 = vld [vmem:[%s1779_s4] sm:$0x3]  ;;  %v1289_v42 = vld [vmem:[%s1784_s13 + $0x30] ss:$8 sps:$4 sm:$0xff]  }
   0x9   :  { %v144_v46 = vld [vmem:[%s1780_s1] sm:$0xff]  ;;  %v260_v48 = vrot.slane %v255_v44, %v1577_v43  ;;  %v264_v51 = vrot.slane %v255_v44, %v1582_v45 }
   0xa   :  { %v1448_v0 = vld [vmem:[%s1798_s29] sm:$0xff] }
   0xb   :  { %v61_v2 = vld [vmem:[%s1799_s19] sm:$0x3]  ;;  %63 = vrot.lane.b32.xlu0 %v1448_v0, %s1346_s2  ;;  %v1294_v44 = vld [vmem:[%s1784_s13 + $0x24] ss:$8 sps:$4 sm:$0xff]  }
   0xc   :  { %1239 = vmatpush3.msk.msra.mxu0 %vm68_vm0, %v61_v2  ;;  %v155_v4 = vld [vmem:[%s1800_s22 + $0x40] sm:$0xff]  ;;  %v1263_v8 = vld [vmem:[%s1800_s22 + $0x34] ss:$8 sps:$4 sm:$0xff]   ;;  %v1265_v9 = vld [vmem:[%s1800_s22 + $0x30] ss:$8 sps:$4 sm:$0xff]  }
   0xd   :  { %295 = vmatprep.subr.mxu0 %v1344_v1  ;;  %v1175_v5 = vcombine.high %v155_v4, %v155_v4  ;;  %v1174_v6 = vcombine.low %v155_v4, %v155_v4  ;;  %v1266_v10 = vld [vmem:[%s1800_s22 + $0x24] ss:$8 sps:$4 sm:$0xff]   ;;  %v1268_v11 = vld [vmem:[%s1800_s22 + $0x20] ss:$8 sps:$4 sm:$0xff]   ;;  %v1269_v13 = vld [vmem:[%s1800_s22 + $0x14] ss:$8 sps:$4 sm:$0xff]  }
   0xe   :  { %v1271_v14 = vld [vmem:[%s1800_s22 + $0x10] ss:$8 sps:$4 sm:$0xff]   ;;  %v1272_v15 = vld [vmem:[%s1800_s22 + $0x4] ss:$8 sps:$4 sm:$0xff]   ;;  %v1274_v16 = vld [vmem:[%s1800_s22] ss:$8 sps:$4 sm:$0xff]  }
   0xf   :  { %1176 = vmatprep.subr.msk.bf16.mxu1 %vm205_vm3, %v1175_v5  ;;  %v207_v7 = vsel %vm205_vm3, %v1174_v6, 0  ;;  %v287_v60 = vld [vmem:[%s1781_s6] sm:$0x77] }
  0x10   :  { %219 = vmatpush1.bf16.msra.mxu1 %v207_v7  ;;  %v457_v61 = vcombine.high %v287_v60, %v287_v60  ;;  %v1179_v63 = vld [vmem:[%s1782_s7] ss:$0 sm:$0xff] }
  0x11   :  { %220 = vmatprep.subr.bf16.mxu1 %v1263_v8 }
  0x14   :  { %221 = vmatpush1.bf16.msra.mxu1 %v1265_v9 }
  0x15   :  { %222 = vmatprep.subr.bf16.mxu1 %v1266_v10 }
  0x18   :  { %223 = vmatpush1.bf16.msra.mxu1 %v1268_v11 }
  0x19   :  { %224 = vmatprep.subr.bf16.mxu1 %v1269_v13  ;;  %v1276_v13 = vld [vmem:[%s1783_s10] sm:$0xff]  }
  0x1c   :  { %225 = vmatpush1.bf16.msra.mxu1 %v1271_v14  ;;  %v1279_v14 = vld [vmem:[%s1784_s13 + $0x74] ss:$8 sps:$4 sm:$0xff]  }
  0x1d   :  { %226 = vmatprep.subr.bf16.mxu1 %v1272_v15 }
  0x20   :  { %227 = vmatpush1.bf16.msra.mxu1 %v1274_v16  ;;  %v289_v16 = vld [vmem:[%s1785_s8] sm:$0x3] }
  0x21   :  { %377 = vmatprep.subr.mxu1 %v1344_v1 }
  0x7d   :  { %v64_v3 = vpop.permute.xlu0 %63 }
  0x7e   :  { %1241 = vmatmul.mubr.msk.f32.vlgmr.msra.gmra.mxu0 %vm65_vm2, %v64_v3 }
  0x7f   :  { %296 = vmatpush1.msra.mxu0 %v284_v17 }
  0x80   :  { %297 = vmatprep.subr.mxu0 %v1344_v1 }
  0x81   :  { %298 = vmatpush1.msra.mxu0 %v283_v18 }
  0x82   :  { %299 = vmatprep.subr.mxu0 %v1344_v1 }
  0x83   :  { %300 = vmatpush1.msra.mxu0 %v282_v19 }
  0x84   :  { %301 = vmatprep.subr.mxu0 %v1344_v1 }
  0x85   :  { %302 = vmatpush1.msra.mxu0 %v281_v20 }
  0x86   :  { %303 = vmatprep.subr.mxu0 %v1344_v1 }
  0x87   :  { %304 = vmatpush1.msra.mxu0 %v280_v21 }
  0x88   :  { %305 = vmatprep.subr.mxu0 %v1344_v1 }
  0x89   :  { %306 = vmatpush1.msra.mxu0 %v279_v22 }
  0x8a   :  { %307 = vmatprep.subr.mxu0 %v1344_v1 }
  0x8b   :  { %308 = vmatpush1.msra.mxu0 %v278_v23 }
  0x8c   :  { %309 = vmatprep.subr.mxu0 %v1344_v1 }
  0x8d   :  { %310 = vmatpush1.msra.mxu0 %v277_v24 }
  0x8e   :  { %311 = vmatprep.subr.mxu0 %v1344_v1 }
  0x8f   :  { %312 = vmatpush1.msra.mxu0 %v276_v25 }
  0x90   :  { %313 = vmatprep.subr.mxu0 %v1344_v1 }
  0x91   :  { %314 = vmatpush1.msra.mxu0 %v275_v26 }
  0x92   :  { %315 = vmatprep.subr.mxu0 %v1344_v1 }
  0x93   :  { %316 = vmatpush1.msra.mxu0 %v274_v27 }
  0x94   :  { %317 = vmatprep.subr.mxu0 %v1344_v1 }
  0x95   :  { %318 = vmatpush1.msra.mxu0 %v273_v28 }
  0x96   :  { %319 = vmatprep.subr.mxu0 %v1344_v1 }
  0x97   :  { %320 = vmatpush1.msra.mxu0 %v272_v29 }
  0x98   :  { %321 = vmatprep.subr.mxu0 %v1344_v1 }
  0x99   :  { %322 = vmatpush1.msra.mxu0 %v271_v30 }
  0x9a   :  { %323 = vmatprep.subr.mxu0 %v1344_v1 }
  0x9b   :  { %324 = vmatpush1.msra.mxu0 %v270_v37 }
  0x9c   :  { %325 = vmatprep.subr.mxu0 %v1344_v1 }
  0x9d   :  { %326 = vmatpush1.msra.mxu0 %v269_v38 }
  0x9e   :  { %355 = vmatprep.subr.mxu0 %v1344_v1 }
  0x9f   :  { %356 = vmatpush2.msra.mxu0 %v286_v39 }
  0xa0   :  { %357 = vmatprep.subr.mxu0 %v1344_v1 }
  0xa1   :  { %358 = vmatpush2.msra.mxu0 %v285_v40 }
  0xa2   :  { %1181 = vmatprep.subr.msk.mxu0 %vm462_vm6, %v457_v61 }
 0x13e   :  { %v138_v31 = vpop.f32.mrf.mxu0 }
 0x13f   :  { %v139_v32 = vadd.f32 1e-08, %v138_v31  ;;  %v1277_v31 = vld [vmem:[%s1784_s13 + $0x70] ss:$8 sps:$4 sm:$0xff]  }
 0x140   :  { %v1242_v33 = vpop.f32.mrf.mxu0 }
 0x141   :  { %1332 = vrcp.f32 %v139_v32 }
 0x14e   :  { %v1333_v34 = vpop.eup %1332 }
 0x14f   :  { %v143_v35 = vmul.f32 %v1333_v34, %v1448_v0  ;;  %v1282_v34 = vld [vmem:[%s1784_s13 + $0x64] ss:$8 sps:$4 sm:$0xff]  }
 0x151   :  { %v146_v36 = vpack.c.bf16 %v143_v35, %v143_v35 }
 0x153   :  { %1177 = vmatmul.mubr.msk.bf16.vlgmr.msra.gmra.mxu1 %vm201_vm4, %v146_v36  ;;  %v1280_v36 = vld [vmem:[%s1784_s13 + $0x60] ss:$8 sps:$4 sm:$0xff]  }
 0x154   :  { %378 = vmatpush1.msra.mxu1 %v284_v17 }
 0x155   :  { %379 = vmatprep.subr.mxu1 %v1344_v1 }
 0x156   :  { %380 = vmatpush1.msra.mxu1 %v283_v18 }
 0x157   :  { %381 = vmatprep.subr.mxu1 %v1344_v1 }
 0x158   :  { %382 = vmatpush1.msra.mxu1 %v282_v19  ;;  %v620_v19 = vrot.slane %v289_v16, %v1577_v43 }
 0x159   :  { %383 = vmatprep.subr.mxu1 %v1344_v1 }
 0x15a   :  { %384 = vmatpush1.msra.mxu1 %v281_v20 }
 0x15b   :  { %385 = vmatprep.subr.mxu1 %v1344_v1 }
 0x15c   :  { %386 = vmatpush1.msra.mxu1 %v280_v21 }
 0x15d   :  { %387 = vmatprep.subr.mxu1 %v1344_v1 }
 0x15e   :  { %388 = vmatpush1.msra.mxu1 %v279_v22 }
 0x15f   :  { %389 = vmatprep.subr.mxu1 %v1344_v1 }
 0x160   :  { %390 = vmatpush1.msra.mxu1 %v278_v23 }
 0x161   :  { %391 = vmatprep.subr.mxu1 %v1344_v1 }
 0x162   :  { %392 = vmatpush1.msra.mxu1 %v277_v24  ;;  %v624_v24 = vrot.slane %v289_v16, %v1582_v45 }
 0x163   :  { %393 = vmatprep.subr.mxu1 %v1344_v1 }
 0x164   :  { %394 = vmatpush1.msra.mxu1 %v276_v25 }
 0x165   :  { %395 = vmatprep.subr.mxu1 %v1344_v1 }
 0x166   :  { %396 = vmatpush1.msra.mxu1 %v275_v26 }
 0x167   :  { %397 = vmatprep.subr.mxu1 %v1344_v1 }
 0x168   :  { %398 = vmatpush1.msra.mxu1 %v274_v27 }
 0x169   :  { %399 = vmatprep.subr.mxu1 %v1344_v1 }
 0x16a   :  { %400 = vmatpush1.msra.mxu1 %v273_v28 }
 0x16b   :  { %401 = vmatprep.subr.mxu1 %v1344_v1 }
 0x16c   :  { %402 = vmatpush1.msra.mxu1 %v272_v29 }
 0x16d   :  { %403 = vmatprep.subr.mxu1 %v1344_v1 }
 0x16e   :  { %404 = vmatpush1.msra.mxu1 %v271_v30 }
 0x16f   :  { %405 = vmatprep.subr.mxu1 %v1344_v1 }
 0x170   :  { %406 = vmatpush1.msra.mxu1 %v270_v37  ;;  %v1285_v37 = vld [vmem:[%s1784_s13 + $0x54] ss:$8 sps:$4 sm:$0xff]  }
 0x171   :  { %407 = vmatprep.subr.mxu1 %v1344_v1 }
 0x172   :  { %408 = vmatpush1.msra.mxu1 %v269_v38  ;;  %v1283_v38 = vld [vmem:[%s1784_s13 + $0x50] ss:$8 sps:$4 sm:$0xff]  }
 0x173   :  { %437 = vmatprep.subr.mxu1 %v1344_v1 }
 0x174   :  { %438 = vmatpush2.msra.mxu1 %v286_v39  ;;  %v1288_v39 = vld [vmem:[%s1784_s13 + $0x44] ss:$8 sps:$4 sm:$0xff]  }
 0x175   :  { %439 = vmatprep.subr.mxu1 %v1344_v1 }
 0x176   :  { %440 = vmatpush2.msra.mxu1 %v285_v40  ;;  %v1286_v40 = vld [vmem:[%s1784_s13 + $0x40] ss:$8 sps:$4 sm:$0xff]  }
 0x177   :  { %1249 = vmatprep.subr.bf16.mxu1 %v1344_v1 }
 0x213   :  { %v246_v47 = vpop.f32.mrf.mxu1 }
 0x214   :  { %v253_v50 = vadd.f32 %v246_v47, %v144_v46  ;;  %v1292_v46 = vld [vmem:[%s1784_s13 + $0x20] ss:$8 sps:$4 sm:$0xff]   ;;  %v1297_v47 = vld [vmem:[%s1784_s13 + $0x14] ss:$8 sps:$4 sm:$0xff]  }
 0x215   :  { %v248_v52 = vpop.f32.mrf.mxu1 }
 0x216   :  { %v254_v53 = vadd.f32 %v248_v52, %v145_v49  ;;  %v1592_v54 = vadd.f32 %v260_v48, %v253_v50  ;;  %v1295_v48 = vld [vmem:[%s1784_s13 + $0x10] ss:$8 sps:$4 sm:$0xff]   ;;  %v1300_v49 = vld [vmem:[%s1784_s13 + $0x4] ss:$8 sps:$4 sm:$0xff]   ;;  %v1298_v50 = vld [vmem:[%s1784_s13] ss:$8 sps:$4 sm:$0xff]  }
 0x217   :  { %v250_v55 = vpop.f32.mrf.mxu1  ;;  %v1301_v52 = vld [vmem:[%s1784_s13 + $0x80] ss:$8 sps:$4 sm:$0xff]  }
 0x218   :  { %v1594_v56 = vadd.f32 %v264_v51, %v254_v53  ;;  %v372_v59 = vmul.f32 %v1592_v54, %v1592_v54  ;;  %v1303_v51 = vld [vmem:[%s1784_s13 + $0x84] ss:$8 sps:$4 sm:$0xff]  }
 0x219   :  { %v251_v57 = vpop.f32.mrf.mxu1  ;;  %v1304_v53 = vld [vmem:[%s1787_s12] sm:$0xff]  }
 0x21a   :  { %1178 = vmatprep.mubr.msk.f32.mxu0 %vm291_vm5, %v1594_v56  ;;  %v373_v58 = vmul.f32 %v1594_v56, %v1594_v56  ;;  %v1307_v55 = vld [vmem:[%s1788_s15 + $0x4] ss:$8 sps:$4 sm:$0xff]   ;;  %v1305_v57 = vld [vmem:[%s1788_s15] ss:$8 sps:$4 sm:$0xff]  }
 0x21b   :  { %360 = vmatmul.mubr.f32.vlgmr.msra.gmra.mxu0 %v1592_v54 }
 0x21c   :  { %1180 = vmatprep.mubr.msk.f32.mxu1 %vm291_vm5, %v373_v58  ;;  %531 = vmatprep.mubr.f32.mxu0 %v1344_v1  ;;  %v1187_v58 = vld [vmem:[%s1789_s11] ss:$0 sm:$0xff] }
 0x21d   :  { %442 = vmatmul.mubr.f32.vlgmr.msra.gmra.mxu1 %v372_v59  ;;  %1182 = vmatpush1.msk.msra.mxu0 %vm462_vm6, %v287_v60 }
 0x21e   :  { %1251 = vmatprep.mubr.msk.bf16.mxu1 %vm1345_vm1, %v1344_v1  ;;  %1184 = vmatprep.subr.msk.mxu0 %vm462_vm6, %v457_v61 }
 0x21f   :  { %1250 = vmatpush3.bf16.msra.mxu1 %v1304_v53 }
 0x2db   :  { %v361_v0 = vpop.f32.mrf.mxu0 }
 0x2dc   :  { %v371_v2 = vmul.f32 %v1179_v63, %v361_v0 }
 0x2dd   :  { %v363_v3 = vpop.f32.mrf.mxu0  ;;  %v443_v4 = vpop.f32.mrf.mxu1 }
 0x2de   :  { %v451_v5 = vsel %vm450_vm7, %v371_v2, 0.0  ;;  %v447_v6 = vmul.f32 %v1179_v63, %v443_v4  ;;  %v726_v4 = vld [vmem:[%s1790_s14] sm:$0x3] }
 0x2df   :  { %v452_v7 = vmul.f32 %v451_v5, %v451_v5  ;;  %v445_v8 = vpop.f32.mrf.mxu1  ;;  %1183 = vmatmul.mubr.msk.f32.vlgmr.msra.gmra.mxu0 %vm458_vm8, %v451_v5  ;;  %v731_v5 = vrot.slane %v726_v4, %v1577_v43 }
 0x2e0   :  { %1185 = vmatpush1.msk.msra.mxu0 %vm462_vm6, %v287_v60  ;;  %605 = vmatprep.mubr.f32.mxu0 %v1344_v1  ;;  %v735_v8 = vrot.slane %v726_v4, %v1582_v45 }
 0x2e1   :  { %v453_v9 = vsub.f32 %v447_v6, %v452_v7  ;;  %1243 = vmatprep.subr.bf16.mxu0 %v1344_v1 }
 0x2e3   :  { %v454_v10 = vadd.f32 1e-05, %v453_v9 }
 0x2e5   :  { %1334 = vrsqrt.f32 %v454_v10 }
 0x2f2   :  { %v1335_v11 = vpop.eup %1334 }
 0x2f3   :  { %1186 = vmatmul.mubr.msk.f32.vlgmr.msra.gmra.mxu0 %vm458_vm8, %v1335_v11 }
 0x2f4   :  { %1245 = vmatprep.mubr.msk.bf16.mxu0 %vm1345_vm1, %v1344_v1  ;;  %1244 = vmatpush3.bf16.msra.mxu0 %v1276_v13  ;;  %v290_v1 = vld [vmem:[%s1786_s9] sm:$0x3] }
 0x2f5   :  { %831 = vmatprep.subr.bf16.mxu0 %v1279_v14  ;;  %v633_v23 = vrot.slane %v290_v1, %v1577_v43  ;;  %v637_v28 = vrot.slane %v290_v1, %v1582_v45 }
 0x39f   :  { %v533_v15 = vpop.f32.mrf.mxu0 }
 0x3a0   :  { %v612_v18 = vsub.f32 %v1592_v54, %v533_v15 }
 0x3a1   :  { %v535_v17 = vpop.f32.mrf.mxu0 }
 0x3a2   :  { %v613_v21 = vsub.f32 %v1594_v56, %v535_v17 }
 0x3b3   :  { %v607_v20 = vpop.f32.mrf.mxu0 }
 0x3b4   :  { %v614_v22 = vmul.f32 %v612_v18, %v607_v20 }
 0x3b5   :  { %v609_v25 = vpop.f32.mrf.mxu0 }
 0x3b6   :  { %v627_v26 = vmul.f32 %v620_v19, %v614_v22  ;;  %v615_v27 = vmul.f32 %v613_v21, %v609_v25  ;;  %v1308_v21 = vld [vmem:[%s1791_s16 + $0x70] ss:$8 sps:$4 sm:$0xff]   ;;  %v1313_v22 = vld [vmem:[%s1791_s16 + $0x64] ss:$8 sps:$4 sm:$0xff]  }
 0x3b8   :  { %v640_v29 = vadd.f32 %v633_v23, %v627_v26  ;;  %v628_v30 = vmul.f32 %v624_v24, %v615_v27  ;;  %v1311_v24 = vld [vmem:[%s1791_s16 + $0x60] ss:$8 sps:$4 sm:$0xff]   ;;  %v1316_v26 = vld [vmem:[%s1791_s16 + $0x54] ss:$8 sps:$4 sm:$0xff]  }
 0x3ba   :  { %v642_v32 = vpack.c.bf16 %v640_v29, %v640_v29  ;;  %v641_v33 = vadd.f32 %v637_v28, %v628_v30  ;;  %v1314_v28 = vld [vmem:[%s1791_s16 + $0x50] ss:$8 sps:$4 sm:$0xff]   ;;  %v1319_v30 = vld [vmem:[%s1791_s16 + $0x44] ss:$8 sps:$4 sm:$0xff]  }
 0x3bc   :  { %v707_v35 = vpack.c.bf16 %v641_v33, %v641_v33  ;;  %1246 = vmatmul.mubr.msk.bf16.vlgmr.msra.gmra.mxu0 %vm291_vm5, %v642_v32  ;;  %v1320_v33 = vld [vmem:[%s1791_s16 + $0x30] ss:$8 sps:$4 sm:$0xff]  }
 0x3bd   :  { %832 = vmatpush1.bf16.msra.mxu0 %v1277_v31  ;;  %v1317_v31 = vld [vmem:[%s1791_s16 + $0x40] ss:$8 sps:$4 sm:$0xff]  }
 0x3be   :  { %1209 = vmatprep.mubr.msk.bf16.mxu0 %vm291_vm5, %v707_v35  ;;  %833 = vmatprep.subr.bf16.mxu0 %v1282_v34  ;;  %v1325_v34 = vld [vmem:[%s1791_s16 + $0x24] ss:$8 sps:$4 sm:$0xff]   ;;  %v1323_v35 = vld [vmem:[%s1791_s16 + $0x20] ss:$8 sps:$4 sm:$0xff]  }
 0x3c1   :  { %834 = vmatpush1.bf16.msra.mxu0 %v1280_v36  ;;  %v1328_v36 = vld [vmem:[%s1791_s16 + $0x14] ss:$8 sps:$4 sm:$0xff]  }
 0x3c2   :  { %835 = vmatprep.subr.bf16.mxu0 %v1285_v37  ;;  %v1326_v37 = vld [vmem:[%s1791_s16 + $0x10] ss:$8 sps:$4 sm:$0xff]  }
 0x3c5   :  { %836 = vmatpush1.bf16.msra.mxu0 %v1283_v38 }
 0x3c6   :  { %837 = vmatprep.subr.bf16.mxu0 %v1288_v39 }
 0x3c9   :  { %838 = vmatpush1.bf16.msra.mxu0 %v1286_v40 }
 0x3ca   :  { %839 = vmatprep.subr.bf16.mxu0 %v1291_v41 }
 0x3cd   :  { %840 = vmatpush1.bf16.msra.mxu0 %v1289_v42  ;;  %v1329_v42 = vld [vmem:[%s1791_s16] ss:$8 sps:$4 sm:$0xff]  }
 0x3ce   :  { %841 = vmatprep.subr.bf16.mxu0 %v1294_v44  ;;  %v1331_v44 = vld [vmem:[%s1791_s16 + $0x4] ss:$8 sps:$4 sm:$0xff]  }
 0x3d1   :  { %842 = vmatpush1.bf16.msra.mxu0 %v1292_v46 }
 0x3d2   :  { %843 = vmatprep.subr.bf16.mxu0 %v1297_v47 }
 0x3d5   :  { %844 = vmatpush1.bf16.msra.mxu0 %v1295_v48 }
 0x3d6   :  { %845 = vmatprep.subr.bf16.mxu0 %v1300_v49 }
 0x3d9   :  { %846 = vmatpush1.bf16.msra.mxu0 %v1298_v50 }
 0x3da   :  { %861 = vmatprep.subr.bf16.mxu0 %v1303_v51 }
 0x3dd   :  { %862 = vmatpush2.bf16.msra.mxu0 %v1301_v52 }
 0x3de   :  { %1115 = vmatprep.subr.bf16.mxu0 %v1307_v55  ;;  %v1144_v55 = vld [vmem:[%s1792_s17] sm:$0x3] }
 0x3e0   :  { %864 = vmatmul.mubr.bf16.vlgmr.msra.gmra.mxu0 %v642_v32  ;;  %v1322_v32 = vld [vmem:[%s1791_s16 + $0x34] ss:$8 sps:$4 sm:$0xff]  }
 0x3e1   :  { %1133 = vmatprep.mubr.bf16.mxu0 %v1347_v12  ;;  %1116 = vmatpush1.bf16.msra.mxu0 %v1305_v57 }
 0x47c   :  { %v695_v59 = vpop.f32.mrf.mxu0 }
 0x47d   :  { %v696_v60 = vadd.f32 %v1187_v58, %v695_v59  ;;  %v1149_v59 = vrot.slane %v1144_v55, %v1577_v43 }
 0x47e   :  { %v1247_v61 = vpop.f32.mrf.mxu0 }
 0x47f   :  { %v1190_v62 = vmul.f32 -1.442695, %v696_v60 }
 0x480   :  { %v698_v63 = vpop.f32.mrf.mxu0 }
 0x481   :  { %1336 = vpow2.f32 %v1190_v62  ;;  %v1153_v63 = vrot.slane %v1144_v55, %v1582_v45 }
 0x482   :  { %v1248_v0 = vpop.f32.mrf.mxu0 }
 0x48e   :  { %v1337_v2 = vpop.eup %1336 }
 0x48f   :  { %v704_v3 = vadd.f32 1.0, %v1337_v2 }
 0x491   :  { %1338 = vrcp.f32 %v704_v3 }
 0x49e   :  { %v1339_v6 = vpop.eup %1338 }
 0x49f   :  { %v879_v7 = vpack.c.bf16 %v1339_v6, %v1339_v6 }
 0x4a0   :  { %v865_v9 = vpop.f32.mrf.mxu0 }
 0x4a1   :  { %v866_v10 = vadd.f32 %v865_v9, %v731_v5  ;;  %1252 = vmatmul.mubr.msk.bf16.vlgmr.msra.gmra.mxu1 %vm291_vm5, %v879_v7 }
 0x4a2   :  { %v867_v11 = vpop.f32.mrf.mxu0  ;;  %1079 = vmatprep.mubr.bf16.mxu1 %v1347_v12  ;;  %v1310_v12 = vld [vmem:[%s1791_s16 + $0x74] ss:$8 sps:$4 sm:$0xff]  }
 0x4a3   :  { %v1210_v13 = vmul.f32 -1.442695, %v866_v10  ;;  %v868_v14 = vadd.f32 %v867_v11, %v735_v8  ;;  %1047 = vmatprep.subr.bf16.mxu1 %v1310_v12 }
 0x4a4   :  { %v869_v15 = vpop.f32.mrf.mxu0  ;;  %1048 = vmatpush1.bf16.msra.mxu1 %v1308_v21 }
 0x4a5   :  { %1340 = vpow2.f32 %v1210_v13  ;;  %1049 = vmatprep.subr.bf16.mxu1 %v1313_v22 }
 0x4a6   :  { %v870_v16 = vpop.f32.mrf.mxu0 }
 0x4a8   :  { %1050 = vmatpush1.bf16.msra.mxu1 %v1311_v24 }
 0x4a9   :  { %1051 = vmatprep.subr.bf16.mxu1 %v1316_v26 }
 0x4ac   :  { %1052 = vmatpush1.bf16.msra.mxu1 %v1314_v28 }
 0x4ad   :  { %1053 = vmatprep.subr.bf16.mxu1 %v1319_v30 }
 0x4b0   :  { %1054 = vmatpush1.bf16.msra.mxu1 %v1317_v31 }
 0x4b1   :  { %1055 = vmatprep.subr.bf16.mxu1 %v1322_v32 }
 0x4b2   :  { %v1341_v17 = vpop.eup %1340 }
 0x4b3   :  { %v875_v1 = vadd.f32 1.0, %v1341_v17 }
 0x4b4   :  { %1056 = vmatpush1.bf16.msra.mxu1 %v1320_v33 }
 0x4b5   :  { %1342 = vrcp.f32 %v875_v1  ;;  %1057 = vmatprep.subr.bf16.mxu1 %v1325_v34 }
 0x4b8   :  { %1058 = vmatpush1.bf16.msra.mxu1 %v1323_v35 }
 0x4b9   :  { %1059 = vmatprep.subr.bf16.mxu1 %v1328_v36 }
 0x4bc   :  { %1060 = vmatpush1.bf16.msra.mxu1 %v1326_v37 }
 0x4bd   :  { %1061 = vmatprep.subr.bf16.mxu1 %v1331_v44 }
 0x4c0   :  { %1062 = vmatpush1.bf16.msra.mxu1 %v1329_v42 }
 0x4c2   :  { %v1343_v18 = vpop.eup %1342 }
 0x4c3   :  { %v878_v19 = vmul.f32 %v1343_v18, %v866_v10 }
 0x4c5   :  { %v937_v20 = vpack.c.bf16 %v878_v19, %v878_v19 }
 0x4c7   :  { %1231 = vmatmul.mubr.msk.bf16.vlgmr.msra.gmra.mxu0 %vm291_vm5, %v937_v20 }
 0x561   :  { %v925_v23 = vpop.f32.mrf.mxu1 }
 0x562   :  { %932 = vrot.lane.b32.xlu0 %v925_v23, %s1348_s27 }
 0x563   :  { %v1253_v25 = vpop.f32.mrf.mxu1 }
 0x565   :  { %v928_v27 = vpop.f32.mrf.mxu1 }
 0x567   :  { %v1254_v29 = vpop.f32.mrf.mxu1 }
 0x587   :  { %v1135_v38 = vpop.f32.mrf.mxu0 }
 0x589   :  { %v1137_v39 = vpop.f32.mrf.mxu0 }
 0x58b   :  { %v1139_v40 = vpop.f32.mrf.mxu0 }
 0x58d   :  { %v1140_v41 = vpop.f32.mrf.mxu0 }
 0x5d4   :  { %v933_v46 = vpop.permute.xlu0 %932 }
 0x5d5   :  { %v935_v47 = vmul.f32 %v933_v46, %v866_v10  ;;  %v936_v48 = vmul.f32 %v933_v46, %v868_v14 }
 0x5d7   :  { %v940_v49 = vpack.c.bf16 %v935_v47, %v935_v47  ;;  %v941_v50 = vpack.c.bf16 %v936_v48, %v936_v48 }
 0x5d9   :  { %960 = vrot.lane.b32.xlu1 %v940_v49, %s1349_s26 }
 0x5dd   :  { %962 = vrot.lane.b32.xlu1 %v941_v50, %s1349_s26 }
 0x64b   :  { %v961_v51 = vpop.permute.xlu1 %960 }
 0x64f   :  { %v963_v52 = vpop.permute.xlu1 %962 }
 0x650   :  { %v965_v53 = vsel %vm964_vm9, %v961_v51, %v963_v52 }
 0x651   :  { %1080 = vmatmul.mubr.bf16.vlgmr.msra.gmra.mxu1 %v965_v53 }
 0x711   :  { %v1081_v57 = vpop.f32.mrf.mxu1 }
 0x712   :  { %v1136_v58 = vadd.f32 %v1135_v38, %v1081_v57 }
 0x713   :  { %v1083_v60 = vpop.f32.mrf.mxu1 }
 0x714   :  { %v1142_v61 = vadd.f32 %v1136_v58, %v1592_v54  ;;  %v1138_v62 = vadd.f32 %v1137_v39, %v1083_v60 }
 0x715   :  { %v1085_v0 = vpop.f32.mrf.mxu1 }
 0x716   :  { %v1156_v2 = vadd.f32 %v1149_v59, %v1142_v61  ;;  %v1143_v3 = vadd.f32 %v1138_v62, %v1594_v56 }
 0x717   :  { %v1086_v4 = vpop.f32.mrf.mxu1 }
 0x718   :  { %1158 = vst [vmem:[%s1793_s18] sm:$0xff] %v1156_v2  ;;  %v1157_v5 = vadd.f32 %v1153_v63, %v1143_v3 }
 0x71a   :  { %1159 = vst.msk [vmem:[%s1793_s18 + $0x8] sm:$0xff] %vm291_vm5, %v1157_v5 }

</bundles_post_ra>
